<compile_context>
chip_gen: v7x
topology: tpu7x:2x2x1
jax: 0.10.0
libtpu: 0.0.40
codegen_flags: <defaults>
</compile_context>

<pallas_src>
import math
import functools

import numpy as np
import jax
import jax.numpy as jnp
from jax.experimental import pallas as pl
from jax.experimental.pallas import tpu as pltpu
from jax.scipy.linalg import block_diag

BN_EPS = 1e-5
BN_SCALE = 1.0 / math.sqrt(1.0 + BN_EPS)   # eval-mode BatchNorm1d, fresh running stats

_VMEM = functools.partial(pl.BlockSpec, memory_space=pltpu.MemorySpace.VMEM)

_VSN_KEYS = ("fa_w", "fa_b", "f2_w", "f2_b", "fg_w", "fg_b",
             "sa_w", "sa_b", "s2_w", "s2_b", "sg_w", "sg_b")


def _dot(a, b):
    return jnp.dot(a, b, preferred_element_type=jnp.float32)


def _elu(x):
    return jnp.where(x > 0, x, jnp.exp(jnp.minimum(x, 0.0)) - 1.0)   # ELU(alpha=1)


# ----------------------------------------------------------------------------
# TFT hyper-parameters (small, self-consistent). decoder length = seq_len - encode_length
# must be 1 for the module's own output-shape assert to hold.
# ----------------------------------------------------------------------------
CFG = dict(
    current=True, encode_length=7, categoical_variables=0,
    variables_encoder=6, variables_decoder=3, num_masked_series=3,
    lstm_hidden_dimension=32, lstm_layers=1, dropout=0.0,
    static_embedding_vocab_sizes=8, embedding_vocab_sizes=8,
    embedding_dim=8, attn_heads=4, output_dim=4, seq_len=8,
    static_variables=0, current_variables=2,
)


def _num_inputs(cfg):
    cur_emb = cfg["current_variables"] - cfg["static_variables"]
    n_enc = (cfg["variables_encoder"] - cfg["variables_decoder"]
             + cfg["categoical_variables"] + cur_emb)
    n_dec = cfg["variables_decoder"] + cfg["categoical_variables"] + cur_emb
    return n_enc, n_dec


# ----------------------------------------------------------------------------
# Kernel 1: embeddings + both VariableSelectionNetworks + positional encoding
# ----------------------------------------------------------------------------
def _vsn_block(x_cur, x_real, ew, eb, fa_w, fa_b, f2_w, f2_b, fg_w, fg_b,
               sa_w, sa_b, s2_w, s2_b, sg_w, sg_b, G, Gt, n, H):
    """One VariableSelectionNetwork on time-major flattened rows (rows = T*B)."""
    cv = x_cur.shape[1]
    # current Linear(cv, cv*E) + n_real Linear(1, E) banks fused into one block-diag
    # weight (split by input rows so no lane-concat of the inputs is needed).
    emb = _dot(x_cur, ew[:cv]) + _dot(x_real, ew[cv:]) + eb          # (rows, n*E)

    # flattened GRN -> selection logits; [skip | fc1] and [glu1 | glu2] weights fused
    a = _dot(emb, fa_w) + fa_b                                       # (rows, n + H)
    res = a[:, :n]
    h = _elu(a[:, n:])
    h = _dot(h, f2_w) + f2_b                                         # (rows, n)
    g = _dot(h, fg_w) + fg_b                                         # (rows, 2n)
    logits = (jax.nn.sigmoid(g[:, :n]) * g[:, n:] + res) * BN_SCALE

    # nn.Softmax() (no dim) over a (T, B, n) tensor -> softmax over the TIME axis.
    # Rows are time-major (r = t*B + b).  Subtracting a global per-column max is an
    # exact per-group shift; the per-batch strided sums are done with the constant
    # group matrices G / Gt (matmuls, no strided sublane gathers).
    m = jnp.max(logits, axis=0, keepdims=True)
    e = jnp.exp(logits - m)
    denom = _dot(G, _dot(Gt, e))
    w = e / denom                                                    # (rows, n)

    # n per-variable GRNs as block-diagonal matmuls
    nH = n * H
    a2 = _dot(emb, sa_w) + sa_b                                      # (rows, 2*n*H)
    res2 = a2[:, :nH]
    h2 = _elu(a2[:, nH:])
    h2 = _dot(h2, s2_w) + s2_b                                       # (rows, n*H)
    g2 = _dot(h2, sg_w) + sg_b                                       # (rows, 2*n*H)
    var = (jax.nn.sigmoid(g2[:, :nH]) * g2[:, nH:] + res2) * BN_SCALE

    out = w[:, 0:1] * var[:, 0:H]
    for i in range(1, n):
        out = out + w[:, i:i + 1] * var[:, i * H:(i + 1) * H]
    return out                                                       # (rows, H)


def _frontend_kernel(*refs, cfg, batch):
    (seq_ref, cur_ref, penc_ref, pdec_ref, senc_ref, sdec_ref, pe_ref,
     ewe_ref, ebe_ref, ewd_ref, ebd_ref,
     e_fa_w, e_fa_b, e_f2_w, e_f2_b, e_fg_w, e_fg_b,
     e_sa_w, e_sa_b, e_s2_w, e_s2_b, e_sg_w, e_sg_b, genc_ref, gtenc_ref,
     d_fa_w, d_fa_b, d_f2_w, d_f2_b, d_fg_w, d_fg_b,
     d_sa_w, d_sa_b, d_s2_w, d_s2_b, d_sg_w, d_sg_b, gdec_ref, gtdec_ref,
     o_ref) = refs

    B = batch
    L, enc_len = cfg["seq_len"], cfg["encode_length"]
    H = cfg["lstm_hidden_dimension"]
    Ve, Vd = cfg["variables_encoder"], cfg["variables_decoder"]
    cat, mask = cfg["categoical_variables"], cfg["num_masked_series"]
    n_enc, n_dec = _num_inputs(cfg)
    encB = enc_len * B

    seq = seq_ref[...]                        # (B*L, Ve), row-major (b, t)
    cur = cur_ref[...]                        # (B, cv)

    # ---- encoder branch: rows t < enc_len, reordered time-major via constant matmul
    seq_e = _dot(penc_ref[...], seq)          # (enc_len*B, Ve)
    x_real_e = seq_e[:, cat:cat + (Ve - Vd)]
    x_cur_e = _dot(senc_ref[...], cur)        # torch cat(T*[ce]).view(B,T,-1) pattern
    enc_out = _vsn_block(x_cur_e, x_real_e, ewe_ref[...], ebe_ref[...],
                         e_fa_w[...], e_fa_b[...], e_f2_w[...], e_f2_b[...],
                         e_fg_w[...], e_fg_b[...], e_sa_w[...], e_sa_b[...],
                         e_s2_w[...], e_s2_b[...], e_sg_w[...], e_sg_b[...],
                         genc_ref[...], gtenc_ref[...], n_enc, H)

    # ---- decoder branch: rows t >= enc_len
    seq_d = _dot(pdec_ref[...], seq)          # (dec_len*B, Ve)
    x_real_d = seq_d[:, mask:mask + Vd]
    x_cur_d = _dot(sdec_ref[...], cur)
    dec_out = _vsn_block(x_cur_d, x_real_d, ewd_ref[...], ebd_ref[...],
                         d_fa_w[...], d_fa_b[...], d_f2_w[...], d_f2_b[...],
                         d_fg_w[...], d_fg_b[...], d_sa_w[...], d_sa_b[...],
                         d_s2_w[...], d_s2_b[...], d_sg_w[...], d_sg_b[...],
                         gdec_ref[...], gtdec_ref[...], n_dec, H)

    # + positional embedding, written as the (L*B, H) time-major LSTM input
    o_ref[0:encB, :] = enc_out + pe_ref[0:encB, :]
    o_ref[encB:L * B, :] = dec_out + pe_ref[encB:L * B, :]


# ----------------------------------------------------------------------------
# Kernel 2: encoder + decoder LSTM (input projection hoisted) + post-LSTM GLU
# ----------------------------------------------------------------------------
def _lstm_kernel(xin_ref, wih_e, whh_e, b_e, wih_d, whh_d, b_d, glu_w, glu_b,
                 gated_ref, raw_sc, *, cfg, batch):
    B = batch
    L, enc_len = cfg["seq_len"], cfg["encode_length"]
    H = cfg["lstm_hidden_dimension"]
    dec_len = L - enc_len
    encB = enc_len * B

    x = xin_ref[...]                                     # (L*B, H)
    # hoisted input projections: one (T*B, H)x(H, 4H) matmul per LSTM
    xg_e = _dot(x[:encB], wih_e[...]) + b_e[...]
    xg_d = _dot(x[encB:], wih_d[...]) + b_d[...]

    def step(h, c, gates):
        i = jax.nn.sigmoid(gates[:, 0 * H:1 * H])
        f = jax.nn.sigmoid(gates[:, 1 * H:2 * H])
        g = jnp.tanh(gates[:, 2 * H:3 * H])
        o = jax.nn.sigmoid(gates[:, 3 * H:4 * H])
        c = f * c + i * g
        h = o * jnp.tanh(c)
        return h, c

    h = jnp.zeros((B, H), jnp.float32)
    c = jnp.zeros((B, H), jnp.float32)
    whh = whh_e[...]
    for t in range(enc_len):                             # static unroll, T is tiny
        h, c = step(h, c, xg_e[t * B:(t + 1) * B, :] + _dot(h, whh))
        raw_sc[t * B:(t + 1) * B, :] = h

    # decoder LSTM: torch passes (hidden, hidden) -> h0 = c0 = encoder final hidden
    c = h
    whh = whh_d[...]
    for t in range(dec_len):
        h, c = step(h, c, xg_d[t * B:(t + 1) * B, :] + _dot(h, whh))
        raw_sc[encB + t * B:encB + (t + 1) * B, :] = h

    # post_lstm_gate: GLU(lstm_output + lstm_input) with fused [w1 | w2] weights
    y = raw_sc[...] + x
    g = _dot(y, glu_w[...]) + glu_b[...]
    gated_ref[...] = jax.nn.sigmoid(g[:, :H]) * g[:, H:]


# ----------------------------------------------------------------------------
# Kernel 3: multi-head attention + gating / position-wise GRN head + output layer
# ----------------------------------------------------------------------------
def _head_kernel(gated_ref, wq, bq, wkv, bkv, wo, bo, pbm_ref, hsum_ref, hsumt_ref,
                 pa_w, pa_b, ff1_w, ff1_b, ff2_w, ff2_b, ffg_w, ffg_b,
                 po_w, po_b, ow, ob, o_ref, *, cfg, batch):
    B = batch
    L, enc_len = cfg["seq_len"], cfg["encode_length"]
    H, heads = cfg["lstm_hidden_dimension"], cfg["attn_heads"]
    hd = H // heads
    encB = enc_len * B
    scale = 1.0 / math.sqrt(hd)

    gated = gated_ref[...]                     # post_lstm_gate output (L*B, H)
    attn_in = gated * BN_SCALE                 # post_lstm_norm (eval BN)
    enc = attn_in[:encB]
    dec = attn_in[encB:]                       # (B, H); decoder length == 1

    # multi-head attention: shared fused K|V projection; per-head score/weight math
    # via the constant head-sum matrix (elementwise mul + small matmul, no per-head dots)
    q = _dot(dec, wq[...]) + bq[...]           # (B, H)
    kv = _dot(enc, wkv[...]) + bkv[...]        # (enc_len*B, 2H), time-major rows
    kv = _dot(pbm_ref[...], kv)                # batch-major rows (b, t)
    hsum = hsum_ref[...]
    hsumt = hsumt_ref[...]

    outs = []
    for b in range(B):                         # B is tiny/static; heads are vectorized
        kb = kv[b * enc_len:(b + 1) * enc_len, :H]
        vb = kv[b * enc_len:(b + 1) * enc_len, H:]
        qb = q[b:b + 1, :]
        s = _dot(qb * kb, hsum) * scale        # (enc_len, heads)
        s = s - jnp.max(s, axis=0, keepdims=True)
        e = jnp.exp(s)
        p = e / jnp.sum(e, axis=0, keepdims=True)
        pw = _dot(p, hsumt)                    # (enc_len, H): per-lane head weight
        outs.append(jnp.sum(pw * vb, axis=0, keepdims=True))
    attn = jnp.concatenate(outs, axis=0)       # (B, H), heads already in place
    attn = _dot(attn, wo[...]) + bo[...]       # out_proj

    # post_attn_gate (GLU) + residual + post_attn_norm
    g = _dot(attn, pa_w[...]) + pa_b[...]
    xx = (jax.nn.sigmoid(g[:, :H]) * g[:, H:] + dec) * BN_SCALE

    # pos_wise_ff GRN (input == output -> identity residual, no skip matmul)
    h1 = _elu(_dot(xx, ff1_w[...]) + ff1_b[...])
    h1 = _dot(h1, ff2_w[...]) + ff2_b[...]
    g = _dot(h1, ffg_w[...]) + ffg_b[...]
    y = (jax.nn.sigmoid(g[:, :H]) * g[:, H:] + xx) * BN_SCALE

    # pre_output_gate (GLU) + residual with pre-norm gated LSTM output, then output layer
    g = _dot(y, po_w[...]) + po_b[...]
    z = jax.nn.sigmoid(g[:, :H]) * g[:, H:] + gated[encB:]
    o_ref[...] = _dot(z, ow[...]) + ob[...]


# ----------------------------------------------------------------------------
# Deterministic parameter init (synthetic, mirrors the module's layer shapes) + packing
# ----------------------------------------------------------------------------
def _dense(key, din, dout):
    kw, kb = jax.random.split(key)
    bound = 1.0 / math.sqrt(din)
    w = jax.random.uniform(kw, (din, dout), jnp.float32, -bound, bound)
    b = jax.random.uniform(kb, (1, dout), jnp.float32, -bound, bound)
    return w, b


def _glu_packed(key, d):
    k1, k2 = jax.random.split(key)
    w1, b1 = _dense(k1, d, d)
    w2, b2 = _dense(k2, d, d)
    return dict(w=jnp.concatenate([w1, w2], axis=1), b=jnp.concatenate([b1, b2], axis=1))


def _vsn_packed(key, emb_dim, num_inputs, hidden):
    """Pack one VariableSelectionNetwork: fused flat GRN + block-diag per-variable GRNs."""
    kf, ks = jax.random.split(key)
    din, dout = num_inputs * emb_dim, num_inputs
    kk = jax.random.split(kf, 5)
    sw, sb = _dense(kk[0], din, dout)                    # skip_layer (din != dout)
    w1, b1 = _dense(kk[1], din, hidden)
    w2, b2 = _dense(kk[2], hidden, dout)
    gw1, gb1 = _dense(kk[3], dout, dout)
    gw2, gb2 = _dense(kk[4], dout, dout)
    p = dict(fa_w=jnp.concatenate([sw, w1], axis=1),
             fa_b=jnp.concatenate([sb, b1], axis=1),
             f2_w=w2, f2_b=b2,
             fg_w=jnp.concatenate([gw1, gw2], axis=1),
             fg_b=jnp.concatenate([gb1, gb2], axis=1))

    skips, sbs, w1s, b1s, w2s, b2s, g1s, gb1s, g2s, gb2s = ([] for _ in range(10))
    for k in jax.random.split(ks, num_inputs):
        kk = jax.random.split(k, 5)
        if emb_dim != hidden:
            s_w, s_b = _dense(kk[0], emb_dim, hidden)
        else:  # GRN residual = x when dims match (no real skip layer in the module)
            s_w = jnp.eye(hidden, dtype=jnp.float32)
            s_b = jnp.zeros((1, hidden), jnp.float32)
        v1, c1 = _dense(kk[1], emb_dim, hidden)
        v2, c2 = _dense(kk[2], hidden, hidden)
        q1, d1 = _dense(kk[3], hidden, hidden)
        q2, d2 = _dense(kk[4], hidden, hidden)
        skips.append(s_w); sbs.append(s_b); w1s.append(v1); b1s.append(c1)
        w2s.append(v2); b2s.append(c2); g1s.append(q1); gb1s.append(d1)
        g2s.append(q2); gb2s.append(d2)

    p.update(
        sa_w=jnp.concatenate([block_diag(*skips), block_diag(*w1s)], axis=1),
        sa_b=jnp.concatenate([jnp.concatenate(sbs, 1), jnp.concatenate(b1s, 1)], axis=1),
        s2_w=block_diag(*w2s), s2_b=jnp.concatenate(b2s, axis=1),
        sg_w=jnp.concatenate([block_diag(*g1s), block_diag(*g2s)], axis=1),
        sg_b=jnp.concatenate([jnp.concatenate(gb1s, 1), jnp.concatenate(gb2s, 1)], axis=1))
    return p


def _lstm_params(key, h):
    ks = jax.random.split(key, 3)
    bound = 1.0 / math.sqrt(h)
    return dict(wih=jax.random.uniform(ks[0], (h, 4 * h), jnp.float32, -bound, bound),
                whh=jax.random.uniform(ks[1], (h, 4 * h), jnp.float32, -bound, bound),
                b=jax.random.uniform(ks[2], (1, 4 * h), jnp.float32, -bound, bound))


def _mha_params(key, e):
    ks = jax.random.split(key, 4)
    wq, bq = _dense(ks[0], e, e)
    wk, bk = _dense(ks[1], e, e)
    wv, bv = _dense(ks[2], e, e)
    wo, bo = _dense(ks[3], e, e)
    return dict(wq=wq, bq=bq,
                wkv=jnp.concatenate([wk, wv], axis=1),
                bkv=jnp.concatenate([bk, bv], axis=1),
                wo=wo, bo=bo)


def _grn_same_dim_params(key, h):
    ks = jax.random.split(key, 4)
    w1, b1 = _dense(ks[0], h, h)
    w2, b2 = _dense(ks[1], h, h)
    gw1, gb1 = _dense(ks[2], h, h)
    gw2, gb2 = _dense(ks[3], h, h)
    return dict(w1=w1, b1=b1, w2=w2, b2=b2,
                gw=jnp.concatenate([gw1, gw2], axis=1),
                gb=jnp.concatenate([gb1, gb2], axis=1))


def init_params(key, cfg):
    E = cfg["embedding_dim"]
    H = cfg["lstm_hidden_dimension"]
    cv = cfg["current_variables"]
    Ve, Vd = cfg["variables_encoder"], cfg["variables_decoder"]
    mask = cfg["num_masked_series"]
    n_enc, n_dec = _num_inputs(cfg)
    ks = jax.random.split(key, 13)

    cur_w, cur_b = _dense(ks[0], cv, cv * E)                        # current_linear
    emb_w = jax.random.uniform(ks[1], (Ve, E), jnp.float32, -1.0, 1.0)  # Linear(1,E) bank
    emb_b = jax.random.uniform(ks[2], (Ve, E), jnp.float32, -1.0, 1.0)

    def pack_embed(idx):     # current_linear + selected Linear(1,E) layers, block-diag
        w = block_diag(cur_w, *[emb_w[i:i + 1] for i in idx])
        b = jnp.concatenate([cur_b] + [emb_b[i:i + 1] for i in idx], axis=1)
        return w, b

    embW_enc, embB_enc = pack_embed(range(0, Ve - Vd))              # layers 0..Ve-Vd-1
    embW_dec, embB_dec = pack_embed(range(mask, mask + Vd))         # layers mask..mask+Vd-1
    ow, ob = _dense(ks[12], H, cfg["output_dim"])
    return dict(
        embW_enc=embW_enc, embB_enc=embB_enc, embW_dec=embW_dec, embB_dec=embB_dec,
        enc_vsn=_vsn_packed(ks[3], E, n_enc, H),
        dec_vsn=_vsn_packed(ks[4], E, n_dec, H),
        lstm_enc=_lstm_params(ks[5], H),
        lstm_dec=_lstm_params(ks[6], H),
        post_lstm_glu=_glu_packed(ks[7], H),
        mha=_mha_params(ks[8], H),
        post_attn_glu=_glu_packed(ks[9], H),
        pos_ff=_grn_same_dim_params(ks[10], H),
        pre_out_glu=_glu_packed(ks[11], H),
        out_w=ow, out_b=ob,
    )


# ----------------------------------------------------------------------------
# Trace-time constants (index / permutation / PE matrices; baked into the executable)
# ----------------------------------------------------------------------------
def _build_constants(cfg, B):
    L, enc_len = cfg["seq_len"], cfg["encode_length"]
    H, heads = cfg["lstm_hidden_dimension"], cfg["attn_heads"]
    dec_len = L - enc_len
    encB, decB = enc_len * B, dec_len * B

    r = np.arange(encB); t_e = r // B; b_e = r % B
    rd = np.arange(decB); t_d = rd // B; b_d = rd % B

    P_enc = np.zeros((encB, B * L), np.float32); P_enc[r, b_e * L + t_e] = 1.0
    P_dec = np.zeros((decB, B * L), np.float32); P_dec[rd, b_d * L + enc_len + t_d] = 1.0
    # torch.cat(T*[current_embedding]).view(B,T,-1) row pattern: source row (b*T + t) % B
    S_enc = np.zeros((encB, B), np.float32); S_enc[r, (b_e * enc_len + t_e) % B] = 1.0
    S_dec = np.zeros((decB, B), np.float32); S_dec[rd, (b_d * dec_len + t_d) % B] = 1.0
    # per-batch group sum matrices for the softmax over the time axis
    G_enc = np.zeros((encB, B), np.float32); G_enc[r, b_e] = 1.0
    G_dec = np.zeros((decB, B), np.float32); G_dec[rd, b_d] = 1.0
    # time-major -> batch-major permutation for attention keys / values
    P_bm = np.zeros((encB, encB), np.float32); P_bm[b_e * enc_len + t_e, r] = 1.0
    # per-head lane-sum matrix
    hd = H // heads
    hsum = np.zeros((H, heads), np.float32); hsum[np.arange(H), np.arange(H) // hd] = 1.0
    # TODO(synk): PositionalEmbedding class body is not in the reference source; using the
    # standard sinusoidal positional encoding of shape (seq_len, 1, H).
    pos = np.arange(L, dtype=np.float32)[:, None]
    div = np.exp(np.arange(0, H, 2, dtype=np.float32) * (-math.log(10000.0) / H))
    pe = np.zeros((L, H), np.float32)
    pe[:, 0::2] = np.sin(pos * div)
    pe[:, 1::2] = np.cos(pos * div)
    pe_rows = np.repeat(pe, B, axis=0)                     # row r -> pe[r // B]

    to_j = lambda a: jnp.asarray(a)
    return dict(P_enc=to_j(P_enc), P_dec=to_j(P_dec), S_enc=to_j(S_enc), S_dec=to_j(S_dec),
                G_enc=to_j(G_enc), Gt_enc=to_j(np.ascontiguousarray(G_enc.T)),
                G_dec=to_j(G_dec), Gt_dec=to_j(np.ascontiguousarray(G_dec.T)),
                P_bm=to_j(P_bm), hsum=to_j(hsum),
                hsumT=to_j(np.ascontiguousarray(hsum.T)), pe_rows=to_j(pe_rows))


# ----------------------------------------------------------------------------
# Forward pass: three fused pallas_calls
# ----------------------------------------------------------------------------
def tft_forward(params, cfg, seq_feature, current_feature):
    B = seq_feature.shape[0]
    L, enc_len = cfg["seq_len"], cfg["encode_length"]
    H = cfg["lstm_hidden_dimension"]
    Ve = cfg["variables_encoder"]
    cv = cfg["current_variables"]
    dec_len = L - enc_len
    consts = _build_constants(cfg, B)

    # same input slicing as the torch forward (no-ops at these shapes)
    seq_flat = seq_feature[:, -L:, -Ve:].reshape(B * L, Ve)
    cur = current_feature[:, -cv:]            # static_variables == 0 branch

    # ---- kernel 1: embeddings + both VSNs + positional encoding -> LSTM input
    vsn_e, vsn_d = params["enc_vsn"], params["dec_vsn"]
    k1_inputs = [seq_flat, cur,
                 consts["P_enc"], consts["P_dec"], consts["S_enc"], consts["S_dec"],
                 consts["pe_rows"],
                 params["embW_enc"], params["embB_enc"],
                 params["embW_dec"], params["embB_dec"],
                 *[vsn_e[k] for k in _VSN_KEYS], consts["G_enc"], consts["Gt_enc"],
                 *[vsn_d[k] for k in _VSN_KEYS], consts["G_dec"], consts["Gt_dec"]]
    lstm_input = pl.pallas_call(
        functools.partial(_frontend_kernel, cfg=cfg, batch=B),
        out_shape=jax.ShapeDtypeStruct((L * B, H), jnp.float32),
        in_specs=[_VMEM()] * len(k1_inputs),
        out_specs=_VMEM(),
    )(*k1_inputs)

    # ---- kernel 2: encoder + decoder LSTM + post_lstm GLU
    le, ld, pg = params["lstm_enc"], params["lstm_dec"], params["post_lstm_glu"]
    gated = pl.pallas_call(
        functools.partial(_lstm_kernel, cfg=cfg, batch=B),
        out_shape=jax.ShapeDtypeStruct((L * B, H), jnp.float32),
        in_specs=[_VMEM()] * 9,
        out_specs=_VMEM(),
        scratch_shapes=[pltpu.VMEM((L * B, H), jnp.float32)],
    )(lstm_input, le["wih"], le["whh"], le["b"], ld["wih"], ld["whh"], ld["b"],
      pg["w"], pg["b"])

    # ---- kernel 3: MHA + gating/GRN head + output layer
    mha, pa = params["mha"], params["post_attn_glu"]
    ff, po = params["pos_ff"], params["pre_out_glu"]
    k3_inputs = [gated, mha["wq"], mha["bq"], mha["wkv"], mha["bkv"], mha["wo"], mha["bo"],
                 consts["P_bm"], consts["hsum"], consts["hsumT"],
                 pa["w"], pa["b"],
                 ff["w1"], ff["b1"], ff["w2"], ff["b2"], ff["gw"], ff["gb"],
                 po["w"], po["b"], params["out_w"], params["out_b"]]
    out = pl.pallas_call(
        functools.partial(_head_kernel, cfg=cfg, batch=B),
        out_shape=jax.ShapeDtypeStruct((dec_len * B, cfg["output_dim"]), jnp.float32),
        in_specs=[_VMEM()] * len(k3_inputs),
        out_specs=_VMEM(),
    )(*k3_inputs)
    return out


@jax.jit
def run(params, seq_feature, current_feature):
    return tft_forward(params, CFG, seq_feature, current_feature)


if __name__ == "__main__":
    key = jax.random.PRNGKey(0)
    k_param, k_seq, k_cur = jax.random.split(key, 3)
    params = init_params(k_param, CFG)

    B = 2
    seq_feature = jax.random.normal(
        k_seq, (B, CFG["seq_len"], CFG["variables_encoder"]), jnp.float32)
    current_feature = jax.random.normal(
        k_cur, (B, CFG["current_variables"]), jnp.float32)

    out = run(params, seq_feature, current_feature)
    jax.block_until_ready(out)
    assert out.shape[0] == seq_feature.shape[0]       # mirrors the module's assert
    assert out.shape == (B, CFG["output_dim"])
    print("KERNEL_OK")
</pallas_src>

<mosaic_0001>
module attributes {stable_mosaic.version = 11 : i64} {
  func.func @_frontend_kernel(%arg0: memref<16x6xf32, #tpu.memory_space<vmem>>, %arg1: memref<2x2xf32, #tpu.memory_space<vmem>>, %arg2: memref<14x16xf32, #tpu.memory_space<vmem>>, %arg3: memref<2x16xf32, #tpu.memory_space<vmem>>, %arg4: memref<14x2xf32, #tpu.memory_space<vmem>>, %arg5: memref<2x2xf32, #tpu.memory_space<vmem>>, %arg6: memref<16x32xf32, #tpu.memory_space<vmem>>, %arg7: memref<5x40xf32, #tpu.memory_space<vmem>>, %arg8: memref<1x40xf32, #tpu.memory_space<vmem>>, %arg9: memref<5x40xf32, #tpu.memory_space<vmem>>, %arg10: memref<1x40xf32, #tpu.memory_space<vmem>>, %arg11: memref<40x37xf32, #tpu.memory_space<vmem>>, %arg12: memref<1x37xf32, #tpu.memory_space<vmem>>, %arg13: memref<32x5xf32, #tpu.memory_space<vmem>>, %arg14: memref<1x5xf32, #tpu.memory_space<vmem>>, %arg15: memref<5x10xf32, #tpu.memory_space<vmem>>, %arg16: memref<1x10xf32, #tpu.memory_space<vmem>>, %arg17: memref<40x320xf32, #tpu.memory_space<vmem>>, %arg18: memref<1x320xf32, #tpu.memory_space<vmem>>, %arg19: memref<160x160xf32, #tpu.memory_space<vmem>>, %arg20: memref<1x160xf32, #tpu.memory_space<vmem>>, %arg21: memref<160x320xf32, #tpu.memory_space<vmem>>, %arg22: memref<1x320xf32, #tpu.memory_space<vmem>>, %arg23: memref<14x2xf32, #tpu.memory_space<vmem>>, %arg24: memref<2x14xf32, #tpu.memory_space<vmem>>, %arg25: memref<40x37xf32, #tpu.memory_space<vmem>>, %arg26: memref<1x37xf32, #tpu.memory_space<vmem>>, %arg27: memref<32x5xf32, #tpu.memory_space<vmem>>, %arg28: memref<1x5xf32, #tpu.memory_space<vmem>>, %arg29: memref<5x10xf32, #tpu.memory_space<vmem>>, %arg30: memref<1x10xf32, #tpu.memory_space<vmem>>, %arg31: memref<40x320xf32, #tpu.memory_space<vmem>>, %arg32: memref<1x320xf32, #tpu.memory_space<vmem>>, %arg33: memref<160x160xf32, #tpu.memory_space<vmem>>, %arg34: memref<1x160xf32, #tpu.memory_space<vmem>>, %arg35: memref<160x320xf32, #tpu.memory_space<vmem>>, %arg36: memref<1x320xf32, #tpu.memory_space<vmem>>, %arg37: memref<2x2xf32, #tpu.memory_space<vmem>>, %arg38: memref<2x2xf32, #tpu.memory_space<vmem>>, %arg39: memref<16x32xf32, #tpu.memory_space<vmem>>) attributes {dimension_semantics = [], scalar_prefetch = 0 : i64, scratch_operands = 0 : i64, tpu.core_type = #tpu.core_type<tc>} {
    %c0 = arith.constant 0 : index
    %c0_0 = arith.constant 0 : index
    %0 = vector.load %arg0[%c0, %c0_0] : memref<16x6xf32, #tpu.memory_space<vmem>>, vector<16x6xf32>
    %c0_1 = arith.constant 0 : index
    %c0_2 = arith.constant 0 : index
    %1 = vector.load %arg1[%c0_1, %c0_2] : memref<2x2xf32, #tpu.memory_space<vmem>>, vector<2x2xf32>
    %c0_3 = arith.constant 0 : index
    %c0_4 = arith.constant 0 : index
    %2 = vector.load %arg2[%c0_3, %c0_4] : memref<14x16xf32, #tpu.memory_space<vmem>>, vector<14x16xf32>
    %cst = arith.constant dense<0.000000e+00> : vector<14x6xf32>
    %3 = tpu.matmul %2, %0, %cst {dimension_numbers = #tpu.dot_dimension_numbers<[1], [0], [0], [1], [0, 0, 1, 1], [], []>} : vector<14x16xf32>, vector<16x6xf32>, vector<14x6xf32> -> vector<14x6xf32>
    %4 = vector.extract_strided_slice %3 {offsets = [0, 0], sizes = [14, 3], strides = [1, 1]} : vector<14x6xf32> to vector<14x3xf32>
    %c0_5 = arith.constant 0 : index
    %c0_6 = arith.constant 0 : index
    %5 = vector.load %arg4[%c0_5, %c0_6] : memref<14x2xf32, #tpu.memory_space<vmem>>, vector<14x2xf32>
    %cst_7 = arith.constant dense<0.000000e+00> : vector<14x2xf32>
    %6 = tpu.matmul %5, %1, %cst_7 {dimension_numbers = #tpu.dot_dimension_numbers<[1], [0], [0], [1], [0, 0, 1, 1], [], []>} : vector<14x2xf32>, vector<2x2xf32>, vector<14x2xf32> -> vector<14x2xf32>
    %c0_8 = arith.constant 0 : index
    %c0_9 = arith.constant 0 : index
    %7 = vector.load %arg7[%c0_8, %c0_9] : memref<5x40xf32, #tpu.memory_space<vmem>>, vector<5x40xf32>
    %c0_10 = arith.constant 0 : index
    %c0_11 = arith.constant 0 : index
    %8 = vector.load %arg8[%c0_10, %c0_11] : memref<1x40xf32, #tpu.memory_space<vmem>>, vector<1x40xf32>
    %c0_12 = arith.constant 0 : index
    %c0_13 = arith.constant 0 : index
    %9 = vector.load %arg11[%c0_12, %c0_13] : memref<40x37xf32, #tpu.memory_space<vmem>>, vector<40x37xf32>
    %c0_14 = arith.constant 0 : index
    %c0_15 = arith.constant 0 : index
    %10 = vector.load %arg12[%c0_14, %c0_15] : memref<1x37xf32, #tpu.memory_space<vmem>>, vector<1x37xf32>
    %c0_16 = arith.constant 0 : index
    %c0_17 = arith.constant 0 : index
    %11 = vector.load %arg13[%c0_16, %c0_17] : memref<32x5xf32, #tpu.memory_space<vmem>>, vector<32x5xf32>
    %c0_18 = arith.constant 0 : index
    %c0_19 = arith.constant 0 : index
    %12 = vector.load %arg14[%c0_18, %c0_19] : memref<1x5xf32, #tpu.memory_space<vmem>>, vector<1x5xf32>
    %c0_20 = arith.constant 0 : index
    %c0_21 = arith.constant 0 : index
    %13 = vector.load %arg15[%c0_20, %c0_21] : memref<5x10xf32, #tpu.memory_space<vmem>>, vector<5x10xf32>
    %c0_22 = arith.constant 0 : index
    %c0_23 = arith.constant 0 : index
    %14 = vector.load %arg16[%c0_22, %c0_23] : memref<1x10xf32, #tpu.memory_space<vmem>>, vector<1x10xf32>
    %c0_24 = arith.constant 0 : index
    %c0_25 = arith.constant 0 : index
    %15 = vector.load %arg17[%c0_24, %c0_25] : memref<40x320xf32, #tpu.memory_space<vmem>>, vector<40x320xf32>
    %c0_26 = arith.constant 0 : index
    %c0_27 = arith.constant 0 : index
    %16 = vector.load %arg18[%c0_26, %c0_27] : memref<1x320xf32, #tpu.memory_space<vmem>>, vector<1x320xf32>
    %c0_28 = arith.constant 0 : index
    %c0_29 = arith.constant 0 : index
    %17 = vector.load %arg19[%c0_28, %c0_29] : memref<160x160xf32, #tpu.memory_space<vmem>>, vector<160x160xf32>
    %c0_30 = arith.constant 0 : index
    %c0_31 = arith.constant 0 : index
    %18 = vector.load %arg20[%c0_30, %c0_31] : memref<1x160xf32, #tpu.memory_space<vmem>>, vector<1x160xf32>
    %c0_32 = arith.constant 0 : index
    %c0_33 = arith.constant 0 : index
    %19 = vector.load %arg21[%c0_32, %c0_33] : memref<160x320xf32, #tpu.memory_space<vmem>>, vector<160x320xf32>
    %c0_34 = arith.constant 0 : index
    %c0_35 = arith.constant 0 : index
    %20 = vector.load %arg22[%c0_34, %c0_35] : memref<1x320xf32, #tpu.memory_space<vmem>>, vector<1x320xf32>
    %c0_36 = arith.constant 0 : index
    %c0_37 = arith.constant 0 : index
    %21 = vector.load %arg23[%c0_36, %c0_37] : memref<14x2xf32, #tpu.memory_space<vmem>>, vector<14x2xf32>
    %c0_38 = arith.constant 0 : index
    %c0_39 = arith.constant 0 : index
    %22 = vector.load %arg24[%c0_38, %c0_39] : memref<2x14xf32, #tpu.memory_space<vmem>>, vector<2x14xf32>
    %23 = vector.extract_strided_slice %7 {offsets = [0, 0], sizes = [2, 40], strides = [1, 1]} : vector<5x40xf32> to vector<2x40xf32>
    %cst_40 = arith.constant dense<0.000000e+00> : vector<14x40xf32>
    %24 = tpu.matmul %6, %23, %cst_40 {dimension_numbers = #tpu.dot_dimension_numbers<[1], [0], [0], [1], [0, 0, 1, 1], [], []>} : vector<14x2xf32>, vector<2x40xf32>, vector<14x40xf32> -> vector<14x40xf32>
    %25 = vector.extract_strided_slice %7 {offsets = [2, 0], sizes = [3, 40], strides = [1, 1]} : vector<5x40xf32> to vector<3x40xf32>
    %cst_41 = arith.constant dense<0.000000e+00> : vector<14x40xf32>
    %26 = tpu.matmul %4, %25, %cst_41 {dimension_numbers = #tpu.dot_dimension_numbers<[1], [0], [0], [1], [0, 0, 1, 1], [], []>} : vector<14x3xf32>, vector<3x40xf32>, vector<14x40xf32> -> vector<14x40xf32>
    %27 = arith.addf %24, %26 : vector<14x40xf32>
    %28 = vector.broadcast %8 : vector<1x40xf32> to vector<14x40xf32>
    %29 = arith.addf %27, %28 : vector<14x40xf32>
    %cst_42 = arith.constant dense<0.000000e+00> : vector<14x37xf32>
    %30 = tpu.matmul %29, %9, %cst_42 {dimension_numbers = #tpu.dot_dimension_numbers<[1], [0], [0], [1], [0, 0, 1, 1], [], []>} : vector<14x40xf32>, vector<40x37xf32>, vector<14x37xf32> -> vector<14x37xf32>
    %31 = vector.broadcast %10 : vector<1x37xf32> to vector<14x37xf32>
    %32 = arith.addf %30, %31 : vector<14x37xf32>
    %33 = vector.extract_strided_slice %32 {offsets = [0, 0], sizes = [14, 5], strides = [1, 1]} : vector<14x37xf32> to vector<14x5xf32>
    %34 = vector.extract_strided_slice %32 {offsets = [0, 5], sizes = [14, 32], strides = [1, 1]} : vector<14x37xf32> to vector<14x32xf32>
    %cst_43 = arith.constant 0.000000e+00 : f32
    %35 = vector.broadcast %cst_43 : f32 to vector<14x32xf32>
    %36 = arith.cmpf ogt, %34, %35 : vector<14x32xf32>
    %cst_44 = arith.constant 0.000000e+00 : f32
    %37 = vector.broadcast %cst_44 : f32 to vector<14x32xf32>
    %38 = arith.minimumf %34, %37 : vector<14x32xf32>
    %39 = math.exp %38 : vector<14x32xf32>
    %cst_45 = arith.constant 1.000000e+00 : f32
    %40 = vector.broadcast %cst_45 : f32 to vector<14x32xf32>
    %41 = arith.subf %39, %40 : vector<14x32xf32>
    %42 = arith.select %36, %34, %41 : vector<14x32xi1>, vector<14x32xf32>
    %cst_46 = arith.constant dense<0.000000e+00> : vector<14x5xf32>
    %43 = tpu.matmul %42, %11, %cst_46 {dimension_numbers = #tpu.dot_dimension_numbers<[1], [0], [0], [1], [0, 0, 1, 1], [], []>} : vector<14x32xf32>, vector<32x5xf32>, vector<14x5xf32> -> vector<14x5xf32>
    %44 = vector.broadcast %12 : vector<1x5xf32> to vector<14x5xf32>
    %45 = arith.addf %43, %44 : vector<14x5xf32>
    %cst_47 = arith.constant dense<0.000000e+00> : vector<14x10xf32>
    %46 = tpu.matmul %45, %13, %cst_47 {dimension_numbers = #tpu.dot_dimension_numbers<[1], [0], [0], [1], [0, 0, 1, 1], [], []>} : vector<14x5xf32>, vector<5x10xf32>, vector<14x10xf32> -> vector<14x10xf32>
    %47 = vector.broadcast %14 : vector<1x10xf32> to vector<14x10xf32>
    %48 = arith.addf %46, %47 : vector<14x10xf32>
    %49 = vector.extract_strided_slice %48 {offsets = [0, 0], sizes = [14, 5], strides = [1, 1]} : vector<14x10xf32> to vector<14x5xf32>
    %50 = arith.negf %49 : vector<14x5xf32>
    %51 = math.exp %50 : vector<14x5xf32>
    %cst_48 = arith.constant 1.000000e+00 : f32
    %52 = vector.broadcast %cst_48 : f32 to vector<14x5xf32>
    %53 = arith.addf %52, %51 : vector<14x5xf32>
    %54 = arith.divf %52, %53 : vector<14x5xf32>
    %55 = vector.extract_strided_slice %48 {offsets = [0, 5], sizes = [14, 5], strides = [1, 1]} : vector<14x10xf32> to vector<14x5xf32>
    %56 = arith.mulf %54, %55 : vector<14x5xf32>
    %57 = arith.addf %56, %33 : vector<14x5xf32>
    %cst_49 = arith.constant 0.999994993 : f32
    %58 = vector.broadcast %cst_49 : f32 to vector<14x5xf32>
    %59 = arith.mulf %57, %58 : vector<14x5xf32>
    %cst_50 = arith.constant dense<0xFF800000> : vector<5xf32>
    %60 = vector.multi_reduction <maximumf>, %59, %cst_50 [0] : vector<14x5xf32> to vector<5xf32>
    %61 = vector.shape_cast %60 : vector<5xf32> to vector<1x5xf32>
    %62 = vector.broadcast %61 : vector<1x5xf32> to vector<14x5xf32>
    %63 = arith.subf %59, %62 : vector<14x5xf32>
    %64 = math.exp %63 : vector<14x5xf32>
    %cst_51 = arith.constant dense<0.000000e+00> : vector<2x5xf32>
    %65 = tpu.matmul %22, %64, %cst_51 {dimension_numbers = #tpu.dot_dimension_numbers<[1], [0], [0], [1], [0, 0, 1, 1], [], []>} : vector<2x14xf32>, vector<14x5xf32>, vector<2x5xf32> -> vector<2x5xf32>
    %cst_52 = arith.constant dense<0.000000e+00> : vector<14x5xf32>
    %66 = tpu.matmul %21, %65, %cst_52 {dimension_numbers = #tpu.dot_dimension_numbers<[1], [0], [0], [1], [0, 0, 1, 1], [], []>} : vector<14x2xf32>, vector<2x5xf32>, vector<14x5xf32> -> vector<14x5xf32>
    %67 = arith.divf %64, %66 : vector<14x5xf32>
    %cst_53 = arith.constant dense<0.000000e+00> : vector<14x320xf32>
    %68 = tpu.matmul %29, %15, %cst_53 {dimension_numbers = #tpu.dot_dimension_numbers<[1], [0], [0], [1], [0, 0, 1, 1], [], []>} : vector<14x40xf32>, vector<40x320xf32>, vector<14x320xf32> -> vector<14x320xf32>
    %69 = vector.broadcast %16 : vector<1x320xf32> to vector<14x320xf32>
    %70 = arith.addf %68, %69 : vector<14x320xf32>
    %71 = vector.extract_strided_slice %70 {offsets = [0, 0], sizes = [14, 160], strides = [1, 1]} : vector<14x320xf32> to vector<14x160xf32>
    %72 = vector.extract_strided_slice %70 {offsets = [0, 160], sizes = [14, 160], strides = [1, 1]} : vector<14x320xf32> to vector<14x160xf32>
    %cst_54 = arith.constant 0.000000e+00 : f32
    %73 = vector.broadcast %cst_54 : f32 to vector<14x160xf32>
    %74 = arith.cmpf ogt, %72, %73 : vector<14x160xf32>
    %cst_55 = arith.constant 0.000000e+00 : f32
    %75 = vector.broadcast %cst_55 : f32 to vector<14x160xf32>
    %76 = arith.minimumf %72, %75 : vector<14x160xf32>
    %77 = math.exp %76 : vector<14x160xf32>
    %cst_56 = arith.constant 1.000000e+00 : f32
    %78 = vector.broadcast %cst_56 : f32 to vector<14x160xf32>
    %79 = arith.subf %77, %78 : vector<14x160xf32>
    %80 = arith.select %74, %72, %79 : vector<14x160xi1>, vector<14x160xf32>
    %cst_57 = arith.constant dense<0.000000e+00> : vector<14x160xf32>
    %81 = tpu.matmul %80, %17, %cst_57 {dimension_numbers = #tpu.dot_dimension_numbers<[1], [0], [0], [1], [0, 0, 1, 1], [], []>} : vector<14x160xf32>, vector<160x160xf32>, vector<14x160xf32> -> vector<14x160xf32>
    %82 = vector.broadcast %18 : vector<1x160xf32> to vector<14x160xf32>
    %83 = arith.addf %81, %82 : vector<14x160xf32>
    %cst_58 = arith.constant dense<0.000000e+00> : vector<14x320xf32>
    %84 = tpu.matmul %83, %19, %cst_58 {dimension_numbers = #tpu.dot_dimension_numbers<[1], [0], [0], [1], [0, 0, 1, 1], [], []>} : vector<14x160xf32>, vector<160x320xf32>, vector<14x320xf32> -> vector<14x320xf32>
    %85 = vector.broadcast %20 : vector<1x320xf32> to vector<14x320xf32>
    %86 = arith.addf %84, %85 : vector<14x320xf32>
    %87 = vector.extract_strided_slice %86 {offsets = [0, 0], sizes = [14, 160], strides = [1, 1]} : vector<14x320xf32> to vector<14x160xf32>
    %88 = arith.negf %87 : vector<14x160xf32>
    %89 = math.exp %88 : vector<14x160xf32>
    %cst_59 = arith.constant 1.000000e+00 : f32
    %90 = vector.broadcast %cst_59 : f32 to vector<14x160xf32>
    %91 = arith.addf %90, %89 : vector<14x160xf32>
    %92 = arith.divf %90, %91 : vector<14x160xf32>
    %93 = vector.extract_strided_slice %86 {offsets = [0, 160], sizes = [14, 160], strides = [1, 1]} : vector<14x320xf32> to vector<14x160xf32>
    %94 = arith.mulf %92, %93 : vector<14x160xf32>
    %95 = arith.addf %94, %71 : vector<14x160xf32>
    %cst_60 = arith.constant 0.999994993 : f32
    %96 = vector.broadcast %cst_60 : f32 to vector<14x160xf32>
    %97 = arith.mulf %95, %96 : vector<14x160xf32>
    %98 = vector.extract_strided_slice %67 {offsets = [0, 0], sizes = [14, 1], strides = [1, 1]} : vector<14x5xf32> to vector<14x1xf32>
    %99 = vector.extract_strided_slice %97 {offsets = [0, 0], sizes = [14, 32], strides = [1, 1]} : vector<14x160xf32> to vector<14x32xf32>
    %100 = vector.broadcast %98 : vector<14x1xf32> to vector<14x32xf32>
    %101 = arith.mulf %100, %99 : vector<14x32xf32>
    %102 = vector.extract_strided_slice %67 {offsets = [0, 1], sizes = [14, 1], strides = [1, 1]} : vector<14x5xf32> to vector<14x1xf32>
    %103 = vector.extract_strided_slice %97 {offsets = [0, 32], sizes = [14, 32], strides = [1, 1]} : vector<14x160xf32> to vector<14x32xf32>
    %104 = vector.broadcast %102 : vector<14x1xf32> to vector<14x32xf32>
    %105 = arith.mulf %104, %103 : vector<14x32xf32>
    %106 = arith.addf %101, %105 : vector<14x32xf32>
    %107 = vector.extract_strided_slice %67 {offsets = [0, 2], sizes = [14, 1], strides = [1, 1]} : vector<14x5xf32> to vector<14x1xf32>
    %108 = vector.extract_strided_slice %97 {offsets = [0, 64], sizes = [14, 32], strides = [1, 1]} : vector<14x160xf32> to vector<14x32xf32>
    %109 = vector.broadcast %107 : vector<14x1xf32> to vector<14x32xf32>
    %110 = arith.mulf %109, %108 : vector<14x32xf32>
    %111 = arith.addf %106, %110 : vector<14x32xf32>
    %112 = vector.extract_strided_slice %67 {offsets = [0, 3], sizes = [14, 1], strides = [1, 1]} : vector<14x5xf32> to vector<14x1xf32>
    %113 = vector.extract_strided_slice %97 {offsets = [0, 96], sizes = [14, 32], strides = [1, 1]} : vector<14x160xf32> to vector<14x32xf32>
    %114 = vector.broadcast %112 : vector<14x1xf32> to vector<14x32xf32>
    %115 = arith.mulf %114, %113 : vector<14x32xf32>
    %116 = arith.addf %111, %115 : vector<14x32xf32>
    %117 = vector.extract_strided_slice %67 {offsets = [0, 4], sizes = [14, 1], strides = [1, 1]} : vector<14x5xf32> to vector<14x1xf32>
    %118 = vector.extract_strided_slice %97 {offsets = [0, 128], sizes = [14, 32], strides = [1, 1]} : vector<14x160xf32> to vector<14x32xf32>
    %119 = vector.broadcast %117 : vector<14x1xf32> to vector<14x32xf32>
    %120 = arith.mulf %119, %118 : vector<14x32xf32>
    %121 = arith.addf %116, %120 : vector<14x32xf32>
    %c0_61 = arith.constant 0 : index
    %c0_62 = arith.constant 0 : index
    %122 = vector.load %arg3[%c0_61, %c0_62] : memref<2x16xf32, #tpu.memory_space<vmem>>, vector<2x16xf32>
    %cst_63 = arith.constant dense<0.000000e+00> : vector<2x6xf32>
    %123 = tpu.matmul %122, %0, %cst_63 {dimension_numbers = #tpu.dot_dimension_numbers<[1], [0], [0], [1], [0, 0, 1, 1], [], []>} : vector<2x16xf32>, vector<16x6xf32>, vector<2x6xf32> -> vector<2x6xf32>
    %124 = vector.extract_strided_slice %123 {offsets = [0, 3], sizes = [2, 3], strides = [1, 1]} : vector<2x6xf32> to vector<2x3xf32>
    %c0_64 = arith.constant 0 : index
    %c0_65 = arith.constant 0 : index
    %125 = vector.load %arg5[%c0_64, %c0_65] : memref<2x2xf32, #tpu.memory_space<vmem>>, vector<2x2xf32>
    %cst_66 = arith.constant dense<0.000000e+00> : vector<2x2xf32>
    %126 = tpu.matmul %125, %1, %cst_66 {dimension_numbers = #tpu.dot_dimension_numbers<[1], [0], [0], [1], [0, 0, 1, 1], [], []>} : vector<2x2xf32>, vector<2x2xf32>, vector<2x2xf32> -> vector<2x2xf32>
    %c0_67 = arith.constant 0 : index
    %c0_68 = arith.constant 0 : index
    %127 = vector.load %arg9[%c0_67, %c0_68] : memref<5x40xf32, #tpu.memory_space<vmem>>, vector<5x40xf32>
    %c0_69 = arith.constant 0 : index
    %c0_70 = arith.constant 0 : index
    %128 = vector.load %arg10[%c0_69, %c0_70] : memref<1x40xf32, #tpu.memory_space<vmem>>, vector<1x40xf32>
    %c0_71 = arith.constant 0 : index
    %c0_72 = arith.constant 0 : index
    %129 = vector.load %arg25[%c0_71, %c0_72] : memref<40x37xf32, #tpu.memory_space<vmem>>, vector<40x37xf32>
    %c0_73 = arith.constant 0 : index
    %c0_74 = arith.constant 0 : index
    %130 = vector.load %arg26[%c0_73, %c0_74] : memref<1x37xf32, #tpu.memory_space<vmem>>, vector<1x37xf32>
    %c0_75 = arith.constant 0 : index
    %c0_76 = arith.constant 0 : index
    %131 = vector.load %arg27[%c0_75, %c0_76] : memref<32x5xf32, #tpu.memory_space<vmem>>, vector<32x5xf32>
    %c0_77 = arith.constant 0 : index
    %c0_78 = arith.constant 0 : index
    %132 = vector.load %arg28[%c0_77, %c0_78] : memref<1x5xf32, #tpu.memory_space<vmem>>, vector<1x5xf32>
    %c0_79 = arith.constant 0 : index
    %c0_80 = arith.constant 0 : index
    %133 = vector.load %arg29[%c0_79, %c0_80] : memref<5x10xf32, #tpu.memory_space<vmem>>, vector<5x10xf32>
    %c0_81 = arith.constant 0 : index
    %c0_82 = arith.constant 0 : index
    %134 = vector.load %arg30[%c0_81, %c0_82] : memref<1x10xf32, #tpu.memory_space<vmem>>, vector<1x10xf32>
    %c0_83 = arith.constant 0 : index
    %c0_84 = arith.constant 0 : index
    %135 = vector.load %arg31[%c0_83, %c0_84] : memref<40x320xf32, #tpu.memory_space<vmem>>, vector<40x320xf32>
    %c0_85 = arith.constant 0 : index
    %c0_86 = arith.constant 0 : index
    %136 = vector.load %arg32[%c0_85, %c0_86] : memref<1x320xf32, #tpu.memory_space<vmem>>, vector<1x320xf32>
    %c0_87 = arith.constant 0 : index
    %c0_88 = arith.constant 0 : index
    %137 = vector.load %arg33[%c0_87, %c0_88] : memref<160x160xf32, #tpu.memory_space<vmem>>, vector<160x160xf32>
    %c0_89 = arith.constant 0 : index
    %c0_90 = arith.constant 0 : index
    %138 = vector.load %arg34[%c0_89, %c0_90] : memref<1x160xf32, #tpu.memory_space<vmem>>, vector<1x160xf32>
    %c0_91 = arith.constant 0 : index
    %c0_92 = arith.constant 0 : index
    %139 = vector.load %arg35[%c0_91, %c0_92] : memref<160x320xf32, #tpu.memory_space<vmem>>, vector<160x320xf32>
    %c0_93 = arith.constant 0 : index
    %c0_94 = arith.constant 0 : index
    %140 = vector.load %arg36[%c0_93, %c0_94] : memref<1x320xf32, #tpu.memory_space<vmem>>, vector<1x320xf32>
    %c0_95 = arith.constant 0 : index
    %c0_96 = arith.constant 0 : index
    %141 = vector.load %arg37[%c0_95, %c0_96] : memref<2x2xf32, #tpu.memory_space<vmem>>, vector<2x2xf32>
    %c0_97 = arith.constant 0 : index
    %c0_98 = arith.constant 0 : index
    %142 = vector.load %arg38[%c0_97, %c0_98] : memref<2x2xf32, #tpu.memory_space<vmem>>, vector<2x2xf32>
    %143 = vector.extract_strided_slice %127 {offsets = [0, 0], sizes = [2, 40], strides = [1, 1]} : vector<5x40xf32> to vector<2x40xf32>
    %cst_99 = arith.constant dense<0.000000e+00> : vector<2x40xf32>
    %144 = tpu.matmul %126, %143, %cst_99 {dimension_numbers = #tpu.dot_dimension_numbers<[1], [0], [0], [1], [0, 0, 1, 1], [], []>} : vector<2x2xf32>, vector<2x40xf32>, vector<2x40xf32> -> vector<2x40xf32>
    %145 = vector.extract_strided_slice %127 {offsets = [2, 0], sizes = [3, 40], strides = [1, 1]} : vector<5x40xf32> to vector<3x40xf32>
    %cst_100 = arith.constant dense<0.000000e+00> : vector<2x40xf32>
    %146 = tpu.matmul %124, %145, %cst_100 {dimension_numbers = #tpu.dot_dimension_numbers<[1], [0], [0], [1], [0, 0, 1, 1], [], []>} : vector<2x3xf32>, vector<3x40xf32>, vector<2x40xf32> -> vector<2x40xf32>
    %147 = arith.addf %144, %146 : vector<2x40xf32>
    %148 = vector.broadcast %128 : vector<1x40xf32> to vector<2x40xf32>
    %149 = arith.addf %147, %148 : vector<2x40xf32>
    %cst_101 = arith.constant dense<0.000000e+00> : vector<2x37xf32>
    %150 = tpu.matmul %149, %129, %cst_101 {dimension_numbers = #tpu.dot_dimension_numbers<[1], [0], [0], [1], [0, 0, 1, 1], [], []>} : vector<2x40xf32>, vector<40x37xf32>, vector<2x37xf32> -> vector<2x37xf32>
    %151 = vector.broadcast %130 : vector<1x37xf32> to vector<2x37xf32>
    %152 = arith.addf %150, %151 : vector<2x37xf32>
    %153 = vector.extract_strided_slice %152 {offsets = [0, 0], sizes = [2, 5], strides = [1, 1]} : vector<2x37xf32> to vector<2x5xf32>
    %154 = vector.extract_strided_slice %152 {offsets = [0, 5], sizes = [2, 32], strides = [1, 1]} : vector<2x37xf32> to vector<2x32xf32>
    %cst_102 = arith.constant 0.000000e+00 : f32
    %155 = vector.broadcast %cst_102 : f32 to vector<2x32xf32>
    %156 = arith.cmpf ogt, %154, %155 : vector<2x32xf32>
    %cst_103 = arith.constant 0.000000e+00 : f32
    %157 = vector.broadcast %cst_103 : f32 to vector<2x32xf32>
    %158 = arith.minimumf %154, %157 : vector<2x32xf32>
    %159 = math.exp %158 : vector<2x32xf32>
    %cst_104 = arith.constant 1.000000e+00 : f32
    %160 = vector.broadcast %cst_104 : f32 to vector<2x32xf32>
    %161 = arith.subf %159, %160 : vector<2x32xf32>
    %162 = arith.select %156, %154, %161 : vector<2x32xi1>, vector<2x32xf32>
    %cst_105 = arith.constant dense<0.000000e+00> : vector<2x5xf32>
    %163 = tpu.matmul %162, %131, %cst_105 {dimension_numbers = #tpu.dot_dimension_numbers<[1], [0], [0], [1], [0, 0, 1, 1], [], []>} : vector<2x32xf32>, vector<32x5xf32>, vector<2x5xf32> -> vector<2x5xf32>
    %164 = vector.broadcast %132 : vector<1x5xf32> to vector<2x5xf32>
    %165 = arith.addf %163, %164 : vector<2x5xf32>
    %cst_106 = arith.constant dense<0.000000e+00> : vector<2x10xf32>
    %166 = tpu.matmul %165, %133, %cst_106 {dimension_numbers = #tpu.dot_dimension_numbers<[1], [0], [0], [1], [0, 0, 1, 1], [], []>} : vector<2x5xf32>, vector<5x10xf32>, vector<2x10xf32> -> vector<2x10xf32>
    %167 = vector.broadcast %134 : vector<1x10xf32> to vector<2x10xf32>
    %168 = arith.addf %166, %167 : vector<2x10xf32>
    %169 = vector.extract_strided_slice %168 {offsets = [0, 0], sizes = [2, 5], strides = [1, 1]} : vector<2x10xf32> to vector<2x5xf32>
    %170 = arith.negf %169 : vector<2x5xf32>
    %171 = math.exp %170 : vector<2x5xf32>
    %cst_107 = arith.constant 1.000000e+00 : f32
    %172 = vector.broadcast %cst_107 : f32 to vector<2x5xf32>
    %173 = arith.addf %172, %171 : vector<2x5xf32>
    %174 = arith.divf %172, %173 : vector<2x5xf32>
    %175 = vector.extract_strided_slice %168 {offsets = [0, 5], sizes = [2, 5], strides = [1, 1]} : vector<2x10xf32> to vector<2x5xf32>
    %176 = arith.mulf %174, %175 : vector<2x5xf32>
    %177 = arith.addf %176, %153 : vector<2x5xf32>
    %cst_108 = arith.constant 0.999994993 : f32
    %178 = vector.broadcast %cst_108 : f32 to vector<2x5xf32>
    %179 = arith.mulf %177, %178 : vector<2x5xf32>
    %cst_109 = arith.constant dense<0xFF800000> : vector<5xf32>
    %180 = vector.multi_reduction <maximumf>, %179, %cst_109 [0] : vector<2x5xf32> to vector<5xf32>
    %181 = vector.shape_cast %180 : vector<5xf32> to vector<1x5xf32>
    %182 = vector.broadcast %181 : vector<1x5xf32> to vector<2x5xf32>
    %183 = arith.subf %179, %182 : vector<2x5xf32>
    %184 = math.exp %183 : vector<2x5xf32>
    %cst_110 = arith.constant dense<0.000000e+00> : vector<2x5xf32>
    %185 = tpu.matmul %142, %184, %cst_110 {dimension_numbers = #tpu.dot_dimension_numbers<[1], [0], [0], [1], [0, 0, 1, 1], [], []>} : vector<2x2xf32>, vector<2x5xf32>, vector<2x5xf32> -> vector<2x5xf32>
    %cst_111 = arith.constant dense<0.000000e+00> : vector<2x5xf32>
    %186 = tpu.matmul %141, %185, %cst_111 {dimension_numbers = #tpu.dot_dimension_numbers<[1], [0], [0], [1], [0, 0, 1, 1], [], []>} : vector<2x2xf32>, vector<2x5xf32>, vector<2x5xf32> -> vector<2x5xf32>
    %187 = arith.divf %184, %186 : vector<2x5xf32>
    %cst_112 = arith.constant dense<0.000000e+00> : vector<2x320xf32>
    %188 = tpu.matmul %149, %135, %cst_112 {dimension_numbers = #tpu.dot_dimension_numbers<[1], [0], [0], [1], [0, 0, 1, 1], [], []>} : vector<2x40xf32>, vector<40x320xf32>, vector<2x320xf32> -> vector<2x320xf32>
    %189 = vector.broadcast %136 : vector<1x320xf32> to vector<2x320xf32>
    %190 = arith.addf %188, %189 : vector<2x320xf32>
    %191 = vector.extract_strided_slice %190 {offsets = [0, 0], sizes = [2, 160], strides = [1, 1]} : vector<2x320xf32> to vector<2x160xf32>
    %192 = vector.extract_strided_slice %190 {offsets = [0, 160], sizes = [2, 160], strides = [1, 1]} : vector<2x320xf32> to vector<2x160xf32>
    %cst_113 = arith.constant 0.000000e+00 : f32
    %193 = vector.broadcast %cst_113 : f32 to vector<2x160xf32>
    %194 = arith.cmpf ogt, %192, %193 : vector<2x160xf32>
    %cst_114 = arith.constant 0.000000e+00 : f32
    %195 = vector.broadcast %cst_114 : f32 to vector<2x160xf32>
    %196 = arith.minimumf %192, %195 : vector<2x160xf32>
    %197 = math.exp %196 : vector<2x160xf32>
    %cst_115 = arith.constant 1.000000e+00 : f32
    %198 = vector.broadcast %cst_115 : f32 to vector<2x160xf32>
    %199 = arith.subf %197, %198 : vector<2x160xf32>
    %200 = arith.select %194, %192, %199 : vector<2x160xi1>, vector<2x160xf32>
    %cst_116 = arith.constant dense<0.000000e+00> : vector<2x160xf32>
    %201 = tpu.matmul %200, %137, %cst_116 {dimension_numbers = #tpu.dot_dimension_numbers<[1], [0], [0], [1], [0, 0, 1, 1], [], []>} : vector<2x160xf32>, vector<160x160xf32>, vector<2x160xf32> -> vector<2x160xf32>
    %202 = vector.broadcast %138 : vector<1x160xf32> to vector<2x160xf32>
    %203 = arith.addf %201, %202 : vector<2x160xf32>
    %cst_117 = arith.constant dense<0.000000e+00> : vector<2x320xf32>
    %204 = tpu.matmul %203, %139, %cst_117 {dimension_numbers = #tpu.dot_dimension_numbers<[1], [0], [0], [1], [0, 0, 1, 1], [], []>} : vector<2x160xf32>, vector<160x320xf32>, vector<2x320xf32> -> vector<2x320xf32>
    %205 = vector.broadcast %140 : vector<1x320xf32> to vector<2x320xf32>
    %206 = arith.addf %204, %205 : vector<2x320xf32>
    %207 = vector.extract_strided_slice %206 {offsets = [0, 0], sizes = [2, 160], strides = [1, 1]} : vector<2x320xf32> to vector<2x160xf32>
    %208 = arith.negf %207 : vector<2x160xf32>
    %209 = math.exp %208 : vector<2x160xf32>
    %cst_118 = arith.constant 1.000000e+00 : f32
    %210 = vector.broadcast %cst_118 : f32 to vector<2x160xf32>
    %211 = arith.addf %210, %209 : vector<2x160xf32>
    %212 = arith.divf %210, %211 : vector<2x160xf32>
    %213 = vector.extract_strided_slice %206 {offsets = [0, 160], sizes = [2, 160], strides = [1, 1]} : vector<2x320xf32> to vector<2x160xf32>
    %214 = arith.mulf %212, %213 : vector<2x160xf32>
    %215 = arith.addf %214, %191 : vector<2x160xf32>
    %cst_119 = arith.constant 0.999994993 : f32
    %216 = vector.broadcast %cst_119 : f32 to vector<2x160xf32>
    %217 = arith.mulf %215, %216 : vector<2x160xf32>
    %218 = vector.extract_strided_slice %187 {offsets = [0, 0], sizes = [2, 1], strides = [1, 1]} : vector<2x5xf32> to vector<2x1xf32>
    %219 = vector.extract_strided_slice %217 {offsets = [0, 0], sizes = [2, 32], strides = [1, 1]} : vector<2x160xf32> to vector<2x32xf32>
    %220 = vector.broadcast %218 : vector<2x1xf32> to vector<2x32xf32>
    %221 = arith.mulf %220, %219 : vector<2x32xf32>
    %222 = vector.extract_strided_slice %187 {offsets = [0, 1], sizes = [2, 1], strides = [1, 1]} : vector<2x5xf32> to vector<2x1xf32>
    %223 = vector.extract_strided_slice %217 {offsets = [0, 32], sizes = [2, 32], strides = [1, 1]} : vector<2x160xf32> to vector<2x32xf32>
    %224 = vector.broadcast %222 : vector<2x1xf32> to vector<2x32xf32>
    %225 = arith.mulf %224, %223 : vector<2x32xf32>
    %226 = arith.addf %221, %225 : vector<2x32xf32>
    %227 = vector.extract_strided_slice %187 {offsets = [0, 2], sizes = [2, 1], strides = [1, 1]} : vector<2x5xf32> to vector<2x1xf32>
    %228 = vector.extract_strided_slice %217 {offsets = [0, 64], sizes = [2, 32], strides = [1, 1]} : vector<2x160xf32> to vector<2x32xf32>
    %229 = vector.broadcast %227 : vector<2x1xf32> to vector<2x32xf32>
    %230 = arith.mulf %229, %228 : vector<2x32xf32>
    %231 = arith.addf %226, %230 : vector<2x32xf32>
    %232 = vector.extract_strided_slice %187 {offsets = [0, 3], sizes = [2, 1], strides = [1, 1]} : vector<2x5xf32> to vector<2x1xf32>
    %233 = vector.extract_strided_slice %217 {offsets = [0, 96], sizes = [2, 32], strides = [1, 1]} : vector<2x160xf32> to vector<2x32xf32>
    %234 = vector.broadcast %232 : vector<2x1xf32> to vector<2x32xf32>
    %235 = arith.mulf %234, %233 : vector<2x32xf32>
    %236 = arith.addf %231, %235 : vector<2x32xf32>
    %237 = vector.extract_strided_slice %187 {offsets = [0, 4], sizes = [2, 1], strides = [1, 1]} : vector<2x5xf32> to vector<2x1xf32>
    %238 = vector.extract_strided_slice %217 {offsets = [0, 128], sizes = [2, 32], strides = [1, 1]} : vector<2x160xf32> to vector<2x32xf32>
    %239 = vector.broadcast %237 : vector<2x1xf32> to vector<2x32xf32>
    %240 = arith.mulf %239, %238 : vector<2x32xf32>
    %241 = arith.addf %236, %240 : vector<2x32xf32>
    %c0_120 = arith.constant 0 : index
    %c0_121 = arith.constant 0 : index
    %242 = vector.load %arg6[%c0_120, %c0_121] : memref<16x32xf32, #tpu.memory_space<vmem>>, vector<14x32xf32>
    %243 = arith.addf %121, %242 : vector<14x32xf32>
    %c0_122 = arith.constant 0 : index
    %c0_123 = arith.constant 0 : index
    %244 = vector.load %arg39[%c0_122, %c0_123] : memref<16x32xf32, #tpu.memory_space<vmem>>, vector<14x32xf32>
    tpu.vector_store %arg39[%c0_122, %c0_123], %243 {strides = array<i32>} : memref<16x32xf32, #tpu.memory_space<vmem>>, vector<14x32xf32>,
    %c14 = arith.constant 14 : index
    %c0_124 = arith.constant 0 : index
    %245 = vector.load %arg6[%c14, %c0_124] : memref<16x32xf32, #tpu.memory_space<vmem>>, vector<2x32xf32>
    %246 = arith.addf %241, %245 : vector<2x32xf32>
    %c14_125 = arith.constant 14 : index
    %c0_126 = arith.constant 0 : index
    %247 = vector.load %arg39[%c14_125, %c0_126] : memref<16x32xf32, #tpu.memory_space<vmem>>, vector<2x32xf32>
    tpu.vector_store %arg39[%c14_125, %c0_126], %246 {strides = array<i32>} : memref<16x32xf32, #tpu.memory_space<vmem>>, vector<2x32xf32>,
    return
  }
}

module attributes {stable_mosaic.version = 11 : i64} {
  func.func @_lstm_kernel(%arg0: memref<16x32xf32, #tpu.memory_space<vmem>>, %arg1: memref<32x128xf32, #tpu.memory_space<vmem>>, %arg2: memref<32x128xf32, #tpu.memory_space<vmem>>, %arg3: memref<1x128xf32, #tpu.memory_space<vmem>>, %arg4: memref<32x128xf32, #tpu.memory_space<vmem>>, %arg5: memref<32x128xf32, #tpu.memory_space<vmem>>, %arg6: memref<1x128xf32, #tpu.memory_space<vmem>>, %arg7: memref<32x64xf32, #tpu.memory_space<vmem>>, %arg8: memref<1x64xf32, #tpu.memory_space<vmem>>, %arg9: memref<16x32xf32, #tpu.memory_space<vmem>>, %arg10: memref<16x32xf32, #tpu.memory_space<vmem>>) attributes {dimension_semantics = [], scalar_prefetch = 0 : i64, scratch_operands = 1 : i64, tpu.core_type = #tpu.core_type<tc>} {
    %c0 = arith.constant 0 : index
    %c0_0 = arith.constant 0 : index
    %0 = vector.load %arg0[%c0, %c0_0] : memref<16x32xf32, #tpu.memory_space<vmem>>, vector<16x32xf32>
    %1 = vector.extract_strided_slice %0 {offsets = [0, 0], sizes = [14, 32], strides = [1, 1]} : vector<16x32xf32> to vector<14x32xf32>
    %c0_1 = arith.constant 0 : index
    %c0_2 = arith.constant 0 : index
    %2 = vector.load %arg1[%c0_1, %c0_2] : memref<32x128xf32, #tpu.memory_space<vmem>>, vector<32x128xf32>
    %cst = arith.constant dense<0.000000e+00> : vector<14x128xf32>
    %3 = tpu.matmul %1, %2, %cst {dimension_numbers = #tpu.dot_dimension_numbers<[1], [0], [0], [1], [0, 0, 1, 1], [], []>} : vector<14x32xf32>, vector<32x128xf32>, vector<14x128xf32> -> vector<14x128xf32>
    %c0_3 = arith.constant 0 : index
    %c0_4 = arith.constant 0 : index
    %4 = vector.load %arg3[%c0_3, %c0_4] : memref<1x128xf32, #tpu.memory_space<vmem>>, vector<1x128xf32>
    %5 = vector.broadcast %4 : vector<1x128xf32> to vector<14x128xf32>
    %6 = arith.addf %3, %5 : vector<14x128xf32>
    %7 = vector.extract_strided_slice %0 {offsets = [14, 0], sizes = [2, 32], strides = [1, 1]} : vector<16x32xf32> to vector<2x32xf32>
    %c0_5 = arith.constant 0 : index
    %c0_6 = arith.constant 0 : index
    %8 = vector.load %arg4[%c0_5, %c0_6] : memref<32x128xf32, #tpu.memory_space<vmem>>, vector<32x128xf32>
    %cst_7 = arith.constant dense<0.000000e+00> : vector<2x128xf32>
    %9 = tpu.matmul %7, %8, %cst_7 {dimension_numbers = #tpu.dot_dimension_numbers<[1], [0], [0], [1], [0, 0, 1, 1], [], []>} : vector<2x32xf32>, vector<32x128xf32>, vector<2x128xf32> -> vector<2x128xf32>
    %c0_8 = arith.constant 0 : index
    %c0_9 = arith.constant 0 : index
    %10 = vector.load %arg6[%c0_8, %c0_9] : memref<1x128xf32, #tpu.memory_space<vmem>>, vector<1x128xf32>
    %11 = vector.broadcast %10 : vector<1x128xf32> to vector<2x128xf32>
    %12 = arith.addf %9, %11 : vector<2x128xf32>
    %cst_10 = arith.constant 0.000000e+00 : f32
    %13 = vector.broadcast %cst_10 : f32 to vector<2x32xf32>
    %cst_11 = arith.constant 0.000000e+00 : f32
    %14 = vector.broadcast %cst_11 : f32 to vector<2x32xf32>
    %c0_12 = arith.constant 0 : index
    %c0_13 = arith.constant 0 : index
    %15 = vector.load %arg2[%c0_12, %c0_13] : memref<32x128xf32, #tpu.memory_space<vmem>>, vector<32x128xf32>
    %16 = vector.extract_strided_slice %6 {offsets = [0, 0], sizes = [2, 128], strides = [1, 1]} : vector<14x128xf32> to vector<2x128xf32>
    %cst_14 = arith.constant dense<0.000000e+00> : vector<2x128xf32>
    %17 = tpu.matmul %13, %15, %cst_14 {dimension_numbers = #tpu.dot_dimension_numbers<[1], [0], [0], [1], [0, 0, 1, 1], [], []>} : vector<2x32xf32>, vector<32x128xf32>, vector<2x128xf32> -> vector<2x128xf32>
    %18 = arith.addf %16, %17 : vector<2x128xf32>
    %19 = vector.extract_strided_slice %18 {offsets = [0, 0], sizes = [2, 32], strides = [1, 1]} : vector<2x128xf32> to vector<2x32xf32>
    %20 = arith.negf %19 : vector<2x32xf32>
    %21 = math.exp %20 : vector<2x32xf32>
    %cst_15 = arith.constant 1.000000e+00 : f32
    %22 = vector.broadcast %cst_15 : f32 to vector<2x32xf32>
    %23 = arith.addf %22, %21 : vector<2x32xf32>
    %24 = arith.divf %22, %23 : vector<2x32xf32>
    %25 = vector.extract_strided_slice %18 {offsets = [0, 32], sizes = [2, 32], strides = [1, 1]} : vector<2x128xf32> to vector<2x32xf32>
    %26 = arith.negf %25 : vector<2x32xf32>
    %27 = math.exp %26 : vector<2x32xf32>
    %cst_16 = arith.constant 1.000000e+00 : f32
    %28 = vector.broadcast %cst_16 : f32 to vector<2x32xf32>
    %29 = arith.addf %28, %27 : vector<2x32xf32>
    %30 = arith.divf %28, %29 : vector<2x32xf32>
    %31 = vector.extract_strided_slice %18 {offsets = [0, 64], sizes = [2, 32], strides = [1, 1]} : vector<2x128xf32> to vector<2x32xf32>
    %32 = math.tanh %31 : vector<2x32xf32>
    %33 = vector.extract_strided_slice %18 {offsets = [0, 96], sizes = [2, 32], strides = [1, 1]} : vector<2x128xf32> to vector<2x32xf32>
    %34 = arith.negf %33 : vector<2x32xf32>
    %35 = math.exp %34 : vector<2x32xf32>
    %cst_17 = arith.constant 1.000000e+00 : f32
    %36 = vector.broadcast %cst_17 : f32 to vector<2x32xf32>
    %37 = arith.addf %36, %35 : vector<2x32xf32>
    %38 = arith.divf %36, %37 : vector<2x32xf32>
    %39 = arith.mulf %30, %14 : vector<2x32xf32>
    %40 = arith.mulf %24, %32 : vector<2x32xf32>
    %41 = arith.addf %39, %40 : vector<2x32xf32>
    %42 = math.tanh %41 : vector<2x32xf32>
    %43 = arith.mulf %38, %42 : vector<2x32xf32>
    %c0_18 = arith.constant 0 : index
    %c0_19 = arith.constant 0 : index
    %44 = vector.load %arg10[%c0_18, %c0_19] : memref<16x32xf32, #tpu.memory_space<vmem>>, vector<2x32xf32>
    tpu.vector_store %arg10[%c0_18, %c0_19], %43 {strides = array<i32>} : memref<16x32xf32, #tpu.memory_space<vmem>>, vector<2x32xf32>,
    %45 = vector.extract_strided_slice %6 {offsets = [2, 0], sizes = [2, 128], strides = [1, 1]} : vector<14x128xf32> to vector<2x128xf32>
    %cst_20 = arith.constant dense<0.000000e+00> : vector<2x128xf32>
    %46 = tpu.matmul %43, %15, %cst_20 {dimension_numbers = #tpu.dot_dimension_numbers<[1], [0], [0], [1], [0, 0, 1, 1], [], []>} : vector<2x32xf32>, vector<32x128xf32>, vector<2x128xf32> -> vector<2x128xf32>
    %47 = arith.addf %45, %46 : vector<2x128xf32>
    %48 = vector.extract_strided_slice %47 {offsets = [0, 0], sizes = [2, 32], strides = [1, 1]} : vector<2x128xf32> to vector<2x32xf32>
    %49 = arith.negf %48 : vector<2x32xf32>
    %50 = math.exp %49 : vector<2x32xf32>
    %cst_21 = arith.constant 1.000000e+00 : f32
    %51 = vector.broadcast %cst_21 : f32 to vector<2x32xf32>
    %52 = arith.addf %51, %50 : vector<2x32xf32>
    %53 = arith.divf %51, %52 : vector<2x32xf32>
    %54 = vector.extract_strided_slice %47 {offsets = [0, 32], sizes = [2, 32], strides = [1, 1]} : vector<2x128xf32> to vector<2x32xf32>
    %55 = arith.negf %54 : vector<2x32xf32>
    %56 = math.exp %55 : vector<2x32xf32>
    %cst_22 = arith.constant 1.000000e+00 : f32
    %57 = vector.broadcast %cst_22 : f32 to vector<2x32xf32>
    %58 = arith.addf %57, %56 : vector<2x32xf32>
    %59 = arith.divf %57, %58 : vector<2x32xf32>
    %60 = vector.extract_strided_slice %47 {offsets = [0, 64], sizes = [2, 32], strides = [1, 1]} : vector<2x128xf32> to vector<2x32xf32>
    %61 = math.tanh %60 : vector<2x32xf32>
    %62 = vector.extract_strided_slice %47 {offsets = [0, 96], sizes = [2, 32], strides = [1, 1]} : vector<2x128xf32> to vector<2x32xf32>
    %63 = arith.negf %62 : vector<2x32xf32>
    %64 = math.exp %63 : vector<2x32xf32>
    %cst_23 = arith.constant 1.000000e+00 : f32
    %65 = vector.broadcast %cst_23 : f32 to vector<2x32xf32>
    %66 = arith.addf %65, %64 : vector<2x32xf32>
    %67 = arith.divf %65, %66 : vector<2x32xf32>
    %68 = arith.mulf %59, %41 : vector<2x32xf32>
    %69 = arith.mulf %53, %61 : vector<2x32xf32>
    %70 = arith.addf %68, %69 : vector<2x32xf32>
    %71 = math.tanh %70 : vector<2x32xf32>
    %72 = arith.mulf %67, %71 : vector<2x32xf32>
    %c2 = arith.constant 2 : index
    %c0_24 = arith.constant 0 : index
    %73 = vector.load %arg10[%c2, %c0_24] : memref<16x32xf32, #tpu.memory_space<vmem>>, vector<2x32xf32>
    tpu.vector_store %arg10[%c2, %c0_24], %72 {strides = array<i32>} : memref<16x32xf32, #tpu.memory_space<vmem>>, vector<2x32xf32>,
    %74 = vector.extract_strided_slice %6 {offsets = [4, 0], sizes = [2, 128], strides = [1, 1]} : vector<14x128xf32> to vector<2x128xf32>
    %cst_25 = arith.constant dense<0.000000e+00> : vector<2x128xf32>
    %75 = tpu.matmul %72, %15, %cst_25 {dimension_numbers = #tpu.dot_dimension_numbers<[1], [0], [0], [1], [0, 0, 1, 1], [], []>} : vector<2x32xf32>, vector<32x128xf32>, vector<2x128xf32> -> vector<2x128xf32>
    %76 = arith.addf %74, %75 : vector<2x128xf32>
    %77 = vector.extract_strided_slice %76 {offsets = [0, 0], sizes = [2, 32], strides = [1, 1]} : vector<2x128xf32> to vector<2x32xf32>
    %78 = arith.negf %77 : vector<2x32xf32>
    %79 = math.exp %78 : vector<2x32xf32>
    %cst_26 = arith.constant 1.000000e+00 : f32
    %80 = vector.broadcast %cst_26 : f32 to vector<2x32xf32>
    %81 = arith.addf %80, %79 : vector<2x32xf32>
    %82 = arith.divf %80, %81 : vector<2x32xf32>
    %83 = vector.extract_strided_slice %76 {offsets = [0, 32], sizes = [2, 32], strides = [1, 1]} : vector<2x128xf32> to vector<2x32xf32>
    %84 = arith.negf %83 : vector<2x32xf32>
    %85 = math.exp %84 : vector<2x32xf32>
    %cst_27 = arith.constant 1.000000e+00 : f32
    %86 = vector.broadcast %cst_27 : f32 to vector<2x32xf32>
    %87 = arith.addf %86, %85 : vector<2x32xf32>
    %88 = arith.divf %86, %87 : vector<2x32xf32>
    %89 = vector.extract_strided_slice %76 {offsets = [0, 64], sizes = [2, 32], strides = [1, 1]} : vector<2x128xf32> to vector<2x32xf32>
    %90 = math.tanh %89 : vector<2x32xf32>
    %91 = vector.extract_strided_slice %76 {offsets = [0, 96], sizes = [2, 32], strides = [1, 1]} : vector<2x128xf32> to vector<2x32xf32>
    %92 = arith.negf %91 : vector<2x32xf32>
    %93 = math.exp %92 : vector<2x32xf32>
    %cst_28 = arith.constant 1.000000e+00 : f32
    %94 = vector.broadcast %cst_28 : f32 to vector<2x32xf32>
    %95 = arith.addf %94, %93 : vector<2x32xf32>
    %96 = arith.divf %94, %95 : vector<2x32xf32>
    %97 = arith.mulf %88, %70 : vector<2x32xf32>
    %98 = arith.mulf %82, %90 : vector<2x32xf32>
    %99 = arith.addf %97, %98 : vector<2x32xf32>
    %100 = math.tanh %99 : vector<2x32xf32>
    %101 = arith.mulf %96, %100 : vector<2x32xf32>
    %c4 = arith.constant 4 : index
    %c0_29 = arith.constant 0 : index
    %102 = vector.load %arg10[%c4, %c0_29] : memref<16x32xf32, #tpu.memory_space<vmem>>, vector<2x32xf32>
    tpu.vector_store %arg10[%c4, %c0_29], %101 {strides = array<i32>} : memref<16x32xf32, #tpu.memory_space<vmem>>, vector<2x32xf32>,
    %103 = vector.extract_strided_slice %6 {offsets = [6, 0], sizes = [2, 128], strides = [1, 1]} : vector<14x128xf32> to vector<2x128xf32>
    %cst_30 = arith.constant dense<0.000000e+00> : vector<2x128xf32>
    %104 = tpu.matmul %101, %15, %cst_30 {dimension_numbers = #tpu.dot_dimension_numbers<[1], [0], [0], [1], [0, 0, 1, 1], [], []>} : vector<2x32xf32>, vector<32x128xf32>, vector<2x128xf32> -> vector<2x128xf32>
    %105 = arith.addf %103, %104 : vector<2x128xf32>
    %106 = vector.extract_strided_slice %105 {offsets = [0, 0], sizes = [2, 32], strides = [1, 1]} : vector<2x128xf32> to vector<2x32xf32>
    %107 = arith.negf %106 : vector<2x32xf32>
    %108 = math.exp %107 : vector<2x32xf32>
    %cst_31 = arith.constant 1.000000e+00 : f32
    %109 = vector.broadcast %cst_31 : f32 to vector<2x32xf32>
    %110 = arith.addf %109, %108 : vector<2x32xf32>
    %111 = arith.divf %109, %110 : vector<2x32xf32>
    %112 = vector.extract_strided_slice %105 {offsets = [0, 32], sizes = [2, 32], strides = [1, 1]} : vector<2x128xf32> to vector<2x32xf32>
    %113 = arith.negf %112 : vector<2x32xf32>
    %114 = math.exp %113 : vector<2x32xf32>
    %cst_32 = arith.constant 1.000000e+00 : f32
    %115 = vector.broadcast %cst_32 : f32 to vector<2x32xf32>
    %116 = arith.addf %115, %114 : vector<2x32xf32>
    %117 = arith.divf %115, %116 : vector<2x32xf32>
    %118 = vector.extract_strided_slice %105 {offsets = [0, 64], sizes = [2, 32], strides = [1, 1]} : vector<2x128xf32> to vector<2x32xf32>
    %119 = math.tanh %118 : vector<2x32xf32>
    %120 = vector.extract_strided_slice %105 {offsets = [0, 96], sizes = [2, 32], strides = [1, 1]} : vector<2x128xf32> to vector<2x32xf32>
    %121 = arith.negf %120 : vector<2x32xf32>
    %122 = math.exp %121 : vector<2x32xf32>
    %cst_33 = arith.constant 1.000000e+00 : f32
    %123 = vector.broadcast %cst_33 : f32 to vector<2x32xf32>
    %124 = arith.addf %123, %122 : vector<2x32xf32>
    %125 = arith.divf %123, %124 : vector<2x32xf32>
    %126 = arith.mulf %117, %99 : vector<2x32xf32>
    %127 = arith.mulf %111, %119 : vector<2x32xf32>
    %128 = arith.addf %126, %127 : vector<2x32xf32>
    %129 = math.tanh %128 : vector<2x32xf32>
    %130 = arith.mulf %125, %129 : vector<2x32xf32>
    %c6 = arith.constant 6 : index
    %c0_34 = arith.constant 0 : index
    %131 = vector.load %arg10[%c6, %c0_34] : memref<16x32xf32, #tpu.memory_space<vmem>>, vector<2x32xf32>
    tpu.vector_store %arg10[%c6, %c0_34], %130 {strides = array<i32>} : memref<16x32xf32, #tpu.memory_space<vmem>>, vector<2x32xf32>,
    %132 = vector.extract_strided_slice %6 {offsets = [8, 0], sizes = [2, 128], strides = [1, 1]} : vector<14x128xf32> to vector<2x128xf32>
    %cst_35 = arith.constant dense<0.000000e+00> : vector<2x128xf32>
    %133 = tpu.matmul %130, %15, %cst_35 {dimension_numbers = #tpu.dot_dimension_numbers<[1], [0], [0], [1], [0, 0, 1, 1], [], []>} : vector<2x32xf32>, vector<32x128xf32>, vector<2x128xf32> -> vector<2x128xf32>
    %134 = arith.addf %132, %133 : vector<2x128xf32>
    %135 = vector.extract_strided_slice %134 {offsets = [0, 0], sizes = [2, 32], strides = [1, 1]} : vector<2x128xf32> to vector<2x32xf32>
    %136 = arith.negf %135 : vector<2x32xf32>
    %137 = math.exp %136 : vector<2x32xf32>
    %cst_36 = arith.constant 1.000000e+00 : f32
    %138 = vector.broadcast %cst_36 : f32 to vector<2x32xf32>
    %139 = arith.addf %138, %137 : vector<2x32xf32>
    %140 = arith.divf %138, %139 : vector<2x32xf32>
    %141 = vector.extract_strided_slice %134 {offsets = [0, 32], sizes = [2, 32], strides = [1, 1]} : vector<2x128xf32> to vector<2x32xf32>
    %142 = arith.negf %141 : vector<2x32xf32>
    %143 = math.exp %142 : vector<2x32xf32>
    %cst_37 = arith.constant 1.000000e+00 : f32
    %144 = vector.broadcast %cst_37 : f32 to vector<2x32xf32>
    %145 = arith.addf %144, %143 : vector<2x32xf32>
    %146 = arith.divf %144, %145 : vector<2x32xf32>
    %147 = vector.extract_strided_slice %134 {offsets = [0, 64], sizes = [2, 32], strides = [1, 1]} : vector<2x128xf32> to vector<2x32xf32>
    %148 = math.tanh %147 : vector<2x32xf32>
    %149 = vector.extract_strided_slice %134 {offsets = [0, 96], sizes = [2, 32], strides = [1, 1]} : vector<2x128xf32> to vector<2x32xf32>
    %150 = arith.negf %149 : vector<2x32xf32>
    %151 = math.exp %150 : vector<2x32xf32>
    %cst_38 = arith.constant 1.000000e+00 : f32
    %152 = vector.broadcast %cst_38 : f32 to vector<2x32xf32>
    %153 = arith.addf %152, %151 : vector<2x32xf32>
    %154 = arith.divf %152, %153 : vector<2x32xf32>
    %155 = arith.mulf %146, %128 : vector<2x32xf32>
    %156 = arith.mulf %140, %148 : vector<2x32xf32>
    %157 = arith.addf %155, %156 : vector<2x32xf32>
    %158 = math.tanh %157 : vector<2x32xf32>
    %159 = arith.mulf %154, %158 : vector<2x32xf32>
    %c8 = arith.constant 8 : index
    %c0_39 = arith.constant 0 : index
    %160 = vector.load %arg10[%c8, %c0_39] : memref<16x32xf32, #tpu.memory_space<vmem>>, vector<2x32xf32>
    tpu.vector_store %arg10[%c8, %c0_39], %159 {strides = array<i32>} : memref<16x32xf32, #tpu.memory_space<vmem>>, vector<2x32xf32>,
    %161 = vector.extract_strided_slice %6 {offsets = [10, 0], sizes = [2, 128], strides = [1, 1]} : vector<14x128xf32> to vector<2x128xf32>
    %cst_40 = arith.constant dense<0.000000e+00> : vector<2x128xf32>
    %162 = tpu.matmul %159, %15, %cst_40 {dimension_numbers = #tpu.dot_dimension_numbers<[1], [0], [0], [1], [0, 0, 1, 1], [], []>} : vector<2x32xf32>, vector<32x128xf32>, vector<2x128xf32> -> vector<2x128xf32>
    %163 = arith.addf %161, %162 : vector<2x128xf32>
    %164 = vector.extract_strided_slice %163 {offsets = [0, 0], sizes = [2, 32], strides = [1, 1]} : vector<2x128xf32> to vector<2x32xf32>
    %165 = arith.negf %164 : vector<2x32xf32>
    %166 = math.exp %165 : vector<2x32xf32>
    %cst_41 = arith.constant 1.000000e+00 : f32
    %167 = vector.broadcast %cst_41 : f32 to vector<2x32xf32>
    %168 = arith.addf %167, %166 : vector<2x32xf32>
    %169 = arith.divf %167, %168 : vector<2x32xf32>
    %170 = vector.extract_strided_slice %163 {offsets = [0, 32], sizes = [2, 32], strides = [1, 1]} : vector<2x128xf32> to vector<2x32xf32>
    %171 = arith.negf %170 : vector<2x32xf32>
    %172 = math.exp %171 : vector<2x32xf32>
    %cst_42 = arith.constant 1.000000e+00 : f32
    %173 = vector.broadcast %cst_42 : f32 to vector<2x32xf32>
    %174 = arith.addf %173, %172 : vector<2x32xf32>
    %175 = arith.divf %173, %174 : vector<2x32xf32>
    %176 = vector.extract_strided_slice %163 {offsets = [0, 64], sizes = [2, 32], strides = [1, 1]} : vector<2x128xf32> to vector<2x32xf32>
    %177 = math.tanh %176 : vector<2x32xf32>
    %178 = vector.extract_strided_slice %163 {offsets = [0, 96], sizes = [2, 32], strides = [1, 1]} : vector<2x128xf32> to vector<2x32xf32>
    %179 = arith.negf %178 : vector<2x32xf32>
    %180 = math.exp %179 : vector<2x32xf32>
    %cst_43 = arith.constant 1.000000e+00 : f32
    %181 = vector.broadcast %cst_43 : f32 to vector<2x32xf32>
    %182 = arith.addf %181, %180 : vector<2x32xf32>
    %183 = arith.divf %181, %182 : vector<2x32xf32>
    %184 = arith.mulf %175, %157 : vector<2x32xf32>
    %185 = arith.mulf %169, %177 : vector<2x32xf32>
    %186 = arith.addf %184, %185 : vector<2x32xf32>
    %187 = math.tanh %186 : vector<2x32xf32>
    %188 = arith.mulf %183, %187 : vector<2x32xf32>
    %c10 = arith.constant 10 : index
    %c0_44 = arith.constant 0 : index
    %189 = vector.load %arg10[%c10, %c0_44] : memref<16x32xf32, #tpu.memory_space<vmem>>, vector<2x32xf32>
    tpu.vector_store %arg10[%c10, %c0_44], %188 {strides = array<i32>} : memref<16x32xf32, #tpu.memory_space<vmem>>, vector<2x32xf32>,
    %190 = vector.extract_strided_slice %6 {offsets = [12, 0], sizes = [2, 128], strides = [1, 1]} : vector<14x128xf32> to vector<2x128xf32>
    %cst_45 = arith.constant dense<0.000000e+00> : vector<2x128xf32>
    %191 = tpu.matmul %188, %15, %cst_45 {dimension_numbers = #tpu.dot_dimension_numbers<[1], [0], [0], [1], [0, 0, 1, 1], [], []>} : vector<2x32xf32>, vector<32x128xf32>, vector<2x128xf32> -> vector<2x128xf32>
    %192 = arith.addf %190, %191 : vector<2x128xf32>
    %193 = vector.extract_strided_slice %192 {offsets = [0, 0], sizes = [2, 32], strides = [1, 1]} : vector<2x128xf32> to vector<2x32xf32>
    %194 = arith.negf %193 : vector<2x32xf32>
    %195 = math.exp %194 : vector<2x32xf32>
    %cst_46 = arith.constant 1.000000e+00 : f32
    %196 = vector.broadcast %cst_46 : f32 to vector<2x32xf32>
    %197 = arith.addf %196, %195 : vector<2x32xf32>
    %198 = arith.divf %196, %197 : vector<2x32xf32>
    %199 = vector.extract_strided_slice %192 {offsets = [0, 32], sizes = [2, 32], strides = [1, 1]} : vector<2x128xf32> to vector<2x32xf32>
    %200 = arith.negf %199 : vector<2x32xf32>
    %201 = math.exp %200 : vector<2x32xf32>
    %cst_47 = arith.constant 1.000000e+00 : f32
    %202 = vector.broadcast %cst_47 : f32 to vector<2x32xf32>
    %203 = arith.addf %202, %201 : vector<2x32xf32>
    %204 = arith.divf %202, %203 : vector<2x32xf32>
    %205 = vector.extract_strided_slice %192 {offsets = [0, 64], sizes = [2, 32], strides = [1, 1]} : vector<2x128xf32> to vector<2x32xf32>
    %206 = math.tanh %205 : vector<2x32xf32>
    %207 = vector.extract_strided_slice %192 {offsets = [0, 96], sizes = [2, 32], strides = [1, 1]} : vector<2x128xf32> to vector<2x32xf32>
    %208 = arith.negf %207 : vector<2x32xf32>
    %209 = math.exp %208 : vector<2x32xf32>
    %cst_48 = arith.constant 1.000000e+00 : f32
    %210 = vector.broadcast %cst_48 : f32 to vector<2x32xf32>
    %211 = arith.addf %210, %209 : vector<2x32xf32>
    %212 = arith.divf %210, %211 : vector<2x32xf32>
    %213 = arith.mulf %204, %186 : vector<2x32xf32>
    %214 = arith.mulf %198, %206 : vector<2x32xf32>
    %215 = arith.addf %213, %214 : vector<2x32xf32>
    %216 = math.tanh %215 : vector<2x32xf32>
    %217 = arith.mulf %212, %216 : vector<2x32xf32>
    %c12 = arith.constant 12 : index
    %c0_49 = arith.constant 0 : index
    %218 = vector.load %arg10[%c12, %c0_49] : memref<16x32xf32, #tpu.memory_space<vmem>>, vector<2x32xf32>
    tpu.vector_store %arg10[%c12, %c0_49], %217 {strides = array<i32>} : memref<16x32xf32, #tpu.memory_space<vmem>>, vector<2x32xf32>,
    %c0_50 = arith.constant 0 : index
    %c0_51 = arith.constant 0 : index
    %219 = vector.load %arg5[%c0_50, %c0_51] : memref<32x128xf32, #tpu.memory_space<vmem>>, vector<32x128xf32>
    %cst_52 = arith.constant dense<0.000000e+00> : vector<2x128xf32>
    %220 = tpu.matmul %217, %219, %cst_52 {dimension_numbers = #tpu.dot_dimension_numbers<[1], [0], [0], [1], [0, 0, 1, 1], [], []>} : vector<2x32xf32>, vector<32x128xf32>, vector<2x128xf32> -> vector<2x128xf32>
    %221 = arith.addf %12, %220 : vector<2x128xf32>
    %222 = vector.extract_strided_slice %221 {offsets = [0, 0], sizes = [2, 32], strides = [1, 1]} : vector<2x128xf32> to vector<2x32xf32>
    %223 = arith.negf %222 : vector<2x32xf32>
    %224 = math.exp %223 : vector<2x32xf32>
    %cst_53 = arith.constant 1.000000e+00 : f32
    %225 = vector.broadcast %cst_53 : f32 to vector<2x32xf32>
    %226 = arith.addf %225, %224 : vector<2x32xf32>
    %227 = arith.divf %225, %226 : vector<2x32xf32>
    %228 = vector.extract_strided_slice %221 {offsets = [0, 32], sizes = [2, 32], strides = [1, 1]} : vector<2x128xf32> to vector<2x32xf32>
    %229 = arith.negf %228 : vector<2x32xf32>
    %230 = math.exp %229 : vector<2x32xf32>
    %cst_54 = arith.constant 1.000000e+00 : f32
    %231 = vector.broadcast %cst_54 : f32 to vector<2x32xf32>
    %232 = arith.addf %231, %230 : vector<2x32xf32>
    %233 = arith.divf %231, %232 : vector<2x32xf32>
    %234 = vector.extract_strided_slice %221 {offsets = [0, 64], sizes = [2, 32], strides = [1, 1]} : vector<2x128xf32> to vector<2x32xf32>
    %235 = math.tanh %234 : vector<2x32xf32>
    %236 = vector.extract_strided_slice %221 {offsets = [0, 96], sizes = [2, 32], strides = [1, 1]} : vector<2x128xf32> to vector<2x32xf32>
    %237 = arith.negf %236 : vector<2x32xf32>
    %238 = math.exp %237 : vector<2x32xf32>
    %cst_55 = arith.constant 1.000000e+00 : f32
    %239 = vector.broadcast %cst_55 : f32 to vector<2x32xf32>
    %240 = arith.addf %239, %238 : vector<2x32xf32>
    %241 = arith.divf %239, %240 : vector<2x32xf32>
    %242 = arith.mulf %233, %217 : vector<2x32xf32>
    %243 = arith.mulf %227, %235 : vector<2x32xf32>
    %244 = arith.addf %242, %243 : vector<2x32xf32>
    %245 = math.tanh %244 : vector<2x32xf32>
    %246 = arith.mulf %241, %245 : vector<2x32xf32>
    %c14 = arith.constant 14 : index
    %c0_56 = arith.constant 0 : index
    %247 = vector.load %arg10[%c14, %c0_56] : memref<16x32xf32, #tpu.memory_space<vmem>>, vector<2x32xf32>
    tpu.vector_store %arg10[%c14, %c0_56], %246 {strides = array<i32>} : memref<16x32xf32, #tpu.memory_space<vmem>>, vector<2x32xf32>,
    %c0_57 = arith.constant 0 : index
    %c0_58 = arith.constant 0 : index
    %248 = vector.load %arg10[%c0_57, %c0_58] : memref<16x32xf32, #tpu.memory_space<vmem>>, vector<16x32xf32>
    %249 = arith.addf %248, %0 : vector<16x32xf32>
    %c0_59 = arith.constant 0 : index
    %c0_60 = arith.constant 0 : index
    %250 = vector.load %arg7[%c0_59, %c0_60] : memref<32x64xf32, #tpu.memory_space<vmem>>, vector<32x64xf32>
    %cst_61 = arith.constant dense<0.000000e+00> : vector<16x64xf32>
    %251 = tpu.matmul %249, %250, %cst_61 {dimension_numbers = #tpu.dot_dimension_numbers<[1], [0], [0], [1], [0, 0, 1, 1], [], []>} : vector<16x32xf32>, vector<32x64xf32>, vector<16x64xf32> -> vector<16x64xf32>
    %c0_62 = arith.constant 0 : index
    %c0_63 = arith.constant 0 : index
    %252 = vector.load %arg8[%c0_62, %c0_63] : memref<1x64xf32, #tpu.memory_space<vmem>>, vector<1x64xf32>
    %253 = vector.broadcast %252 : vector<1x64xf32> to vector<16x64xf32>
    %254 = arith.addf %251, %253 : vector<16x64xf32>
    %255 = vector.extract_strided_slice %254 {offsets = [0, 0], sizes = [16, 32], strides = [1, 1]} : vector<16x64xf32> to vector<16x32xf32>
    %256 = arith.negf %255 : vector<16x32xf32>
    %257 = math.exp %256 : vector<16x32xf32>
    %cst_64 = arith.constant 1.000000e+00 : f32
    %258 = vector.broadcast %cst_64 : f32 to vector<16x32xf32>
    %259 = arith.addf %258, %257 : vector<16x32xf32>
    %260 = arith.divf %258, %259 : vector<16x32xf32>
    %261 = vector.extract_strided_slice %254 {offsets = [0, 32], sizes = [16, 32], strides = [1, 1]} : vector<16x64xf32> to vector<16x32xf32>
    %262 = arith.mulf %260, %261 : vector<16x32xf32>
    %c0_65 = arith.constant 0 : index
    %c0_66 = arith.constant 0 : index
    %263 = vector.load %arg9[%c0_65, %c0_66] : memref<16x32xf32, #tpu.memory_space<vmem>>, vector<16x32xf32>
    tpu.vector_store %arg9[%c0_65, %c0_66], %262 {strides = array<i32>} : memref<16x32xf32, #tpu.memory_space<vmem>>, vector<16x32xf32>,
    return
  }
}

module attributes {stable_mosaic.version = 11 : i64} {
  func.func @_head_kernel(%arg0: memref<16x32xf32, #tpu.memory_space<vmem>>, %arg1: memref<32x32xf32, #tpu.memory_space<vmem>>, %arg2: memref<1x32xf32, #tpu.memory_space<vmem>>, %arg3: memref<32x64xf32, #tpu.memory_space<vmem>>, %arg4: memref<1x64xf32, #tpu.memory_space<vmem>>, %arg5: memref<32x32xf32, #tpu.memory_space<vmem>>, %arg6: memref<1x32xf32, #tpu.memory_space<vmem>>, %arg7: memref<14x14xf32, #tpu.memory_space<vmem>>, %arg8: memref<32x4xf32, #tpu.memory_space<vmem>>, %arg9: memref<4x32xf32, #tpu.memory_space<vmem>>, %arg10: memref<32x64xf32, #tpu.memory_space<vmem>>, %arg11: memref<1x64xf32, #tpu.memory_space<vmem>>, %arg12: memref<32x32xf32, #tpu.memory_space<vmem>>, %arg13: memref<1x32xf32, #tpu.memory_space<vmem>>, %arg14: memref<32x32xf32, #tpu.memory_space<vmem>>, %arg15: memref<1x32xf32, #tpu.memory_space<vmem>>, %arg16: memref<32x64xf32, #tpu.memory_space<vmem>>, %arg17: memref<1x64xf32, #tpu.memory_space<vmem>>, %arg18: memref<32x64xf32, #tpu.memory_space<vmem>>, %arg19: memref<1x64xf32, #tpu.memory_space<vmem>>, %arg20: memref<32x4xf32, #tpu.memory_space<vmem>>, %arg21: memref<1x4xf32, #tpu.memory_space<vmem>>, %arg22: memref<2x4xf32, #tpu.memory_space<vmem>>) attributes {dimension_semantics = [], scalar_prefetch = 0 : i64, scratch_operands = 0 : i64, tpu.core_type = #tpu.core_type<tc>} {
    %c0 = arith.constant 0 : index
    %c0_0 = arith.constant 0 : index
    %0 = vector.load %arg0[%c0, %c0_0] : memref<16x32xf32, #tpu.memory_space<vmem>>, vector<16x32xf32>
    %cst = arith.constant 0.999994993 : f32
    %1 = vector.broadcast %cst : f32 to vector<16x32xf32>
    %2 = arith.mulf %0, %1 : vector<16x32xf32>
    %3 = vector.extract_strided_slice %2 {offsets = [0, 0], sizes = [14, 32], strides = [1, 1]} : vector<16x32xf32> to vector<14x32xf32>
    %4 = vector.extract_strided_slice %2 {offsets = [14, 0], sizes = [2, 32], strides = [1, 1]} : vector<16x32xf32> to vector<2x32xf32>
    %c0_1 = arith.constant 0 : index
    %c0_2 = arith.constant 0 : index
    %5 = vector.load %arg1[%c0_1, %c0_2] : memref<32x32xf32, #tpu.memory_space<vmem>>, vector<32x32xf32>
    %cst_3 = arith.constant dense<0.000000e+00> : vector<2x32xf32>
    %6 = tpu.matmul %4, %5, %cst_3 {dimension_numbers = #tpu.dot_dimension_numbers<[1], [0], [0], [1], [0, 0, 1, 1], [], []>} : vector<2x32xf32>, vector<32x32xf32>, vector<2x32xf32> -> vector<2x32xf32>
    %c0_4 = arith.constant 0 : index
    %c0_5 = arith.constant 0 : index
    %7 = vector.load %arg2[%c0_4, %c0_5] : memref<1x32xf32, #tpu.memory_space<vmem>>, vector<1x32xf32>
    %8 = vector.broadcast %7 : vector<1x32xf32> to vector<2x32xf32>
    %9 = arith.addf %6, %8 : vector<2x32xf32>
    %c0_6 = arith.constant 0 : index
    %c0_7 = arith.constant 0 : index
    %10 = vector.load %arg3[%c0_6, %c0_7] : memref<32x64xf32, #tpu.memory_space<vmem>>, vector<32x64xf32>
    %cst_8 = arith.constant dense<0.000000e+00> : vector<14x64xf32>
    %11 = tpu.matmul %3, %10, %cst_8 {dimension_numbers = #tpu.dot_dimension_numbers<[1], [0], [0], [1], [0, 0, 1, 1], [], []>} : vector<14x32xf32>, vector<32x64xf32>, vector<14x64xf32> -> vector<14x64xf32>
    %c0_9 = arith.constant 0 : index
    %c0_10 = arith.constant 0 : index
    %12 = vector.load %arg4[%c0_9, %c0_10] : memref<1x64xf32, #tpu.memory_space<vmem>>, vector<1x64xf32>
    %13 = vector.broadcast %12 : vector<1x64xf32> to vector<14x64xf32>
    %14 = arith.addf %11, %13 : vector<14x64xf32>
    %c0_11 = arith.constant 0 : index
    %c0_12 = arith.constant 0 : index
    %15 = vector.load %arg7[%c0_11, %c0_12] : memref<14x14xf32, #tpu.memory_space<vmem>>, vector<14x14xf32>
    %cst_13 = arith.constant dense<0.000000e+00> : vector<14x64xf32>
    %16 = tpu.matmul %15, %14, %cst_13 {dimension_numbers = #tpu.dot_dimension_numbers<[1], [0], [0], [1], [0, 0, 1, 1], [], []>} : vector<14x14xf32>, vector<14x64xf32>, vector<14x64xf32> -> vector<14x64xf32>
    %c0_14 = arith.constant 0 : index
    %c0_15 = arith.constant 0 : index
    %17 = vector.load %arg8[%c0_14, %c0_15] : memref<32x4xf32, #tpu.memory_space<vmem>>, vector<32x4xf32>
    %c0_16 = arith.constant 0 : index
    %c0_17 = arith.constant 0 : index
    %18 = vector.load %arg9[%c0_16, %c0_17] : memref<4x32xf32, #tpu.memory_space<vmem>>, vector<4x32xf32>
    %19 = vector.extract_strided_slice %16 {offsets = [0, 0], sizes = [7, 32], strides = [1, 1]} : vector<14x64xf32> to vector<7x32xf32>
    %20 = vector.extract_strided_slice %16 {offsets = [0, 32], sizes = [7, 32], strides = [1, 1]} : vector<14x64xf32> to vector<7x32xf32>
    %21 = vector.extract_strided_slice %9 {offsets = [0, 0], sizes = [1, 32], strides = [1, 1]} : vector<2x32xf32> to vector<1x32xf32>
    %22 = vector.broadcast %21 : vector<1x32xf32> to vector<7x32xf32>
    %23 = arith.mulf %22, %19 : vector<7x32xf32>
    %cst_18 = arith.constant dense<0.000000e+00> : vector<7x4xf32>
    %24 = tpu.matmul %23, %17, %cst_18 {dimension_numbers = #tpu.dot_dimension_numbers<[1], [0], [0], [1], [0, 0, 1, 1], [], []>} : vector<7x32xf32>, vector<32x4xf32>, vector<7x4xf32> -> vector<7x4xf32>
    %cst_19 = arith.constant 0.353553385 : f32
    %25 = vector.broadcast %cst_19 : f32 to vector<7x4xf32>
    %26 = arith.mulf %24, %25 : vector<7x4xf32>
    %cst_20 = arith.constant dense<0xFF800000> : vector<4xf32>
    %27 = vector.multi_reduction <maximumf>, %26, %cst_20 [0] : vector<7x4xf32> to vector<4xf32>
    %28 = vector.shape_cast %27 : vector<4xf32> to vector<1x4xf32>
    %29 = vector.broadcast %28 : vector<1x4xf32> to vector<7x4xf32>
    %30 = arith.subf %26, %29 : vector<7x4xf32>
    %31 = math.exp %30 : vector<7x4xf32>
    %cst_21 = arith.constant dense<0.000000e+00> : vector<4xf32>
    %32 = vector.multi_reduction <add>, %31, %cst_21 [0] : vector<7x4xf32> to vector<4xf32>
    %33 = vector.shape_cast %32 : vector<4xf32> to vector<1x4xf32>
    %34 = vector.broadcast %33 : vector<1x4xf32> to vector<7x4xf32>
    %35 = arith.divf %31, %34 : vector<7x4xf32>
    %cst_22 = arith.constant dense<0.000000e+00> : vector<7x32xf32>
    %36 = tpu.matmul %35, %18, %cst_22 {dimension_numbers = #tpu.dot_dimension_numbers<[1], [0], [0], [1], [0, 0, 1, 1], [], []>} : vector<7x4xf32>, vector<4x32xf32>, vector<7x32xf32> -> vector<7x32xf32>
    %37 = arith.mulf %36, %20 : vector<7x32xf32>
    %cst_23 = arith.constant dense<0.000000e+00> : vector<32xf32>
    %38 = vector.multi_reduction <add>, %37, %cst_23 [0] : vector<7x32xf32> to vector<32xf32>
    %39 = vector.shape_cast %38 : vector<32xf32> to vector<1x32xf32>
    %40 = vector.extract_strided_slice %16 {offsets = [7, 0], sizes = [7, 32], strides = [1, 1]} : vector<14x64xf32> to vector<7x32xf32>
    %41 = vector.extract_strided_slice %16 {offsets = [7, 32], sizes = [7, 32], strides = [1, 1]} : vector<14x64xf32> to vector<7x32xf32>
    %42 = vector.extract_strided_slice %9 {offsets = [1, 0], sizes = [1, 32], strides = [1, 1]} : vector<2x32xf32> to vector<1x32xf32>
    %43 = vector.broadcast %42 : vector<1x32xf32> to vector<7x32xf32>
    %44 = arith.mulf %43, %40 : vector<7x32xf32>
    %cst_24 = arith.constant dense<0.000000e+00> : vector<7x4xf32>
    %45 = tpu.matmul %44, %17, %cst_24 {dimension_numbers = #tpu.dot_dimension_numbers<[1], [0], [0], [1], [0, 0, 1, 1], [], []>} : vector<7x32xf32>, vector<32x4xf32>, vector<7x4xf32> -> vector<7x4xf32>
    %cst_25 = arith.constant 0.353553385 : f32
    %46 = vector.broadcast %cst_25 : f32 to vector<7x4xf32>
    %47 = arith.mulf %45, %46 : vector<7x4xf32>
    %cst_26 = arith.constant dense<0xFF800000> : vector<4xf32>
    %48 = vector.multi_reduction <maximumf>, %47, %cst_26 [0] : vector<7x4xf32> to vector<4xf32>
    %49 = vector.shape_cast %48 : vector<4xf32> to vector<1x4xf32>
    %50 = vector.broadcast %49 : vector<1x4xf32> to vector<7x4xf32>
    %51 = arith.subf %47, %50 : vector<7x4xf32>
    %52 = math.exp %51 : vector<7x4xf32>
    %cst_27 = arith.constant dense<0.000000e+00> : vector<4xf32>
    %53 = vector.multi_reduction <add>, %52, %cst_27 [0] : vector<7x4xf32> to vector<4xf32>
    %54 = vector.shape_cast %53 : vector<4xf32> to vector<1x4xf32>
    %55 = vector.broadcast %54 : vector<1x4xf32> to vector<7x4xf32>
    %56 = arith.divf %52, %55 : vector<7x4xf32>
    %cst_28 = arith.constant dense<0.000000e+00> : vector<7x32xf32>
    %57 = tpu.matmul %56, %18, %cst_28 {dimension_numbers = #tpu.dot_dimension_numbers<[1], [0], [0], [1], [0, 0, 1, 1], [], []>} : vector<7x4xf32>, vector<4x32xf32>, vector<7x32xf32> -> vector<7x32xf32>
    %58 = arith.mulf %57, %41 : vector<7x32xf32>
    %cst_29 = arith.constant dense<0.000000e+00> : vector<32xf32>
    %59 = vector.multi_reduction <add>, %58, %cst_29 [0] : vector<7x32xf32> to vector<32xf32>
    %60 = vector.shape_cast %59 : vector<32xf32> to vector<1x32xf32>
    %61 = tpu.concatenate %39, %60 in 0 : vector<1x32xf32>, vector<1x32xf32> -> vector<2x32xf32>
    %c0_30 = arith.constant 0 : index
    %c0_31 = arith.constant 0 : index
    %62 = vector.load %arg5[%c0_30, %c0_31] : memref<32x32xf32, #tpu.memory_space<vmem>>, vector<32x32xf32>
    %cst_32 = arith.constant dense<0.000000e+00> : vector<2x32xf32>
    %63 = tpu.matmul %61, %62, %cst_32 {dimension_numbers = #tpu.dot_dimension_numbers<[1], [0], [0], [1], [0, 0, 1, 1], [], []>} : vector<2x32xf32>, vector<32x32xf32>, vector<2x32xf32> -> vector<2x32xf32>
    %c0_33 = arith.constant 0 : index
    %c0_34 = arith.constant 0 : index
    %64 = vector.load %arg6[%c0_33, %c0_34] : memref<1x32xf32, #tpu.memory_space<vmem>>, vector<1x32xf32>
    %65 = vector.broadcast %64 : vector<1x32xf32> to vector<2x32xf32>
    %66 = arith.addf %63, %65 : vector<2x32xf32>
    %c0_35 = arith.constant 0 : index
    %c0_36 = arith.constant 0 : index
    %67 = vector.load %arg10[%c0_35, %c0_36] : memref<32x64xf32, #tpu.memory_space<vmem>>, vector<32x64xf32>
    %cst_37 = arith.constant dense<0.000000e+00> : vector<2x64xf32>
    %68 = tpu.matmul %66, %67, %cst_37 {dimension_numbers = #tpu.dot_dimension_numbers<[1], [0], [0], [1], [0, 0, 1, 1], [], []>} : vector<2x32xf32>, vector<32x64xf32>, vector<2x64xf32> -> vector<2x64xf32>
    %c0_38 = arith.constant 0 : index
    %c0_39 = arith.constant 0 : index
    %69 = vector.load %arg11[%c0_38, %c0_39] : memref<1x64xf32, #tpu.memory_space<vmem>>, vector<1x64xf32>
    %70 = vector.broadcast %69 : vector<1x64xf32> to vector<2x64xf32>
    %71 = arith.addf %68, %70 : vector<2x64xf32>
    %72 = vector.extract_strided_slice %71 {offsets = [0, 0], sizes = [2, 32], strides = [1, 1]} : vector<2x64xf32> to vector<2x32xf32>
    %73 = arith.negf %72 : vector<2x32xf32>
    %74 = math.exp %73 : vector<2x32xf32>
    %cst_40 = arith.constant 1.000000e+00 : f32
    %75 = vector.broadcast %cst_40 : f32 to vector<2x32xf32>
    %76 = arith.addf %75, %74 : vector<2x32xf32>
    %77 = arith.divf %75, %76 : vector<2x32xf32>
    %78 = vector.extract_strided_slice %71 {offsets = [0, 32], sizes = [2, 32], strides = [1, 1]} : vector<2x64xf32> to vector<2x32xf32>
    %79 = arith.mulf %77, %78 : vector<2x32xf32>
    %80 = arith.addf %79, %4 : vector<2x32xf32>
    %cst_41 = arith.constant 0.999994993 : f32
    %81 = vector.broadcast %cst_41 : f32 to vector<2x32xf32>
    %82 = arith.mulf %80, %81 : vector<2x32xf32>
    %c0_42 = arith.constant 0 : index
    %c0_43 = arith.constant 0 : index
    %83 = vector.load %arg12[%c0_42, %c0_43] : memref<32x32xf32, #tpu.memory_space<vmem>>, vector<32x32xf32>
    %cst_44 = arith.constant dense<0.000000e+00> : vector<2x32xf32>
    %84 = tpu.matmul %82, %83, %cst_44 {dimension_numbers = #tpu.dot_dimension_numbers<[1], [0], [0], [1], [0, 0, 1, 1], [], []>} : vector<2x32xf32>, vector<32x32xf32>, vector<2x32xf32> -> vector<2x32xf32>
    %c0_45 = arith.constant 0 : index
    %c0_46 = arith.constant 0 : index
    %85 = vector.load %arg13[%c0_45, %c0_46] : memref<1x32xf32, #tpu.memory_space<vmem>>, vector<1x32xf32>
    %86 = vector.broadcast %85 : vector<1x32xf32> to vector<2x32xf32>
    %87 = arith.addf %84, %86 : vector<2x32xf32>
    %cst_47 = arith.constant 0.000000e+00 : f32
    %88 = vector.broadcast %cst_47 : f32 to vector<2x32xf32>
    %89 = arith.cmpf ogt, %87, %88 : vector<2x32xf32>
    %cst_48 = arith.constant 0.000000e+00 : f32
    %90 = vector.broadcast %cst_48 : f32 to vector<2x32xf32>
    %91 = arith.minimumf %87, %90 : vector<2x32xf32>
    %92 = math.exp %91 : vector<2x32xf32>
    %cst_49 = arith.constant 1.000000e+00 : f32
    %93 = vector.broadcast %cst_49 : f32 to vector<2x32xf32>
    %94 = arith.subf %92, %93 : vector<2x32xf32>
    %95 = arith.select %89, %87, %94 : vector<2x32xi1>, vector<2x32xf32>
    %c0_50 = arith.constant 0 : index
    %c0_51 = arith.constant 0 : index
    %96 = vector.load %arg14[%c0_50, %c0_51] : memref<32x32xf32, #tpu.memory_space<vmem>>, vector<32x32xf32>
    %cst_52 = arith.constant dense<0.000000e+00> : vector<2x32xf32>
    %97 = tpu.matmul %95, %96, %cst_52 {dimension_numbers = #tpu.dot_dimension_numbers<[1], [0], [0], [1], [0, 0, 1, 1], [], []>} : vector<2x32xf32>, vector<32x32xf32>, vector<2x32xf32> -> vector<2x32xf32>
    %c0_53 = arith.constant 0 : index
    %c0_54 = arith.constant 0 : index
    %98 = vector.load %arg15[%c0_53, %c0_54] : memref<1x32xf32, #tpu.memory_space<vmem>>, vector<1x32xf32>
    %99 = vector.broadcast %98 : vector<1x32xf32> to vector<2x32xf32>
    %100 = arith.addf %97, %99 : vector<2x32xf32>
    %c0_55 = arith.constant 0 : index
    %c0_56 = arith.constant 0 : index
    %101 = vector.load %arg16[%c0_55, %c0_56] : memref<32x64xf32, #tpu.memory_space<vmem>>, vector<32x64xf32>
    %cst_57 = arith.constant dense<0.000000e+00> : vector<2x64xf32>
    %102 = tpu.matmul %100, %101, %cst_57 {dimension_numbers = #tpu.dot_dimension_numbers<[1], [0], [0], [1], [0, 0, 1, 1], [], []>} : vector<2x32xf32>, vector<32x64xf32>, vector<2x64xf32> -> vector<2x64xf32>
    %c0_58 = arith.constant 0 : index
    %c0_59 = arith.constant 0 : index
    %103 = vector.load %arg17[%c0_58, %c0_59] : memref<1x64xf32, #tpu.memory_space<vmem>>, vector<1x64xf32>
    %104 = vector.broadcast %103 : vector<1x64xf32> to vector<2x64xf32>
    %105 = arith.addf %102, %104 : vector<2x64xf32>
    %106 = vector.extract_strided_slice %105 {offsets = [0, 0], sizes = [2, 32], strides = [1, 1]} : vector<2x64xf32> to vector<2x32xf32>
    %107 = arith.negf %106 : vector<2x32xf32>
    %108 = math.exp %107 : vector<2x32xf32>
    %cst_60 = arith.constant 1.000000e+00 : f32
    %109 = vector.broadcast %cst_60 : f32 to vector<2x32xf32>
    %110 = arith.addf %109, %108 : vector<2x32xf32>
    %111 = arith.divf %109, %110 : vector<2x32xf32>
    %112 = vector.extract_strided_slice %105 {offsets = [0, 32], sizes = [2, 32], strides = [1, 1]} : vector<2x64xf32> to vector<2x32xf32>
    %113 = arith.mulf %111, %112 : vector<2x32xf32>
    %114 = arith.addf %113, %82 : vector<2x32xf32>
    %cst_61 = arith.constant 0.999994993 : f32
    %115 = vector.broadcast %cst_61 : f32 to vector<2x32xf32>
    %116 = arith.mulf %114, %115 : vector<2x32xf32>
    %c0_62 = arith.constant 0 : index
    %c0_63 = arith.constant 0 : index
    %117 = vector.load %arg18[%c0_62, %c0_63] : memref<32x64xf32, #tpu.memory_space<vmem>>, vector<32x64xf32>
    %cst_64 = arith.constant dense<0.000000e+00> : vector<2x64xf32>
    %118 = tpu.matmul %116, %117, %cst_64 {dimension_numbers = #tpu.dot_dimension_numbers<[1], [0], [0], [1], [0, 0, 1, 1], [], []>} : vector<2x32xf32>, vector<32x64xf32>, vector<2x64xf32> -> vector<2x64xf32>
    %c0_65 = arith.constant 0 : index
    %c0_66 = arith.constant 0 : index
    %119 = vector.load %arg19[%c0_65, %c0_66] : memref<1x64xf32, #tpu.memory_space<vmem>>, vector<1x64xf32>
    %120 = vector.broadcast %119 : vector<1x64xf32> to vector<2x64xf32>
    %121 = arith.addf %118, %120 : vector<2x64xf32>
    %122 = vector.extract_strided_slice %121 {offsets = [0, 0], sizes = [2, 32], strides = [1, 1]} : vector<2x64xf32> to vector<2x32xf32>
    %123 = arith.negf %122 : vector<2x32xf32>
    %124 = math.exp %123 : vector<2x32xf32>
    %cst_67 = arith.constant 1.000000e+00 : f32
    %125 = vector.broadcast %cst_67 : f32 to vector<2x32xf32>
    %126 = arith.addf %125, %124 : vector<2x32xf32>
    %127 = arith.divf %125, %126 : vector<2x32xf32>
    %128 = vector.extract_strided_slice %121 {offsets = [0, 32], sizes = [2, 32], strides = [1, 1]} : vector<2x64xf32> to vector<2x32xf32>
    %129 = arith.mulf %127, %128 : vector<2x32xf32>
    %130 = vector.extract_strided_slice %0 {offsets = [14, 0], sizes = [2, 32], strides = [1, 1]} : vector<16x32xf32> to vector<2x32xf32>
    %131 = arith.addf %129, %130 : vector<2x32xf32>
    %c0_68 = arith.constant 0 : index
    %c0_69 = arith.constant 0 : index
    %132 = vector.load %arg20[%c0_68, %c0_69] : memref<32x4xf32, #tpu.memory_space<vmem>>, vector<32x4xf32>
    %cst_70 = arith.constant dense<0.000000e+00> : vector<2x4xf32>
    %133 = tpu.matmul %131, %132, %cst_70 {dimension_numbers = #tpu.dot_dimension_numbers<[1], [0], [0], [1], [0, 0, 1, 1], [], []>} : vector<2x32xf32>, vector<32x4xf32>, vector<2x4xf32> -> vector<2x4xf32>
    %c0_71 = arith.constant 0 : index
    %c0_72 = arith.constant 0 : index
    %134 = vector.load %arg21[%c0_71, %c0_72] : memref<1x4xf32, #tpu.memory_space<vmem>>, vector<1x4xf32>
    %135 = vector.broadcast %134 : vector<1x4xf32> to vector<2x4xf32>
    %136 = arith.addf %133, %135 : vector<2x4xf32>
    %c0_73 = arith.constant 0 : index
    %c0_74 = arith.constant 0 : index
    %137 = vector.load %arg22[%c0_73, %c0_74] : memref<2x4xf32, #tpu.memory_space<vmem>>, vector<2x4xf32>
    tpu.vector_store %arg22[%c0_73, %c0_74], %136 {strides = array<i32>} : memref<2x4xf32, #tpu.memory_space<vmem>>, vector<2x4xf32>,
    return
  }
}

</mosaic_0001>

<bundles_post_ra>
// kernel: run.4
= control target key start
LH: loop header
LB: loop body
LE: loop exit
PB: predicated region body
PF: predicated region fallthrough
CT: control target
= control target key end

     0   :  { %vm45_vm0 = vcmask 261120   ;;  %v1569_v3 = vmov 0.0|0.0   ;;  %vm1570_vm1 = vmmov 0   ;;  %v1571_v4 = vmov 0.0   ;;  %s1572_s28 = smov 64   ;;  %s1856_s1 = inlined_call_operand.vmem [shape: f32[32,128], index: 1, kind: input, shape index: {}]   ;;  %s1857_s0 = inlined_call_operand.vmem [shape: f32[16,32], index: 0, kind: input, shape index: {}]   ;;  %s1858_s2 = inlined_call_operand.vmem [shape: f32[32,128], index: 2, kind: input, shape index: {}]   ;;  %s1859_s3 = inlined_call_operand.vmem [shape: f32[1,128], index: 3, kind: input, shape index: {}]   ;;  %s1860_s4 = inlined_call_operand.vmem [shape: f32[32,128], index: 4, kind: input, shape index: {}]   ;;  %s1861_s5 = inlined_call_operand.vmem [shape: f32[32,128], index: 5, kind: input, shape index: {}]   ;;  %s1862_s6 = inlined_call_operand.vmem [shape: f32[1,128], index: 6, kind: input, shape index: {}]   ;;  %s1863_s7 = inlined_call_operand.vmem [shape: f32[32,64], index: 7, kind: input, shape index: {}]   ;;  %s1864_s8 = inlined_call_operand.vmem [shape: f32[1,64], index: 8, kind: input, shape index: {}]   ;;  %s1865_s9 = inlined_call_operand.vmem [shape: f32[16,32], index: 9, kind: output, shape index: {}]  }
   0x1   :  { %v34_v0 = vld [vmem:[%s1856_s1] sm:$0xff]  ;;  %v35_v1 = vld [vmem:[%s1856_s1 + $0x8] sm:$0xff]  ;;  %v36_v2 = vld [vmem:[%s1856_s1 + $0x10] sm:$0xff]  ;;  %1426 = vmatprep.subr.bf16.mxu1 %v1569_v3  ;;  %1316 = vmatprep.mubr.msk.f32.mxu1 %vm1570_vm1, %v1571_v4  ;;  %vm317_vm2 = vcmask 254976   ;;  %vm426_vm3 = vcmask 257026   ;;  %vm650_vm4 = vcmask 261126  }
   0x2   :  { %v1418_v5 = vpack.c.bf16 %v35_v1, %v34_v0  ;;  %v37_v6 = vld [vmem:[%s1856_s1 + $0x18] sm:$0xff]  ;;  %v1643_v7 = vld [vmem:[%s1857_s0] sm:$0xff]  ;;  %v212_v10 = vld [vmem:[%s1858_s2 + $0x8] sm:$0xff]  ;;  %vm538_vm5 = vcmask 259076  }
   0x3   :  { %v1422_v8 = vpack.c.bf16 %v37_v6, %v36_v2  ;;  %1305 = vmatprep.mubr.msk.f32.mxu0 %vm45_vm0, %v1643_v7  ;;  %v211_v9 = vld [vmem:[%s1858_s2] sm:$0xff]  ;;  %v1656_v11 = vld [vmem:[%s1857_s0 + $0x8] sm:$0xff]  ;;  %v213_v13 = vld [vmem:[%s1858_s2 + $0x10] sm:$0xff] }
   0x4   :  { %1419 = vmatprep.subr.bf16.mxu0 %v1418_v5  ;;  %v1658_v12 = vpack.c.bf16 %v212_v10, %v211_v9  ;;  %v214_v14 = vld [vmem:[%s1858_s2 + $0x18] sm:$0xff]  ;;  %v1215_v16 = vld [vmem:[%s1859_s3] ss:$0 sm:$0xff]  ;;  %s1573_s3 = smov 32   ;;  %v128_v35 = vld [vmem:[%s1860_s4 + $0x8] sm:$0xff]  ;;  %v138_v40 = vrot.slane %v1656_v11, 6 }
   0x5   :  { %1421 = vmatpush3.bf16.msra.mxu0 %v1418_v5  ;;  %v1670_v15 = vpack.c.bf16 %v214_v14, %v213_v13  ;;  %v127_v34 = vld [vmem:[%s1860_s4] sm:$0xff]  ;;  %v129_v36 = vld [vmem:[%s1860_s4 + $0x10] sm:$0xff]  ;;  %v130_v38 = vld [vmem:[%s1860_s4 + $0x18] sm:$0xff] }
   0x6   :  { %1423 = vmatprep.subr.bf16.mxu0 %v1422_v8  ;;  %v1427_v37 = vpack.c.bf16 %v128_v35, %v127_v34  ;;  %v1430_v39 = vpack.c.bf16 %v130_v38, %v129_v36 }
   0x8   :  { %1428 = vmatpush3.bf16.msra.mxu1 %v1427_v37 }
   0x9   :  { %1425 = vmatpush3.bf16.msra.mxu0 %v1422_v8  ;;  %1429 = vmatprep.subr.bf16.mxu1 %v1569_v3 }
   0xa   :  { %1432 = vmatprep.subr.bf16.mxu0 %v1569_v3 }
   0xc   :  { %1306 = vmatmul.mubr.msk.f32.vlgmr.msra.gmra.mrb[0].mxu0 %vm45_vm0, %v1656_v11  ;;  %1431 = vmatpush3.bf16.msra.mxu1 %v1430_v39 }
   0xd   :  { %1434 = vmatpush3.bf16.msra.mxu0 %v1658_v12  ;;  %1327 = vmatprep.mubr.msk.f32.mxu0 %vm1570_vm1, %v1571_v4 }
   0xe   :  { %1435 = vmatprep.subr.bf16.mxu0 %v1569_v3  ;;  %1438 = vmatprep.subr.bf16.mxu1 %v1569_v3 }
   0xf   :  { %1317 = vmatmul.mubr.msk.f32.vlgmr.msra.gmra.mrb[0].mxu1 %vm45_vm0, %v138_v40 }
  0x10   :  { %1440 = vmatpush3.bf16.msra.mxu1 %v1658_v12  ;;  %1338 = vmatprep.mubr.msk.f32.mxu1 %vm1570_vm1, %v1571_v4 }
  0x11   :  { %1437 = vmatpush3.bf16.msra.mxu0 %v1670_v15  ;;  %1441 = vmatprep.subr.bf16.mxu1 %v1569_v3 }
  0x12   :  { %1444 = vmatprep.subr.bf16.mxu0 %v1569_v3 }
  0x14   :  { %1328 = vmatmul.mubr.f32.vlgmr.msra.gmra.mrb[2].mxu0 %v1571_v4  ;;  %1443 = vmatpush3.bf16.msra.mxu1 %v1670_v15 }
  0x15   :  { %1446 = vmatpush3.bf16.msra.mxu0 %v1658_v12  ;;  %1349 = vmatprep.mubr.msk.f32.mxu0 %vm1570_vm1, %v1571_v4 }
  0x16   :  { %1447 = vmatprep.subr.bf16.mxu0 %v1569_v3  ;;  %1450 = vmatprep.subr.bf16.mxu1 %v1569_v3 }
  0x19   :  { %1449 = vmatpush3.bf16.msra.mxu0 %v1670_v15 }
  0x1a   :  { %1456 = vmatprep.subr.bf16.mxu0 %v1569_v3 }
  0xdf   :  { %v1307_v17 = vpop.f32.mrb[0].mxu0 }
  0xe0   :  { %v1687_v18 = vadd.f32 %v1307_v17, %v1215_v16  ;;  %v118_v19 = vpop.f32.mrb[1].mxu0 }
  0xe1   :  { %v1689_v20 = vadd.f32 %v1215_v16, %v118_v19 }
  0xe7   :  { %v284_v21 = vpop.f32.mrb[2].mxu0 }
  0xe8   :  { %v288_v22 = vadd.f32 %v284_v21, %v1689_v20  ;;  %v1329_v23 = vpop.f32.mrb[3].mxu0 }
  0xea   :  { %1497 = vtanh.f32 %v288_v22  ;;  %v1220_v25 = vmul.f32 -1.442695, %v288_v22 }
  0xec   :  { %1499 = vpow2.f32 %v1220_v25 }
  0xf4   :  { %v1498_v24 = vpop.eup %1497 }
  0xf5   :  { %298 = vrot.lane.b32.xlu0 %v1498_v24, %s1572_s28 }
  0xf6   :  { %v1500_v26 = vpop.eup %1499 }
  0xf7   :  { %v292_v27 = vadd.f32 1.0, %v1500_v26 }
  0xf9   :  { %1501 = vrcp.f32 %v292_v27 }
 0x103   :  { %v1502_v28 = vpop.eup %1501 }
 0x104   :  { %v296_v31 = vmul.f32 0.0, %v1502_v28 }
 0x167   :  { %v299_v29 = vpop.permute.xlu0 %298 }
 0x168   :  { %v301_v30 = vmul.f32 %v1502_v28, %v299_v29 }
 0x16a   :  { %303 = vrot.lane.b32.xlu0 %v301_v30, %s1573_s3 }
 0x1dc   :  { %v304_v32 = vpop.permute.xlu0 %303 }
 0x1dd   :  { %v306_v33 = vadd.f32 %v304_v32, %v296_v31 }
 0x1df   :  { %1503 = vtanh.f32 %v306_v33  ;;  %v403_v56 = vrot.slane %v306_v33, 6 }
 0x1e9   :  { %v1504_v41 = vpop.eup %1503 }
 0x1ea   :  { %309 = vrot.lane.b32.xlu1 %v1504_v41, %s1572_s28 }
 0x25c   :  { %v310_v42 = vpop.permute.xlu1 %309 }
 0x25d   :  { %v312_v43 = vmul.f32 %v1502_v28, %v310_v42 }
 0x25f   :  { %314 = vrot.lane.b32.xlu1 %v312_v43, %s1573_s3 }
 0x2d1   :  { %v315_v44 = vpop.permute.xlu1 %314 }
 0x2d2   :  { %318 = vst.msk [vmem:[#allocation2] sm:$0x3] %vm317_vm2, %v315_v44  ;;  %1339 = vmatmul.mubr.msk.f32.vlgmr.msra.gmra.mrb[2].mxu1 %vm45_vm0, %v315_v44 }
 0x2d3   :  { %1452 = vmatpush3.bf16.msra.mxu1 %v1658_v12  ;;  %1360 = vmatprep.mubr.msk.f32.mxu1 %vm1570_vm1, %v1571_v4 }
 0x2d4   :  { %1453 = vmatprep.subr.bf16.mxu1 %v1569_v3 }
 0x2d7   :  { %1455 = vmatpush3.bf16.msra.mxu1 %v1670_v15 }
 0x2d8   :  { %1462 = vmatprep.subr.bf16.mxu1 %v1569_v3 }
 0x3a5   :  { %v387_v45 = vpop.f32.mrb[2].mxu1 }
 0x3a6   :  { %v392_v46 = vrot.slane %v387_v45, 6  ;;  %v1340_v47 = vpop.f32.mrb[3].mxu1 }
 0x3a8   :  { %v394_v48 = vadd.f32 %v392_v46, %v1689_v20 }
 0x3aa   :  { %1505 = vtanh.f32 %v394_v48  ;;  %v1222_v50 = vmul.f32 -1.442695, %v394_v48 }
 0x3ac   :  { %1507 = vpow2.f32 %v1222_v50 }
 0x3b4   :  { %v1506_v49 = vpop.eup %1505 }
 0x3b5   :  { %407 = vrot.lane.b32.xlu0 %v1506_v49, %s1572_s28 }
 0x3b6   :  { %v1508_v51 = vpop.eup %1507 }
 0x3b7   :  { %v398_v52 = vadd.f32 1.0, %v1508_v51 }
 0x3b9   :  { %1509 = vrcp.f32 %v398_v52 }
 0x3c3   :  { %v1510_v53 = vpop.eup %1509 }
 0x3c4   :  { %v405_v57 = vmul.f32 %v1510_v53, %v403_v56 }
 0x427   :  { %v408_v54 = vpop.permute.xlu0 %407 }
 0x428   :  { %v410_v55 = vmul.f32 %v1510_v53, %v408_v54 }
 0x42a   :  { %412 = vrot.lane.b32.xlu1 %v410_v55, %s1573_s3 }
 0x49c   :  { %v413_v58 = vpop.permute.xlu1 %412 }
 0x49d   :  { %v415_v59 = vadd.f32 %v413_v58, %v405_v57 }
 0x49f   :  { %1511 = vtanh.f32 %v415_v59  ;;  %v515_v19 = vrot.slane %v415_v59, 6 }
 0x4a9   :  { %v1512_v60 = vpop.eup %1511 }
 0x4aa   :  { %418 = vrot.lane.b32.xlu0 %v1512_v60, %s1572_s28 }
 0x51c   :  { %v419_v61 = vpop.permute.xlu0 %418 }
 0x51d   :  { %v1730_v62 = vmul.f32 %v1510_v53, %v419_v61 }
 0x51f   :  { %v428_v63 = vrot.slane %v1730_v62, 2 }
 0x521   :  { %429 = vrot.lane.b32.xlu1 %v428_v63, %s1573_s3 }
 0x593   :  { %v430_v0 = vpop.permute.xlu1 %429 }
 0x594   :  { %1350 = vmatmul.mubr.msk.f32.vlgmr.msra.gmra.mrb[4].mxu0 %vm45_vm0, %v430_v0 }
 0x595   :  { %1458 = vmatpush3.bf16.msra.mxu0 %v1658_v12  ;;  %1371 = vmatprep.mubr.msk.f32.mxu0 %vm1570_vm1, %v1571_v4 }
 0x596   :  { %1459 = vmatprep.subr.bf16.mxu0 %v1569_v3 }
 0x599   :  { %1461 = vmatpush3.bf16.msra.mxu0 %v1670_v15 }
 0x59a   :  { %1468 = vmatprep.subr.bf16.mxu0 %v1569_v3 }
 0x667   :  { %v499_v1 = vpop.f32.mrb[4].mxu0 }
 0x668   :  { %v504_v2 = vrot.slane %v499_v1, 4  ;;  %v1351_v5 = vpop.f32.mrb[5].mxu0 }
 0x66a   :  { %v506_v6 = vadd.f32 %v504_v2, %v1689_v20 }
 0x66c   :  { %1513 = vtanh.f32 %v506_v6  ;;  %v1224_v9 = vmul.f32 -1.442695, %v506_v6 }
 0x66e   :  { %1515 = vpow2.f32 %v1224_v9 }
 0x676   :  { %v1514_v8 = vpop.eup %1513 }
 0x677   :  { %519 = vrot.lane.b32.xlu0 %v1514_v8, %s1572_s28 }
 0x678   :  { %v1516_v10 = vpop.eup %1515 }
 0x679   :  { %v510_v13 = vadd.f32 1.0, %v1516_v10 }
 0x67b   :  { %1517 = vrcp.f32 %v510_v13 }
 0x685   :  { %v1518_v14 = vpop.eup %1517 }
 0x686   :  { %v517_v21 = vmul.f32 %v1518_v14, %v515_v19 }
 0x6e9   :  { %v520_v16 = vpop.permute.xlu0 %519 }
 0x6ea   :  { %v522_v17 = vmul.f32 %v1518_v14, %v520_v16 }
 0x6ec   :  { %524 = vrot.lane.b32.xlu1 %v522_v17, %s1573_s3 }
 0x75e   :  { %v525_v22 = vpop.permute.xlu1 %524 }
 0x75f   :  { %v527_v23 = vadd.f32 %v525_v22, %v517_v21 }
 0x761   :  { %1519 = vtanh.f32 %v527_v23  ;;  %v627_v40 = vrot.slane %v527_v23, 6 }
 0x76b   :  { %v1520_v24 = vpop.eup %1519 }
 0x76c   :  { %530 = vrot.lane.b32.xlu0 %v1520_v24, %s1572_s28 }
 0x7de   :  { %v531_v25 = vpop.permute.xlu0 %530 }
 0x7df   :  { %v1745_v26 = vmul.f32 %v1518_v14, %v531_v25 }
 0x7e1   :  { %v540_v27 = vrot.slane %v1745_v26, 4 }
 0x7e3   :  { %541 = vrot.lane.b32.xlu1 %v540_v27, %s1573_s3 }
 0x855   :  { %v542_v28 = vpop.permute.xlu1 %541 }
 0x856   :  { %1361 = vmatmul.mubr.msk.f32.vlgmr.msra.gmra.mrb[4].mxu1 %vm45_vm0, %v542_v28 }
 0x857   :  { %1464 = vmatpush3.bf16.msra.mxu1 %v1658_v12  ;;  %1382 = vmatprep.mubr.msk.f32.mxu1 %vm1570_vm1, %v1571_v4 }
 0x858   :  { %1465 = vmatprep.subr.bf16.mxu1 %v1569_v3 }
 0x85b   :  { %1467 = vmatpush3.bf16.msra.mxu1 %v1670_v15 }
 0x85c   :  { %1474 = vmatprep.subr.bf16.mxu1 %v1569_v3 }
 0x929   :  { %v611_v29 = vpop.f32.mrb[4].mxu1 }
 0x92a   :  { %v616_v30 = vrot.slane %v611_v29, 2  ;;  %v1362_v31 = vpop.f32.mrb[5].mxu1 }
 0x92c   :  { %v618_v32 = vadd.f32 %v616_v30, %v1689_v20 }
 0x92e   :  { %1521 = vtanh.f32 %v618_v32  ;;  %v1226_v34 = vmul.f32 -1.442695, %v618_v32 }
 0x930   :  { %1523 = vpow2.f32 %v1226_v34 }
 0x938   :  { %v1522_v33 = vpop.eup %1521 }
 0x939   :  { %631 = vrot.lane.b32.xlu0 %v1522_v33, %s1572_s28 }
 0x93a   :  { %v1524_v35 = vpop.eup %1523 }
 0x93b   :  { %v622_v36 = vadd.f32 1.0, %v1524_v35 }
 0x93d   :  { %1525 = vrcp.f32 %v622_v36 }
 0x947   :  { %v1526_v37 = vpop.eup %1525 }
 0x948   :  { %v629_v41 = vmul.f32 %v1526_v37, %v627_v40 }
 0x9ab   :  { %v632_v38 = vpop.permute.xlu0 %631 }
 0x9ac   :  { %v634_v39 = vmul.f32 %v1526_v37, %v632_v38 }
 0x9ae   :  { %636 = vrot.lane.b32.xlu1 %v634_v39, %s1573_s3 }
 0xa20   :  { %v637_v42 = vpop.permute.xlu1 %636 }
 0xa21   :  { %v639_v43 = vadd.f32 %v637_v42, %v629_v41 }
 0xa23   :  { %1527 = vtanh.f32 %v639_v43  ;;  %v736_v57 = vrot.slane %v639_v43, 6 }
 0xa2d   :  { %v1528_v20 = vpop.eup %1527 }
 0xa2e   :  { %642 = vrot.lane.b32.xlu0 %v1528_v20, %s1572_s28  ;;  %v980_v20 = vld [vmem:[%s1861_s5 + $0x8] sm:$0xff] }
 0xaa0   :  { %v643_v44 = vpop.permute.xlu0 %642 }
 0xaa1   :  { %v1760_v45 = vmul.f32 %v1526_v37, %v643_v44  ;;  %v981_v44 = vld [vmem:[%s1861_s5 + $0x10] sm:$0xff] }
 0xaa3   :  { %v652_v46 = vrot.slane %v1760_v45, 6 }
 0xaa5   :  { %653 = vrot.lane.b32.xlu1 %v652_v46, %s1573_s3 }
 0xb17   :  { %v654_v47 = vpop.permute.xlu1 %653 }
 0xb18   :  { %1372 = vmatmul.mubr.msk.f32.vlgmr.msra.gmra.mrb[6].mxu0 %vm45_vm0, %v654_v47  ;;  %v982_v47 = vld [vmem:[%s1861_s5 + $0x18] sm:$0xff] }
 0xb19   :  { %1470 = vmatpush3.bf16.msra.mxu0 %v1658_v12  ;;  %1393 = vmatprep.mubr.msk.f32.mxu0 %vm1570_vm1, %v1571_v4 }
 0xb1a   :  { %1471 = vmatprep.subr.bf16.mxu0 %v1569_v3 }
 0xb1d   :  { %1473 = vmatpush3.bf16.msra.mxu0 %v1670_v15 }
 0xbeb   :  { %v723_v48 = vpop.f32.mrb[6].mxu0 }
 0xbec   :  { %v727_v49 = vadd.f32 %v723_v48, %v1687_v18  ;;  %v1373_v50 = vpop.f32.mrb[7].mxu0 }
 0xbee   :  { %1529 = vtanh.f32 %v727_v49  ;;  %v1228_v52 = vmul.f32 -1.442695, %v727_v49  ;;  %v1478_v49 = vpack.c.bf16 %v982_v47, %v981_v44 }
 0xbf0   :  { %1531 = vpow2.f32 %v1228_v52 }
 0xbf8   :  { %v1530_v51 = vpop.eup %1529 }
 0xbf9   :  { %740 = vrot.lane.b32.xlu0 %v1530_v51, %s1572_s28 }
 0xbfa   :  { %v1532_v53 = vpop.eup %1531 }
 0xbfb   :  { %v731_v54 = vadd.f32 1.0, %v1532_v53 }
 0xbfd   :  { %1533 = vrcp.f32 %v731_v54  ;;  %v1218_v54 = vld [vmem:[%s1862_s6] ss:$0 sm:$0xff] }
 0xc07   :  { %v1534_v12 = vpop.eup %1533 }
 0xc08   :  { %v738_v15 = vmul.f32 %v1534_v12, %v736_v57 }
 0xc6b   :  { %v741_v55 = vpop.permute.xlu0 %740 }
 0xc6c   :  { %v743_v56 = vmul.f32 %v1534_v12, %v741_v55 }
 0xc6e   :  { %745 = vrot.lane.b32.xlu1 %v743_v56, %s1573_s3 }
 0xce0   :  { %v746_v58 = vpop.permute.xlu1 %745 }
 0xce1   :  { %v748_v59 = vadd.f32 %v746_v58, %v738_v15 }
 0xce3   :  { %1535 = vtanh.f32 %v748_v59 }
 0xced   :  { %v1536_v60 = vpop.eup %1535 }
 0xcee   :  { %751 = vrot.lane.b32.xlu0 %v1536_v60, %s1572_s28 }
 0xd60   :  { %v752_v61 = vpop.permute.xlu0 %751 }
 0xd61   :  { %v754_v63 = vmul.f32 %v1534_v12, %v752_v61 }
 0xd63   :  { %756 = vrot.lane.b32.xlu1 %v754_v63, %s1573_s3 }
 0xdd5   :  { %v757_v0 = vpop.permute.xlu1 %756 }
 0xdd6   :  { %759 = vst.msk [vmem:[#allocation2 + $0x8] sm:$0x3] %vm317_vm2, %v757_v0  ;;  %1383 = vmatmul.mubr.msk.f32.vlgmr.msra.gmra.mrb[6].mxu1 %vm45_vm0, %v757_v0 }
 0xdd7   :  { %1404 = vmatprep.mubr.msk.f32.mxu1 %vm1570_vm1, %v1571_v4  ;;  %v844_v4 = vrot.slane %v748_v59, 6 }
 0xea9   :  { %v828_v1 = vpop.f32.mrb[6].mxu1 }
 0xeaa   :  { %v833_v2 = vrot.slane %v828_v1, 6  ;;  %v1384_v5 = vpop.f32.mrb[7].mxu1 }
 0xeac   :  { %v835_v6 = vadd.f32 %v833_v2, %v1687_v18 }
 0xeae   :  { %1537 = vtanh.f32 %v835_v6  ;;  %v1230_v9 = vmul.f32 -1.442695, %v835_v6 }
 0xeb0   :  { %1539 = vpow2.f32 %v1230_v9  ;;  %v1096_v9 = vld [vmem:[%s1863_s7 + $0x8] sm:$0xff] }
 0xeb8   :  { %v1538_v8 = vpop.eup %1537 }
 0xeb9   :  { %848 = vrot.lane.b32.xlu0 %v1538_v8, %s1572_s28 }
 0xeba   :  { %v1540_v10 = vpop.eup %1539 }
 0xebb   :  { %v839_v13 = vadd.f32 1.0, %v1540_v10 }
 0xebd   :  { %1541 = vrcp.f32 %v839_v13  ;;  %v1097_v13 = vld [vmem:[%s1863_s7 + $0x10] sm:$0xff] }
 0xec7   :  { %v1542_v14 = vpop.eup %1541 }
 0xec8   :  { %v846_v19 = vmul.f32 %v1542_v14, %v844_v4 }
 0xf2b   :  { %v849_v16 = vpop.permute.xlu0 %848 }
 0xf2c   :  { %v851_v17 = vmul.f32 %v1542_v14, %v849_v16 }
 0xf2e   :  { %853 = vrot.lane.b32.xlu1 %v851_v17, %s1573_s3 }
 0xfa0   :  { %v854_v21 = vpop.permute.xlu1 %853 }
 0xfa1   :  { %v856_v22 = vadd.f32 %v854_v21, %v846_v19 }
 0xfa3   :  { %1543 = vtanh.f32 %v856_v22  ;;  %v955_v40 = vrot.slane %v856_v22, 6 }
 0xfad   :  { %v1544_v23 = vpop.eup %1543 }
 0xfae   :  { %859 = vrot.lane.b32.xlu0 %v1544_v23, %s1572_s28 }
0x1020   :  { %v860_v24 = vpop.permute.xlu0 %859 }
0x1021   :  { %v1783_v25 = vmul.f32 %v1542_v14, %v860_v24 }
0x1023   :  { %v868_v27 = vrot.slane %v1783_v25, 2 }
0x1025   :  { %869 = vrot.lane.b32.xlu1 %v868_v27, %s1573_s3  ;;  %v1235_v27 = vld [vmem:[%s1864_s8] ss:$0 sm:$0xff] }
0x1097   :  { %v870_v28 = vpop.permute.xlu1 %869 }
0x1098   :  { %1394 = vmatmul.mubr.msk.f32.vlgmr.msra.gmra.mrb[8].mxu0 %vm45_vm0, %v870_v28 }
0x116b   :  { %v939_v29 = vpop.f32.mrb[8].mxu0 }
0x116c   :  { %v944_v30 = vrot.slane %v939_v29, 4  ;;  %v1395_v31 = vpop.f32.mrb[9].mxu0 }
0x116e   :  { %v946_v32 = vadd.f32 %v944_v30, %v1687_v18  ;;  %v979_v18 = vld [vmem:[%s1861_s5] sm:$0xff] }
0x116f   :  { %v1475_v46 = vpack.c.bf16 %v980_v20, %v979_v18 }
0x1170   :  { %1545 = vtanh.f32 %v946_v32  ;;  %v1232_v34 = vmul.f32 -1.442695, %v946_v32 }
0x1171   :  { %1476 = vmatpush3.bf16.msra.mxu1 %v1475_v46 }
0x1172   :  { %1547 = vpow2.f32 %v1232_v34  ;;  %1477 = vmatprep.subr.bf16.mxu1 %v1569_v3 }
0x1175   :  { %1479 = vmatpush3.bf16.msra.mxu1 %v1478_v49 }
0x117a   :  { %v1546_v33 = vpop.eup %1545 }
0x117b   :  { %959 = vrot.lane.b32.xlu0 %v1546_v33, %s1572_s28 }
0x117c   :  { %v1548_v35 = vpop.eup %1547 }
0x117d   :  { %v950_v36 = vadd.f32 1.0, %v1548_v35 }
0x117f   :  { %1549 = vrcp.f32 %v950_v36 }
0x1189   :  { %v1550_v37 = vpop.eup %1549 }
0x118a   :  { %v957_v41 = vmul.f32 %v1550_v37, %v955_v40 }
0x11ed   :  { %v960_v38 = vpop.permute.xlu0 %959 }
0x11ee   :  { %v962_v39 = vmul.f32 %v1550_v37, %v960_v38 }
0x11f0   :  { %964 = vrot.lane.b32.xlu1 %v962_v39, %s1573_s3 }
0x1262   :  { %v965_v42 = vpop.permute.xlu1 %964 }
0x1263   :  { %v967_v43 = vadd.f32 %v965_v42, %v957_v41 }
0x1265   :  { %1551 = vtanh.f32 %v967_v43 }
0x126f   :  { %v1552_v48 = vpop.eup %1551 }
0x1270   :  { %970 = vrot.lane.b32.xlu0 %v1552_v48, %s1572_s28 }
0x12e2   :  { %v971_v50 = vpop.permute.xlu0 %970 }
0x12e3   :  { %v973_v51 = vmul.f32 %v1550_v37, %v971_v50 }
0x12e5   :  { %v983_v52 = vrot.slane %v973_v51, 4 }
0x12e7   :  { %984 = vrot.lane.b32.xlu1 %v983_v52, %s1573_s3 }
0x12eb   :  { %1066 = vrot.lane.b32.xlu1 %v983_v52, %s1572_s28 }
0x1359   :  { %v985_v53 = vpop.permute.xlu1 %984 }
0x135a   :  { %1405 = vmatmul.mubr.msk.f32.vlgmr.msra.gmra.mrb[0].mxu1 %vm45_vm0, %v985_v53 }
0x135d   :  { %v1067_v63 = vpop.permute.xlu1 %1066 }
0x142d   :  { %v1054_v12 = vpop.f32.mrb[0].mxu1 }
0x142e   :  { %v1488_v55 = vadd.f32 %v1218_v54, %v1054_v12  ;;  %v1406_v56 = vpop.f32.mrb[1].mxu1 }
0x1430   :  { %1553 = vtanh.f32 %v1488_v55  ;;  %v1234_v57 = vmul.f32 -1.442695, %v1488_v55 }
0x1432   :  { %1555 = vpow2.f32 %v1234_v57 }
0x143a   :  { %v1554_v3 = vpop.eup %1553 }
0x143b   :  { %1071 = vrot.lane.b32.xlu0 %v1554_v3, %s1572_s28 }
0x143c   :  { %v1556_v15 = vpop.eup %1555 }
0x143d   :  { %v1062_v58 = vadd.f32 1.0, %v1556_v15 }
0x143f   :  { %1557 = vrcp.f32 %v1062_v58 }
0x1449   :  { %v1558_v59 = vpop.eup %1557 }
0x144a   :  { %v1069_v0 = vmul.f32 %v1558_v59, %v1067_v63 }
0x14ad   :  { %v1072_v60 = vpop.permute.xlu0 %1071 }
0x14ae   :  { %v1074_v61 = vmul.f32 %v1558_v59, %v1072_v60 }
0x14b0   :  { %1076 = vrot.lane.b32.xlu0 %v1074_v61, %s1573_s3 }
0x14b4   :  { %423 = vrot.lane.b32.xlu0 %v1730_v62, %s1573_s3 }
0x14b8   :  { %647 = vrot.lane.b32.xlu0 %v1760_v45, %s1573_s3  ;;  %v1095_v45 = vld [vmem:[%s1863_s7] sm:$0xff] }
0x14b9   :  { %v1480_v10 = vpack.c.bf16 %v1096_v9, %v1095_v45 }
0x14bb   :  { %1481 = vmatprep.subr.bf16.mxu0 %v1480_v10 }
0x14bc   :  { %975 = vrot.lane.b32.xlu0 %v973_v51, %s1573_s3  ;;  %1483 = vmatpush3.bf16.msra.mxu0 %v1480_v10 }
0x1522   :  { %v1077_v1 = vpop.permute.xlu0 %1076 }
0x1523   :  { %v1079_v2 = vadd.f32 %v1077_v1, %v1069_v0 }
0x1525   :  { %1559 = vtanh.f32 %v1079_v2 }
0x1526   :  { %v424_v5 = vpop.permute.xlu0 %423 }
0x1527   :  { %427 = vst.msk [vmem:[#allocation2] sm:$0xc] %vm426_vm3, %v424_v5 }
0x152a   :  { %v648_v6 = vpop.permute.xlu0 %647 }
0x152b   :  { %651 = vst.msk [vmem:[#allocation2] sm:$0xc0] %vm650_vm4, %v648_v6 }
0x152e   :  { %v976_v8 = vpop.permute.xlu0 %975 }
0x152f   :  { %v1560_v62 = vpop.eup %1559  ;;  %978 = vst.msk [vmem:[#allocation2 + $0x8] sm:$0x30] %vm538_vm5, %v976_v8 }
0x1530   :  { %1082 = vrot.lane.b32.xlu1 %v1560_v62, %s1572_s28 }
0x1534   :  { %535 = vrot.lane.b32.xlu1 %v1745_v26, %s1573_s3  ;;  %v1098_v26 = vld [vmem:[%s1863_s7 + $0x18] sm:$0xff] }
0x1535   :  { %v1484_v14 = vpack.c.bf16 %v1098_v26, %v1097_v13 }
0x1537   :  { %1485 = vmatprep.subr.bf16.mxu0 %v1484_v14 }
0x1538   :  { %864 = vrot.lane.b32.xlu1 %v1783_v25, %s1573_s3  ;;  %1487 = vmatpush3.bf16.msra.mxu0 %v1484_v14 }
0x15a2   :  { %v1083_v16 = vpop.permute.xlu1 %1082 }
0x15a3   :  { %v1085_v17 = vmul.f32 %v1558_v59, %v1083_v16 }
0x15a5   :  { %1087 = vrot.lane.b32.xlu1 %v1085_v17, %s1573_s3  ;;  %s1574_s3 = smov 96  }
0x15a6   :  { %v536_v4 = vpop.permute.xlu1 %535 }
0x15a7   :  { %539 = vst.msk [vmem:[#allocation2] sm:$0x30] %vm538_vm5, %v536_v4 }
0x15aa   :  { %v865_v19 = vpop.permute.xlu1 %864 }
0x15ab   :  { %867 = vst.msk [vmem:[#allocation2 + $0x8] sm:$0xc] %vm426_vm3, %v865_v19 }
0x15ae   :  { %v1091_v21 = vld [vmem:[#allocation2] sm:$0xff] }
0x15af   :  { %v1093_v22 = vadd.f32 %v1091_v21, %v1643_v7 }
0x15b1   :  { %1415 = vmatprep.mubr.msk.f32.mxu0 %vm45_vm0, %v1093_v22 }
0x1617   :  { %v1088_v23 = vpop.permute.xlu1 %1087 }
0x1618   :  { %1090 = vst.msk [vmem:[#allocation2 + $0xe] sm:$0x3] %vm317_vm2, %v1088_v23 }
0x161f   :  { %v1092_v24 = vld [vmem:[#allocation2 + $0x8] sm:$0xff] }
0x1620   :  { %v1094_v25 = vadd.f32 %v1092_v24, %v1656_v11 }
0x1622   :  { %1416 = vmatmul.mubr.msk.f32.vlgmr.msra.gmra.mrb[10].mxu0 %vm45_vm0, %v1094_v25 }
0x16f5   :  { %v1417_v28 = vpop.f32.mrb[10].mxu0 }
0x16f6   :  { %v1184_v29 = vadd.f32 %v1417_v28, %v1235_v27  ;;  %v1178_v30 = vpop.f32.mrb[11].mxu0 }
0x16f7   :  { %v1179_v31 = vadd.f32 %v1235_v27, %v1178_v30 }
0x16f8   :  { %1203 = vrot.lane.b32.xlu1 %v1184_v29, %s1574_s3  ;;  %v1239_v7 = vmul.f32 -1.442695, %v1184_v29 }
0x16f9   :  { %1201 = vrot.lane.b32.xlu0 %v1179_v31, %s1574_s3  ;;  %v1238_v32 = vmul.f32 -1.442695, %v1179_v31 }
0x16fa   :  { %1561 = vpow2.f32 %v1239_v7 }
0x16fb   :  { %1563 = vpow2.f32 %v1238_v32 }
0x1704   :  { %v1562_v33 = vpop.eup %1561 }
0x1705   :  { %v1564_v34 = vpop.eup %1563  ;;  %v1194_v11 = vadd.f32 1.0, %v1562_v33 }
0x1706   :  { %v1193_v35 = vadd.f32 1.0, %v1564_v34 }
0x1707   :  { %1565 = vrcp.f32 %v1194_v11 }
0x1708   :  { %1567 = vrcp.f32 %v1193_v35 }
0x1711   :  { %v1566_v36 = vpop.eup %1565 }
0x1712   :  { %v1568_v38 = vpop.eup %1567 }
0x176a   :  { %v1204_v37 = vpop.permute.xlu1 %1203 }
0x176b   :  { %v1208_v39 = vmul.f32 %v1566_v36, %v1204_v37  ;;  %v1202_v40 = vpop.permute.xlu0 %1201 }
0x176c   :  { %v1207_v41 = vmul.f32 %v1568_v38, %v1202_v40 }
0x176d   :  { %1210 = vst.msk [vmem:[%s1865_s9 + $0x8] sm:$0xff] %vm45_vm0, %v1208_v39 }
0x176e   :  { %1209 = vst.msk [vmem:[%s1865_s9] sm:$0xff] %vm45_vm0, %v1207_v41 }

// kernel: run.5
= control target key start
LH: loop header
LB: loop body
LE: loop exit
PB: predicated region body
PF: predicated region fallthrough
CT: control target
= control target key end

     0   :  { %s2130_s0 = inlined_call_operand.vmem [shape: f32[16,32], index: 0, kind: input, shape index: {}]   ;;  %s2131_s1 = inlined_call_operand.vmem [shape: f32[32,32], index: 1, kind: input, shape index: {}]   ;;  %s2132_s2 = inlined_call_operand.vmem [shape: f32[1,32], index: 2, kind: input, shape index: {}]   ;;  %s2133_s3 = inlined_call_operand.vmem [shape: f32[32,64], index: 3, kind: input, shape index: {}]   ;;  %s2134_s4 = inlined_call_operand.vmem [shape: f32[1,64], index: 4, kind: input, shape index: {}]   ;;  %s2135_s5 = inlined_call_operand.vmem [shape: f32[32,32], index: 5, kind: input, shape index: {}]   ;;  %s2136_s6 = inlined_call_operand.vmem [shape: f32[1,32], index: 6, kind: input, shape index: {}]   ;;  %s2137_s7 = inlined_call_operand.vmem [shape: f32[14,14], index: 7, kind: input, shape index: {}]   ;;  %s2138_s8 = inlined_call_operand.vmem [shape: f32[32,4], index: 8, kind: input, shape index: {}]   ;;  %s2139_s9 = inlined_call_operand.vmem [shape: f32[4,32], index: 9, kind: input, shape index: {}]   ;;  %s2140_s10 = inlined_call_operand.vmem [shape: f32[32,64], index: 10, kind: input, shape index: {}]   ;;  %s2141_s11 = inlined_call_operand.vmem [shape: f32[1,64], index: 11, kind: input, shape index: {}]   ;;  %s2142_s12 = inlined_call_operand.vmem [shape: f32[32,32], index: 12, kind: input, shape index: {}]   ;;  %s2143_s13 = inlined_call_operand.vmem [shape: f32[1,32], index: 13, kind: input, shape index: {}]   ;;  %s2144_s14 = inlined_call_operand.vmem [shape: f32[32,32], index: 14, kind: input, shape index: {}]   ;;  %s2145_s15 = inlined_call_operand.vmem [shape: f32[1,32], index: 15, kind: input, shape index: {}]   ;;  %s2146_s16 = inlined_call_operand.vmem [shape: f32[32,64], index: 16, kind: input, shape index: {}]   ;;  %s2147_s17 = inlined_call_operand.vmem [shape: f32[1,64], index: 17, kind: input, shape index: {}]   ;;  %s2148_s18 = inlined_call_operand.vmem [shape: f32[32,64], index: 18, kind: input, shape index: {}]   ;;  %s2149_s19 = inlined_call_operand.vmem [shape: f32[1,64], index: 19, kind: input, shape index: {}]   ;;  %s2150_s20 = inlined_call_operand.vmem [shape: f32[32,4], index: 20, kind: input, shape index: {}]   ;;  %s2151_s21 = inlined_call_operand.vmem [shape: f32[1,4], index: 21, kind: input, shape index: {}]   ;;  %s2152_s22 = inlined_call_operand.hbm [shape: f32[2,4], index: 22, kind: output, shape index: {}]  }
   0x1   :  { %2157 = sst [smem:[#allocation5_spill]] %s2130_s0 }
   0x2   :  { %2158 = sst [smem:[#allocation6_spill]] %s2131_s1 }
   0x3   :  { %2159 = sst [smem:[#allocation7_spill]] %s2132_s2 }
   0x4   :  { %2160 = sst [smem:[#allocation8_spill]] %s2133_s3 }
   0x5   :  { %2161 = sst [smem:[#allocation9_spill]] %s2134_s4 }
   0x6   :  { %2162 = sst [smem:[#allocation10_spill]] %s2135_s5 }
   0x7   :  { %2163 = sst [smem:[#allocation11_spill]] %s2136_s6 }
   0x8   :  { %s2164_s29 = sld [smem:[#allocation8_spill]]  ;;  %s2165_s25 = sld [smem:[#allocation5_spill]]  ;;  %vm89_vm0 = vcmask 261120   ;;  %v1741_v6 = vmov 0.0|0.0  }
   0x9   :  { %1615 = vmatprep.subr.bf16.mxu0 %v1741_v6  ;;  %s2166_s27 = sld [smem:[#allocation6_spill]] }
   0xe   :  { %v162_v0 = vld [vmem:[%s2164_s29] sm:$0xff]  ;;  %v163_v1 = vld [vmem:[%s2164_s29 + $0x8] sm:$0xff]  ;;  %v164_v2 = vld [vmem:[%s2164_s29 + $0x10] sm:$0xff] }
   0xf   :  { %v1621_v3 = vpack.c.bf16 %v163_v1, %v162_v0  ;;  %v165_v4 = vld [vmem:[%s2164_s29 + $0x18] sm:$0xff]  ;;  %v72_v5 = vld [vmem:[%s2165_s25] sm:$0xff]  ;;  %v77_v10 = vld [vmem:[%s2166_s27 + $0x8] sm:$0xff] }
  0x10   :  { %v1625_v7 = vpack.c.bf16 %v165_v4, %v164_v2  ;;  %v74_v8 = vmul.f32 0.999995, %v72_v5  ;;  %v76_v9 = vld [vmem:[%s2166_s27] sm:$0xff] }
  0x11   :  { %1622 = vmatprep.subr.bf16.mxu1 %v1621_v3  ;;  %v1616_v11 = vpack.c.bf16 %v77_v10, %v76_v9 }
  0x12   :  { %27 = vsyncpa [#allocation3], 0  ;;  %1624 = vmatpush3.bf16.msra.mxu1 %v1621_v3  ;;  %1496 = vmatprep.mubr.msk.f32.mxu1 %vm89_vm0, %v74_v8  ;;  %v1888_v12 = vld [vmem:[%s2165_s25 + $0x8] sm:$0xff]  ;;  %v78_v14 = vld [vmem:[%s2166_s27 + $0x10] sm:$0xff]  ;;  %vm1742_vm1 = vmmov 0   ;;  %v1743_v18 = vmov 0.0   ;;  %v346_v30 = vlaneseq }
  0x13   :  { %1626 = vmatprep.subr.bf16.mxu1 %v1625_v7  ;;  %1617 = vmatpush3.bf16.msra.mxu0 %v1616_v11  ;;  %v1892_v13 = vmul.f32 0.999995, %v1888_v12  ;;  %v79_v15 = vld [vmem:[%s2166_s27 + $0x18] sm:$0xff]  ;;  %v253_v19 = vld [vmem:[%s2137_s7] sm:$0xff]  ;;  %vm255_vm2 = vcmask 113664   ;;  %v342_v21 = vld [vmem:[%s2138_s8 + $0x8] sm:$0xff] }
  0x14   :  { %1618 = vmatprep.subr.bf16.mxu0 %v1741_v6  ;;  %v1619_v16 = vpack.c.bf16 %v79_v15, %v78_v14  ;;  %1485 = vmatprep.mubr.msk.f32.mxu0 %vm1742_vm1, %v1743_v18  ;;  %v341_v20 = vld [vmem:[%s2138_s8] sm:$0xff]  ;;  %s2167_s28 = sld [smem:[#allocation9_spill]]  ;;  %vm262_vm3 = vcmask 1045504   ;;  %vm1744_vm4 = vmmov 1   ;;  %v254_v29 = vld [vmem:[%s2137_s7 + $0x8] sm:$0x3f] }
  0x15   :  { %v88_v17 = vrot.slane %v1892_v13, 6  ;;  %v1921_v22 = vpack.c.bf16 %v342_v21, %v341_v20  ;;  %vm1630_vm5 = vmpackc.low %vm262_vm3, %vm1744_vm4  ;;  %v347_v31 = vshrl.u32 %v346_v30, 7  ;;  %s2168_s23 = sld [smem:[#allocation7_spill]]  ;;  %v343_v38 = vld [vmem:[%s2138_s8 + $0x10] sm:$0xff]  ;;  %v344_v39 = vld [vmem:[%s2138_s8 + $0x18] sm:$0xff]  ;;  %vm544_vm6 = vcmask 1040384  }
  0x16   :  { %1628 = vmatpush3.bf16.msra.mxu1 %v1625_v7  ;;  %v1639_v40 = vpack.c.bf16 %v344_v39, %v343_v38  ;;  %s1745_s6 = smov 96   ;;  %v345_v54 = vld [vmem:[%s2139_s9] sm:$0xf]  ;;  %vm449_vm7 = vcmask 1043456   ;;  %vm425_vm8 = vcmask 30720   ;;  %vm445_vm9 = vcmask 31744  }
  0x17   :  { %1635 = vmatprep.subr.bf16.mxu1 %v1741_v6  ;;  %1620 = vmatpush3.bf16.msra.mxu0 %v1619_v16  ;;  %v538_v33 = vsub.s32 1, %v347_v31  ;;  %v348_v41 = vsub.s32 0, %v347_v31  ;;  %s2169_s2 = sld [smem:[#allocation10_spill]]  ;;  %vm528_vm10 = vcmask 260096   ;;  %vm1365_vm12 = vcmask 25600  }
  0x19   :  { %1497 = vmatmul.mubr.msk.f32.vlgmr.msra.gmra.mrb[0].mxu1 %vm89_vm0, %v1892_v13  ;;  %v1003_v13 = vld [vmem:[%s2144_s14 + $0x10] sm:$0xff] }
  0x1a   :  { %1514 = vmatprep.mubr.msk.f32.mxu1 %vm1742_vm1, %v1743_v18  ;;  %1486 = vmatmul.mubr.msk.f32.vlgmr.msra.gmra.mrb[0].mxu0 %vm89_vm0, %v88_v17  ;;  %v1383_v23 = vld [vmem:[%s2167_s28] ss:$0 sm:$0xff] }
  0x1b   :  { %1503 = vmatprep.mubr.msk.f32.mxu0 %vm255_vm2, %v253_v19  ;;  %1637 = vmatpush3.bf16.msra.mxu1 %v1921_v22  ;;  %v1381_v32 = vld [vmem:[%s2168_s23] ss:$0 sm:$0xff] }
  0x1c   :  { %1638 = vmatprep.subr.bf16.mxu1 %v1741_v6 }
  0x1f   :  { %1640 = vmatpush3.bf16.msra.mxu1 %v1639_v40 }
  0x20   :  { %1533 = vmatprep.subr.mxu1 %v1743_v18 }
  0xec   :  { %v1498_v24 = vpop.f32.mrb[0].mxu1 }
  0xed   :  { %v250_v25 = vadd.f32 %v1498_v24, %v1383_v23  ;;  %v244_v26 = vpop.f32.mrb[1].mxu1  ;;  %v158_v34 = vpop.f32.mrb[0].mxu0 }
  0xee   :  { %v245_v27 = vadd.f32 %v1383_v23, %v244_v26  ;;  %v159_v35 = vadd.f32 %v1381_v32, %v158_v34  ;;  %v1487_v36 = vpop.f32.mrb[1].mxu0 }
  0xf0   :  { %v1629_v28 = vpack.c.bf16 %v250_v25, %v245_v27  ;;  %v539_v37 = vrot.slane %v159_v35, %v538_v33  ;;  %v349_v42 = vrot.slane %v159_v35, %v348_v41 }
  0xf2   :  { %1631 = vmatprep.subr.msk.bf16.mxu0 %vm1630_vm5, %v1629_v28 }
  0xf3   :  { %1634 = vmatpush3.bf16.msk.msra.mxu0 %vm1630_vm5, %v1629_v28 }
  0xf4   :  { %1517 = vmatprep.subr.mxu0 %v1743_v18 }
  0xf6   :  { %1504 = vmatmul.mubr.msk.f32.vlgmr.msra.gmra.mrb[2].mxu0 %vm255_vm2, %v254_v29 }
  0xf7   :  { %1519 = vmatprep.mubr.msk.f32.mxu0 %vm1742_vm1, %v1743_v18  ;;  %1518 = vmatpush3.msk.msra.mxu0 %vm449_vm7, %v345_v54 }
  0xf8   :  { %1641 = vmatprep.subr.bf16.mxu0 %v1741_v6 }
 0x1c9   :  { %v1505_v43 = vpop.f32.mrb[2].mxu0 }
 0x1ca   :  { %v541_v44 = vmul.f32 %v1505_v43, %v539_v37  ;;  %v715_v45 = vrot.slane %v1505_v43, 7  ;;  %v332_v46 = vpop.f32.mrb[3].mxu0  ;;  %v730_v43 = vld [vmem:[%s2169_s2 + $0x8] sm:$0xff] }
 0x1cb   :  { %v350_v47 = vmul.f32 %v349_v42, %v332_v46  ;;  %v540_v48 = vmul.f32 %v539_v37, %v332_v46  ;;  %v714_v49 = vrot.slane %v332_v46, 7  ;;  %524 = vrot.lane.b32.xlu0 %v332_v46, %s1745_s6  ;;  %v729_v42 = vld [vmem:[%s2169_s2] sm:$0xff]  ;;  %v732_v46 = vld [vmem:[%s2169_s2 + $0x18] sm:$0xff] }
 0x1cc   :  { %v546_v50 = vrot.slane %v541_v44, 7  ;;  %v1648_v44 = vpack.c.bf16 %v730_v43, %v729_v42  ;;  %v1085_v42 = vld [vmem:[%s2146_s16] sm:$0xff]  ;;  %v1086_v43 = vld [vmem:[%s2146_s16 + $0x8] sm:$0xff] }
 0x1cd   :  { %v545_v51 = vrot.slane %v540_v48, 7  ;;  %1515 = vmatmul.mubr.msk.f32.vlgmr.msra.gmra.mrb[2].mxu1 %vm89_vm0, %v350_v47  ;;  %v716_v52 = vsel %vm544_vm6, %v714_v49, %v715_v45  ;;  %v731_v45 = vld [vmem:[%s2169_s2 + $0x10] sm:$0xff]  ;;  %v813_v48 = vld [vmem:[%s2140_s10] sm:$0xff]  ;;  %v814_v49 = vld [vmem:[%s2140_s10 + $0x8] sm:$0xff]  ;;  %s2170_s2 = sld [smem:[#allocation11_spill]] }
 0x1ce   :  { %1535 = vmatprep.mubr.msk.f32.mxu1 %vm1742_vm1, %v1743_v18  ;;  %1534 = vmatpush3.msk.msra.mxu1 %vm449_vm7, %v345_v54  ;;  %v1651_v47 = vpack.c.bf16 %v732_v46, %v731_v45  ;;  %v1400_v45 = vld [vmem:[%s2143_s13] ss:$0 sm:$0xff] }
 0x1cf   :  { %717 = vrot.lane.b32.xlu0 %v716_v52, %s1745_s6  ;;  %v547_v53 = vsel %vm544_vm6, %v545_v51, %v546_v50  ;;  %1647 = vmatprep.subr.bf16.mxu1 %v1741_v6  ;;  %v1654_v50 = vpack.c.bf16 %v814_v49, %v813_v48 }
 0x23d   :  { %v525_v51 = vpop.permute.xlu0 %524 }
 0x2a0   :  { %v420_v55 = vpop.f32.mrb[2].mxu1 }
 0x2a1   :  { %v424_v56 = vmul.f32 0.35355338, %v420_v55  ;;  %v1516_v57 = vpop.f32.mrb[3].mxu1 }
 0x2a3   :  { %v426_v58 = vsel %vm425_vm8, %v424_v56, -inf }
 0x2a4   :  { %v427_v59 = vrot.slane %v426_v58, 4 }
 0x2a6   :  { %v428_v60 = vmax.f32 %v426_v58, %v427_v59 }
 0x2a8   :  { %v429_v61 = vrot.slane %v428_v60, 2 }
 0x2aa   :  { %v430_v62 = vmax.f32 %v428_v60, %v429_v61 }
 0x2ac   :  { %v431_v63 = vrot.slane %v430_v62, 1 }
 0x2ae   :  { %v432_v0 = vmax.f32 %v430_v62, %v431_v63 }
 0x2b0   :  { %v433_v1 = vsub.f32 %v424_v56, %v432_v0  ;;  %v718_v56 = vpop.permute.xlu0 %717 }
 0x2b2   :  { %v434_v2 = vmul.f32 1.442695, %v433_v1 }
 0x2b4   :  { %1695 = vpow2.f32 %v434_v2 }
 0x2be   :  { %v1696_v3 = vpop.eup %1695 }
 0x2bf   :  { %v436_v4 = vsel %vm425_vm8, %v1696_v3, 0.0 }
 0x2c0   :  { %v437_v5 = vrot.slane %v436_v4, 4 }
 0x2c2   :  { %v438_v7 = vadd.f32 %v437_v5, %v436_v4 }
 0x2c4   :  { %v439_v8 = vrot.slane %v438_v7, 2 }
 0x2c6   :  { %v440_v9 = vadd.f32 %v439_v8, %v438_v7 }
 0x2c8   :  { %v441_v10 = vrot.slane %v440_v9, 1 }
 0x2ca   :  { %v442_v11 = vadd.f32 %v441_v10, %v440_v9  ;;  %v815_v9 = vld [vmem:[%s2140_s10 + $0x10] sm:$0xff]  ;;  %v816_v10 = vld [vmem:[%s2140_s10 + $0x18] sm:$0xff] }
 0x2cc   :  { %1697 = vrcp.f32 %v442_v11  ;;  %v1657_v11 = vpack.c.bf16 %v816_v10, %v815_v9 }
 0x2d6   :  { %v1698_v14 = vpop.eup %1697 }
 0x2d7   :  { %v444_v15 = vmul.f32 %v1698_v14, %v1696_v3  ;;  %v1395_v14 = vld [vmem:[%s2170_s2] ss:$0 sm:$0xff] }
 0x2d9   :  { %1520 = vmatmul.mubr.msk.f32.vlgmr.msra.gmra.mrb[4].mxu0 %vm445_vm9, %v444_v15 }
 0x2da   :  { %1643 = vmatpush3.bf16.msra.mxu0 %v1921_v22  ;;  %1530 = vmatprep.mubr.msk.f32.mxu0 %vm1742_vm1, %v1743_v18 }
 0x2db   :  { %1644 = vmatprep.subr.bf16.mxu0 %v1741_v6 }
 0x2de   :  { %1646 = vmatpush3.bf16.msra.mxu0 %v1639_v40 }
 0x2df   :  { %1653 = vmatprep.subr.bf16.mxu0 %v1741_v6 }
 0x2e1   :  { %1531 = vmatmul.mubr.msk.f32.vlgmr.msra.gmra.mrb[6].mxu0 %vm89_vm0, %v547_v53 }
 0x2e2   :  { %1557 = vmatprep.mubr.msk.f32.mxu0 %vm1742_vm1, %v1743_v18  ;;  %1655 = vmatpush3.bf16.msra.mxu0 %v1654_v50 }
 0x2e3   :  { %1656 = vmatprep.subr.bf16.mxu0 %v1741_v6 }
 0x2e6   :  { %1658 = vmatpush3.bf16.msra.mxu0 %v1657_v11 }
 0x2e7   :  { %1665 = vmatprep.subr.bf16.mxu0 %v1741_v6 }
 0x3ac   :  { %v519_v16 = vpop.f32.mrb[4].mxu0 }
 0x3ad   :  { %v1521_v19 = vpop.f32.mrb[5].mxu0  ;;  %v527_v52 = vmul.f32 %v525_v51, %v519_v16 }
 0x3af   :  { %v529_v53 = vsel %vm528_vm10, %v527_v52, 0.0 }
 0x3b0   :  { %v530_v54 = vrot.slane %v529_v53, 4 }
 0x3b2   :  { %v531_v55 = vadd.f32 %v530_v54, %v529_v53  ;;  %v1087_v54 = vld [vmem:[%s2146_s16 + $0x10] sm:$0xff] }
 0x3b4   :  { %v616_v20 = vpop.f32.mrb[6].mxu0  ;;  %v532_v60 = vrot.slane %v531_v55, 2 }
 0x3b5   :  { %v620_v21 = vmul.f32 0.35355338, %v616_v20  ;;  %v1532_v23 = vpop.f32.mrb[7].mxu0  ;;  %v911_v20 = vld [vmem:[%s2142_s12] sm:$0xff] }
 0x3b6   :  { %v533_v63 = vadd.f32 %v532_v60, %v531_v55  ;;  %v1088_v55 = vld [vmem:[%s2146_s16 + $0x18] sm:$0xff] }
 0x3b7   :  { %v621_v22 = vsel %vm425_vm8, %v620_v21, -inf }
 0x3b8   :  { %v622_v24 = vrot.slane %v621_v22, 4  ;;  %v534_v2 = vrot.slane %v533_v63, 1 }
 0x3ba   :  { %v623_v25 = vmax.f32 %v621_v22, %v622_v24  ;;  %v535_v5 = vadd.f32 %v534_v2, %v533_v63  ;;  %v913_v22 = vld [vmem:[%s2142_s12 + $0x10] sm:$0xff]  ;;  %v914_v24 = vld [vmem:[%s2142_s12 + $0x18] sm:$0xff]  ;;  %v1405_v2 = vld [vmem:[%s2147_s17] ss:$0 sm:$0xff] }
 0x3bc   :  { %v624_v26 = vrot.slane %v623_v25, 2 }
 0x3be   :  { %v625_v27 = vmax.f32 %v623_v25, %v624_v26  ;;  %v1663_v25 = vpack.c.bf16 %v914_v24, %v913_v22  ;;  %v1397_v26 = vld [vmem:[%s2141_s11] ss:$0 sm:$0xff]  ;;  %v1284_v22 = vld [vmem:[%s2150_s20 + $0x18] sm:$0xff] }
 0x3c0   :  { %v626_v28 = vrot.slane %v625_v27, 1 }
 0x3c2   :  { %v627_v29 = vmax.f32 %v625_v27, %v626_v28 }
 0x3c4   :  { %v628_v30 = vsub.f32 %v620_v21, %v627_v29  ;;  %v912_v21 = vld [vmem:[%s2142_s12 + $0x8] sm:$0xff] }
 0x3c5   :  { %v1660_v23 = vpack.c.bf16 %v912_v21, %v911_v20  ;;  %v1282_v20 = vld [vmem:[%s2150_s20 + $0x8] sm:$0xff] }
 0x3c6   :  { %v629_v31 = vmul.f32 1.442695, %v628_v30 }
 0x3c8   :  { %1699 = vpow2.f32 %v629_v31 }
 0x3d2   :  { %v1700_v32 = vpop.eup %1699 }
 0x3d3   :  { %v631_v33 = vsel %vm425_vm8, %v1700_v32, 0.0 }
 0x3d4   :  { %v632_v34 = vrot.slane %v631_v33, 4 }
 0x3d6   :  { %v633_v35 = vadd.f32 %v632_v34, %v631_v33 }
 0x3d8   :  { %v634_v36 = vrot.slane %v633_v35, 2 }
 0x3da   :  { %v635_v37 = vadd.f32 %v634_v36, %v633_v35 }
 0x3dc   :  { %v636_v38 = vrot.slane %v635_v37, 1 }
 0x3de   :  { %v637_v39 = vadd.f32 %v636_v38, %v635_v37  ;;  %v1001_v38 = vld [vmem:[%s2144_s14] sm:$0xff] }
 0x3e0   :  { %1701 = vrcp.f32 %v637_v39  ;;  %v1002_v39 = vld [vmem:[%s2144_s14 + $0x8] sm:$0xff] }
 0x3ea   :  { %v1702_v40 = vpop.eup %1701 }
 0x3eb   :  { %v639_v41 = vmul.f32 %v1702_v40, %v1700_v32  ;;  %v1666_v40 = vpack.c.bf16 %v1002_v39, %v1001_v38 }
 0x3ed   :  { %1536 = vmatmul.mubr.msk.f32.vlgmr.msra.gmra.mrb[4].mxu1 %vm445_vm9, %v639_v41 }
 0x3ee   :  { %1546 = vmatprep.mubr.msk.f32.mxu1 %vm1742_vm1, %v1743_v18  ;;  %1649 = vmatpush3.bf16.msra.mxu1 %v1648_v44  ;;  %v1672_v44 = vpack.c.bf16 %v1086_v43, %v1085_v42 }
 0x3ef   :  { %1650 = vmatprep.subr.bf16.mxu1 %v1741_v6 }
 0x3f2   :  { %1652 = vmatpush3.bf16.msra.mxu1 %v1651_v47 }
 0x3f3   :  { %1659 = vmatprep.subr.bf16.mxu1 %v1741_v6 }
 0x4c0   :  { %v709_v57 = vpop.f32.mrb[4].mxu1 }
 0x4c1   :  { %v720_v58 = vmul.f32 %v718_v56, %v709_v57  ;;  %v1537_v59 = vpop.f32.mrb[5].mxu1  ;;  %v1675_v56 = vpack.c.bf16 %v1088_v55, %v1087_v54  ;;  %v1403_v57 = vld [vmem:[%s2145_s15] ss:$0 sm:$0xff] }
 0x4c3   :  { %v721_v61 = vsel %vm528_vm10, %v720_v58, 0.0 }
 0x4c4   :  { %v722_v62 = vrot.slane %v721_v61, 4 }
 0x4c6   :  { %v723_v0 = vadd.f32 %v722_v62, %v721_v61  ;;  %v1182_v61 = vld [vmem:[%s2148_s18] sm:$0xff]  ;;  %v1183_v62 = vld [vmem:[%s2148_s18 + $0x8] sm:$0xff] }
 0x4c7   :  { %v1678_v63 = vpack.c.bf16 %v1183_v62, %v1182_v61 }
 0x4c8   :  { %v724_v1 = vrot.slane %v723_v0, 2 }
 0x4ca   :  { %v725_v3 = vadd.f32 %v724_v1, %v723_v0  ;;  %v1184_v0 = vld [vmem:[%s2148_s18 + $0x10] sm:$0xff] }
 0x4cc   :  { %v726_v4 = vrot.slane %v725_v3, 1 }
 0x4ce   :  { %v727_v7 = vadd.f32 %v726_v4, %v725_v3 }
 0x4d0   :  { %v728_v8 = vsel %vm544_vm6, %v535_v5, %v727_v7 }
 0x4d1   :  { %1547 = vmatmul.mubr.msk.f32.vlgmr.msra.gmra.mrb[6].mxu1 %vm89_vm0, %v728_v8 }
 0x4d2   :  { %1568 = vmatprep.mubr.msk.f32.mxu1 %vm1742_vm1, %v1743_v18  ;;  %1661 = vmatpush3.bf16.msra.mxu1 %v1660_v23  ;;  %v1283_v23 = vld [vmem:[%s2150_s20 + $0x10] sm:$0xff] }
 0x4d3   :  { %1662 = vmatprep.subr.bf16.mxu1 %v1741_v6  ;;  %v1687_v24 = vpack.c.bf16 %v1284_v22, %v1283_v23 }
 0x4d6   :  { %1664 = vmatpush3.bf16.msra.mxu1 %v1663_v25  ;;  %v1408_v25 = vld [vmem:[%s2149_s19] ss:$0 sm:$0xff] }
 0x4d7   :  { %1671 = vmatprep.subr.bf16.mxu1 %v1741_v6 }
 0x5a4   :  { %v809_v15 = vpop.f32.mrb[6].mxu1 }
 0x5a5   :  { %v810_v16 = vadd.f32 %v1395_v14, %v809_v15  ;;  %v1548_v19 = vpop.f32.mrb[7].mxu1 }
 0x5a6   :  { %v1281_v19 = vld [vmem:[%s2150_s20] sm:$0xff] }
 0x5a7   :  { %1558 = vmatmul.mubr.msk.f32.vlgmr.msra.gmra.mrb[8].mxu0 %vm89_vm0, %v810_v16  ;;  %v1684_v21 = vpack.c.bf16 %v1282_v20, %v1281_v19 }
 0x5a8   :  { %1579 = vmatprep.mubr.msk.f32.mxu0 %vm1742_vm1, %v1743_v18  ;;  %1667 = vmatpush3.bf16.msra.mxu0 %v1666_v40 }
 0x5a9   :  { %1668 = vmatprep.subr.bf16.mxu0 %v1741_v6 }
 0x67a   :  { %v893_v27 = vpop.f32.mrb[8].mxu0 }
 0x67b   :  { %v894_v28 = vadd.f32 %v1397_v26, %v893_v27  ;;  %v1559_v29 = vpop.f32.mrb[9].mxu0 }
 0x67d   :  { %904 = vrot.lane.b32.xlu1 %v894_v28, %s1745_s6  ;;  %v1399_v30 = vmul.f32 -1.442695, %v894_v28 }
 0x67f   :  { %1703 = vpow2.f32 %v1399_v30 }
 0x689   :  { %v1704_v31 = vpop.eup %1703 }
 0x68a   :  { %v900_v32 = vadd.f32 1.0, %v1704_v31  ;;  %v1278_v31 = vrot.slane %v1888_v12, 6 }
 0x68c   :  { %1705 = vrcp.f32 %v900_v32 }
 0x696   :  { %v1706_v33 = vpop.eup %1705 }
 0x6ef   :  { %v905_v34 = vpop.permute.xlu1 %904 }
 0x6f0   :  { %v907_v35 = vmul.f32 %v1706_v33, %v905_v34 }
 0x6f2   :  { %v909_v36 = vadd.f32 %v907_v35, %v88_v17  ;;  %v1004_v17 = vld [vmem:[%s2144_s14 + $0x18] sm:$0xff]  ;;  %s1746_s14 = smov [#allocation2]  }
 0x6f3   :  { %v1669_v41 = vpack.c.bf16 %v1004_v17, %v1003_v13  ;;  %s1373_s29 = sshll.u32 %s1746_s14, 4  ;;  %s1374_s29 = int_to_ptr.vmem [resolvable:$true] %s1373_s29 }
 0x6f4   :  { %v2031_v37 = vmul.f32 0.999995, %v909_v36  ;;  %v1411_v36 = vld [vmem:[%s2151_s21] ss:$0 sm:$0xff]  ;;  %p1722_p1 = scmp.lt.s32.totalorder %s1374_s29, %s1374_s29 }
 0x6f5   :  { %1670 = vmatpush3.bf16.msra.mxu0 %v1669_v41 }
 0x6f6   :  { %1569 = vmatmul.mubr.msk.f32.vlgmr.msra.gmra.mrb[8].mxu1 %vm89_vm0, %v2031_v37  ;;  %1677 = vmatprep.subr.bf16.mxu0 %v1741_v6 }
 0x6f7   :  { %1590 = vmatprep.mubr.msk.f32.mxu1 %vm1742_vm1, %v1743_v18  ;;  %1673 = vmatpush3.bf16.msra.mxu1 %v1672_v44 }
 0x6f8   :  { %1674 = vmatprep.subr.bf16.mxu1 %v1741_v6 }
 0x6fb   :  { %1676 = vmatpush3.bf16.msra.mxu1 %v1675_v56 }
 0x6fc   :  { %1683 = vmatprep.subr.bf16.mxu1 %v1741_v6 }
 0x7c9   :  { %v991_v46 = vpop.f32.mrb[8].mxu1 }
 0x7ca   :  { %v992_v47 = vadd.f32 %v1400_v45, %v991_v46  ;;  %v1570_v48 = vpop.f32.mrb[9].mxu1 }
 0x7cc   :  { %v996_v49 = vmin.f32 %v992_v47, 0.0  ;;  %vm995_vm11 = vcmp.gt.f32.partialorder %v992_v47, 0.0 }
 0x7ce   :  { %v997_v50 = vmul.f32 1.442695, %v996_v49 }
 0x7d0   :  { %1707 = vpow2.f32 %v997_v50 }
 0x7da   :  { %v1708_v51 = vpop.eup %1707 }
 0x7db   :  { %v1402_v52 = vadd.f32 -1.0, %v1708_v51 }
 0x7dd   :  { %v1000_v53 = vsel %vm995_vm11, %v992_v47, %v1402_v52 }
 0x7de   :  { %1580 = vmatmul.mubr.msk.f32.vlgmr.msra.gmra.mrb[10].mxu0 %vm89_vm0, %v1000_v53 }
 0x7df   :  { %1601 = vmatprep.mubr.msk.f32.mxu0 %vm1742_vm1, %v1743_v18  ;;  %1679 = vmatpush3.bf16.msra.mxu0 %v1678_v63 }
 0x7e0   :  { %1680 = vmatprep.subr.bf16.mxu0 %v1741_v6 }
 0x8b1   :  { %v1081_v58 = vpop.f32.mrb[10].mxu0 }
 0x8b2   :  { %v1082_v59 = vadd.f32 %v1403_v57, %v1081_v58  ;;  %v1581_v60 = vpop.f32.mrb[11].mxu0 }
 0x8b4   :  { %1591 = vmatmul.mubr.msk.f32.vlgmr.msra.gmra.mrb[10].mxu1 %vm89_vm0, %v1082_v59 }
 0x8b5   :  { %1612 = vmatprep.mubr.msk.f32.mxu1 %vm1742_vm1, %v1743_v18  ;;  %v1185_v18 = vld [vmem:[%s2148_s18 + $0x18] sm:$0xff]  ;;  %1685 = vmatpush3.bf16.msra.mxu1 %v1684_v21 }
 0x8b6   :  { %v1681_v1 = vpack.c.bf16 %v1185_v18, %v1184_v0  ;;  %1686 = vmatprep.subr.bf16.mxu1 %v1741_v6 }
 0x8b8   :  { %1682 = vmatpush3.bf16.msra.mxu0 %v1681_v1 }
 0x8b9   :  { %1688 = vmatpush3.bf16.msra.mxu1 %v1687_v24 }
 0x987   :  { %v1165_v3 = vpop.f32.mrb[10].mxu1 }
 0x988   :  { %v1166_v4 = vadd.f32 %v1405_v2, %v1165_v3  ;;  %v1592_v5 = vpop.f32.mrb[11].mxu1 }
 0x98a   :  { %1176 = vrot.lane.b32.xlu1 %v1166_v4, %s1745_s6  ;;  %v1407_v7 = vmul.f32 -1.442695, %v1166_v4 }
 0x98c   :  { %1709 = vpow2.f32 %v1407_v7 }
 0x996   :  { %v1710_v8 = vpop.eup %1709 }
 0x997   :  { %v1172_v9 = vadd.f32 1.0, %v1710_v8 }
 0x999   :  { %1711 = vrcp.f32 %v1172_v9 }
 0x9a3   :  { %v1712_v10 = vpop.eup %1711 }
 0x9fc   :  { %v1177_v11 = vpop.permute.xlu1 %1176 }
 0x9fd   :  { %v1179_v14 = vmul.f32 %v1712_v10, %v1177_v11 }
 0x9ff   :  { %v1180_v15 = vadd.f32 %v1179_v14, %v2031_v37 }
 0xa01   :  { %v1181_v16 = vmul.f32 0.999995, %v1180_v15 }
 0xa03   :  { %1602 = vmatmul.mubr.msk.f32.vlgmr.msra.gmra.mrb[12].mxu0 %vm89_vm0, %v1181_v16 }
 0xad6   :  { %v1262_v26 = vpop.f32.mrb[12].mxu0 }
 0xad7   :  { %v1263_v27 = vadd.f32 %v1408_v25, %v1262_v26  ;;  %v1603_v28 = vpop.f32.mrb[13].mxu0 }
 0xad9   :  { %1273 = vrot.lane.b32.xlu0 %v1263_v27, %s1745_s6  ;;  %v1410_v6 = vmul.f32 -1.442695, %v1263_v27  ;;  %s1717_s6 = scalar_lea.vmem %s1374_s29, 32 }
 0xada   :  { %p1718_p0 = scmp.ne.s32.totalorder %s1374_s29, %s1717_s6  ;;  %p1723_p2 = scmp.lt.s32.totalorder %s1717_s6, %s1717_s6 }
 0xadb   :  { %1713 = vpow2.f32 %v1410_v6 }
 0xadc   :  { %p1724_p3 = por %p1723_p2, %p1722_p1 }
 0xade   :  { %p1725_p4 = pnand %p1724_p3, %p1718_p0 }
 0xae5   :  { %v1714_v29 = vpop.eup %1713 }
 0xae6   :  { %v1269_v30 = vadd.f32 1.0, %v1714_v29 }
 0xae8   :  { %1715 = vrcp.f32 %v1269_v30 }
 0xaf2   :  { %v1716_v32 = vpop.eup %1715 }
 0xb4b   :  { %v1274_v33 = vpop.permute.xlu0 %1273 }
 0xb4c   :  { %v1276_v34 = vmul.f32 %v1716_v32, %v1274_v33 }
 0xb4e   :  { %v1280_v35 = vadd.f32 %v1278_v31, %v1276_v34 }
 0xb50   :  { %1613 = vmatmul.mubr.msk.f32.vlgmr.msra.gmra.mrb[12].mxu1 %vm89_vm0, %v1280_v35 }
 0xc23   :  { %v1361_v37 = vpop.f32.mrb[12].mxu1 }
 0xc24   :  { %v1362_v38 = vadd.f32 %v1411_v36, %v1361_v37  ;;  %v1614_v39 = vpop.f32.mrb[13].mxu1 }
 0xc26   :  { %1366 = vst.msk [vmem:[#allocation2] sm:$0x3] %vm1365_vm12, %v1362_v38 }
 0xc27   :  { %1728 = shalt.err (!%p1725_p4)
}
 0xc28   :  { %s1729_s4 = scalar_lea.hbm %s2152_s22, 32 }
 0xc29   :  { %p1730_p5 = scmp.ne.s32.totalorder %s2152_s22, %s1729_s4  ;;  %p1733_p6 = scmp.lt.u32.totalorder %s1729_s4, %s2152_s22 }
 0xc2b   :  { %p1735_p7 = pnand %p1733_p6, %p1730_p5 }
 0xc2d   :  { %1738 = shalt.err (!%p1735_p7)
}
 0xc2e   :  { %1376 = dma.vmem_to_hbm [thread:$0]  %s1374_s29, 32, %s2152_s22, [#allocation3]  }
 0xc2f   :  { %1739 = dma.done.wait [#allocation3], 32  }
 0xc30   :  { %1740 = vsyncadd [#allocation3], 4294967264 }
 0xc31   :  { %1380 = vsyncpa [#allocation3], 1 }

// kernel: run.3
= control target key start
LH: loop header
LB: loop body
LE: loop exit
PB: predicated region body
PF: predicated region fallthrough
CT: control target
= control target key end

     0   :  { %s4737_s6 = smov 1   ;;  %s4738_s10 = smov 2   ;;  %s5539_s0 = inlined_call_operand.smem [shape: u32[40], index: -1, kind: input, shape index: {}] }
   0x1   :  { %s4825_s5 = sld [smem:[%s5539_s0]]   ;;  %s4739_s14 = smov 3  }
   0x2   :  { %s4830_s9 = sld [smem:[%s5539_s0 + %s4737_s6]]   ;;  %s4740_s18 = smov 4  }
   0x3   :  { %s4835_s13 = sld [smem:[%s5539_s0 + %s4738_s10]]   ;;  %s4741_s22 = smov 5  }
   0x4   :  { %s4840_s17 = sld [smem:[%s5539_s0 + %s4739_s14]]   ;;  %s4742_s26 = smov 6  }
   0x5   :  { %s4845_s21 = sld [smem:[%s5539_s0 + %s4740_s18]]   ;;  %s4743_s30 = smov 7  }
   0x6   :  { %s4850_s25 = sld [smem:[%s5539_s0 + %s4741_s22]]   ;;  %s4744_s4 = smov 8  }
   0x7   :  { %5558 = sst [smem:[#allocation49_spill]] %s4825_s5  ;;  %s4745_s10 = smov 9  }
   0x8   :  { %5559 = sst [smem:[#allocation50_spill]] %s4830_s9  ;;  %s4746_s15 = smov 10  }
   0x9   :  { %5560 = sst [smem:[#allocation51_spill]] %s4835_s13  ;;  %s4747_s20 = smov 11  }
   0xa   :  { %5561 = sst [smem:[#allocation52_spill]] %s4840_s17  ;;  %s4749_s1 = smov 13  }
   0xb   :  { %5562 = sst [smem:[#allocation53_spill]] %s4845_s21  ;;  %s4750_s7 = smov 14  }
   0xc   :  { %5563 = sst [smem:[#allocation54_spill]] %s4850_s25  ;;  %s4752_s22 = smov 16  }
   0xd   :  { %s4855_s29 = sld [smem:[%s5539_s0 + %s4742_s26]]   ;;  %s4748_s26 = smov 12  }
   0xe   :  { %s4860_s3 = sld [smem:[%s5539_s0 + %s4743_s30]]   ;;  %s4753_s28 = smov 17  }
   0xf   :  { %s4865_s8 = sld [smem:[%s5539_s0 + %s4744_s4]]  }
  0x10   :  { %s4870_s14 = sld [smem:[%s5539_s0 + %s4745_s10]]  }
  0x11   :  { %s4875_s19 = sld [smem:[%s5539_s0 + %s4746_s15]]   ;;  %s4751_s15 = smov 15  }
  0x12   :  { %s4880_s24 = sld [smem:[%s5539_s0 + %s4747_s20]]  }
  0x13   :  { %5564 = sst [smem:[#allocation55_spill]] %s4855_s29 }
  0x14   :  { %s4885_s30 = sld [smem:[%s5539_s0 + %s4748_s26]]  }
  0x15   :  { %s4890_s6 = sld [smem:[%s5539_s0 + %s4749_s1]]  }
  0x16   :  { %s4895_s12 = sld [smem:[%s5539_s0 + %s4750_s7]]   ;;  %s4754_s7 = smov 18  }
  0x17   :  { %s4900_s20 = sld [smem:[%s5539_s0 + %s4751_s15]]   ;;  %s4755_s15 = smov 19  }
  0x18   :  { %5565 = sst [smem:[#allocation56_spill]] %s4880_s24 }
  0x19   :  { %s4905_s27 = sld [smem:[%s5539_s0 + %s4752_s22]]   ;;  %s4756_s22 = smov 20  }
  0x1a   :  { %s4910_s4 = sld [smem:[%s5539_s0 + %s4753_s28]]   ;;  %s4757_s28 = smov 21  }
  0x1b   :  { %5566 = sst [smem:[#allocation57_spill]] %s4890_s6 }
  0x1c   :  { %s4915_s29 = sld [smem:[%s5539_s0 + %s4754_s7]]   ;;  %s4758_s7 = smov 22  }
  0x1d   :  { %5567 = sst [smem:[#allocation58_spill]] %s4900_s20 }
  0x1e   :  { %s4920_s25 = sld [smem:[%s5539_s0 + %s4755_s15]]   ;;  %s4759_s15 = smov 23  }
  0x1f   :  { %s4925_s17 = sld [smem:[%s5539_s0 + %s4756_s22]]   ;;  %s4760_s22 = smov 24  }
  0x20   :  { %5568 = sst [smem:[#allocation59_spill]] %s4910_s4 }
  0x21   :  { %s4930_s4 = sld [smem:[%s5539_s0 + %s4757_s28]]   ;;  %s4761_s28 = smov 25  }
  0x22   :  { %5569 = sst [smem:[#allocation60_spill]] %s4915_s29 }
  0x23   :  { %s4935_s6 = sld [smem:[%s5539_s0 + %s4758_s7]]   ;;  %s4762_s7 = smov 26  }
  0x24   :  { %s4940_s24 = sld [smem:[%s5539_s0 + %s4759_s15]]   ;;  %s4763_s15 = smov 27  }
  0x25   :  { %5570 = sst [smem:[#allocation61_spill]] %s4925_s17 }
  0x26   :  { %s4945_s21 = sld [smem:[%s5539_s0 + %s4760_s22]]   ;;  %s4764_s22 = smov 28  }
  0x27   :  { %s4950_s9 = sld [smem:[%s5539_s0 + %s4761_s28]]   ;;  %s4765_s28 = smov 29  }
  0x28   :  { %s4955_s13 = sld [smem:[%s5539_s0 + %s4762_s7]]   ;;  %s4766_s7 = smov 30  }
  0x29   :  { %5571 = sst [smem:[#allocation62_spill]] %s4935_s6 }
  0x2a   :  { %5572 = sst [smem:[#allocation63_spill]] %s4940_s24 }
  0x2b   :  { %s4960_s24 = sld [smem:[%s5539_s0 + %s4763_s15]]   ;;  %s4767_s15 = smov 31  }
  0x2c   :  { %5573 = sst [smem:[#allocation64_spill]] %s4945_s21 }
  0x2d   :  { %5574 = sst [smem:[#allocation65_spill]] %s4950_s9 }
  0x2e   :  { %s4965_s21 = sld [smem:[%s5539_s0 + %s4764_s22]]   ;;  %s4768_s22 = smov 32  }
  0x2f   :  { %s4970_s9 = sld [smem:[%s5539_s0 + %s4765_s28]]   ;;  %s4769_s28 = smov 33  }
  0x30   :  { %s4975_s5 = sld [smem:[%s5539_s0 + %s4766_s7]]   ;;  %s4770_s7 = smov 34  }
  0x31   :  { %5575 = sst [smem:[#allocation66_spill]] %s4960_s24 }
  0x32   :  { %s4980_s24 = sld [smem:[%s5539_s0 + %s4767_s15]]   ;;  %s4771_s15 = smov 35  }
  0x33   :  { %s4990_s6 = sld [smem:[%s5539_s0 + %s4769_s28]]   ;;  %s4773_s28 = smov 37  }
  0x34   :  { %5576 = sst [smem:[#allocation67_spill]] %s4965_s21 }
  0x35   :  { %s4985_s21 = sld [smem:[%s5539_s0 + %s4768_s22]]   ;;  %s4772_s22 = smov 36  }
  0x36   :  { %5577 = sst [smem:[#allocation68_spill]] %s4975_s5 }
  0x37   :  { %s4995_s5 = sld [smem:[%s5539_s0 + %s4770_s7]]   ;;  %s4774_s7 = smov 38  }
  0x38   :  { %s5000_s17 = sld [smem:[%s5539_s0 + %s4771_s15]]   ;;  %s4775_s15 = smov 39  }
  0x39   :  { %s5010_s29 = sld [smem:[%s5539_s0 + %s4773_s28]]  }
  0x3a   :  { %s5020_s20 = sld [smem:[%s5539_s0 + %s4775_s15]]  }
  0x3b   :  { %5578 = sst [smem:[#allocation69_spill]] %s4985_s21 }
  0x3c   :  { %s5005_s21 = sld [smem:[%s5539_s0 + %s4772_s22]]  }
  0x3d   :  { %5579 = sst [smem:[#allocation70_spill]] %s4995_s5 }
  0x3e   :  { %s5015_s5 = sld [smem:[%s5539_s0 + %s4774_s7]]  }
  0x3f   :  { %84 = vsyncpa [#allocation3], 0 }
  0x40   :  { %85 = vsyncpa [#allocation5], 0 }
  0x41   :  { %86 = vsyncpa [#allocation8], 0 }
  0x42   :  { %87 = vsyncpa [#allocation11], 0 }
  0x43   :  { %88 = vsyncpa [#allocation14], 0 }
  0x44   :  { %89 = vsyncpa [#allocation17], 0 }
  0x45   :  { %90 = vsyncpa [#allocation20], 0 }
  0x46   :  { %91 = vsyncpa [#allocation23], 0 }
  0x47   :  { %92 = vsyncpa [#allocation26], 0 }
  0x48   :  { %93 = vsyncpa [#allocation29], 0 }
  0x49   :  { %94 = vsyncpa [#allocation32], 0 }
  0x4a   :  { %95 = vsyncpa [#allocation35], 0  ;;  %s4776_s22 = smov [#allocation4]   ;;  %s4777_s26 = smov [#allocation7]  }
  0x4b   :  { %s126_s23 = sshll.u32 %s4776_s22, 4  ;;  %s146_s0 = sshll.u32 %s4777_s26, 4  ;;  %s127_s23 = int_to_ptr.vmem [resolvable:$true] %s126_s23  ;;  %s147_s0 = int_to_ptr.vmem [resolvable:$true] %s146_s0 }
  0x4c   :  { %s4207_s28 = scalar_lea.hbm %s4865_s8, 16 }
  0x4d   :  { %p4208_p0 = scmp.ne.s32.totalorder %s4865_s8, %s4207_s28  ;;  %p4211_p1 = scmp.lt.u32.totalorder %s4207_s28, %s4865_s8 }
  0x4f   :  { %p4213_p2 = pnand %p4211_p1, %p4208_p0 }
  0x51   :  { %4216 = shalt.err (!%p4213_p2)
}
  0x52   :  { %s4217_s1 = scalar_lea.vmem %s127_s23, 16  ;;  %s4221_s2 = scalar_lea.vmem %s127_s23, 32 }
  0x53   :  { %p4218_p3 = scmp.ne.s32.totalorder %s127_s23, %s4217_s1  ;;  %p4222_p4 = scmp.lt.s32.totalorder %s127_s23, %s127_s23 }
  0x54   :  { %p4223_p5 = scmp.lt.s32.totalorder %s4221_s2, %s4217_s1 }
  0x56   :  { %p4224_p6 = por %p4223_p5, %p4222_p4 }
  0x58   :  { %p4225_p7 = pnand %p4224_p6, %p4218_p3 }
  0x5a   :  { %4228 = shalt.err (!%p4225_p7)
}
  0x5b   :  { %129 = dma.hbm_to_vmem [thread:$0]  %s4865_s8, 16, %s127_s23, [#allocation5]  }
  0x5c   :  { %s4229_s7 = scalar_lea.hbm %s4875_s19, 16 }
  0x5d   :  { %p4230_p8 = scmp.ne.s32.totalorder %s4875_s19, %s4229_s7  ;;  %p4233_p9 = scmp.lt.u32.totalorder %s4229_s7, %s4875_s19 }
  0x5f   :  { %p4235_p10 = pnand %p4233_p9, %p4230_p8 }
  0x61   :  { %4238 = shalt.err (!%p4235_p10)
}
  0x62   :  { %s4239_s10 = scalar_lea.vmem %s147_s0, 16  ;;  %s4243_s11 = scalar_lea.vmem %s147_s0, 32 }
  0x63   :  { %p4240_p11 = scmp.ne.s32.totalorder %s147_s0, %s4239_s10  ;;  %p4244_p12 = scmp.lt.s32.totalorder %s147_s0, %s147_s0 }
  0x64   :  { %p4245_p13 = scmp.lt.s32.totalorder %s4243_s11, %s4239_s10 }
  0x66   :  { %p4246_p0 = por %p4245_p13, %p4244_p12 }
  0x68   :  { %p4247_p1 = pnand %p4246_p0, %p4240_p11 }
  0x6a   :  { %4250 = shalt.err (!%p4247_p1)
}
  0x6b   :  { %149 = dma.hbm_to_vmem [thread:$0]  %s4875_s19, 16, %s147_s0, [#allocation8]  }
  0x6c   :  { %s4778_s15 = smov [#allocation10]   ;;  %s4779_s16 = smov [#allocation13]  }
  0x6d   :  { %s170_s8 = sshll.u32 %s4778_s15, 4  ;;  %s190_s18 = sshll.u32 %s4779_s16, 4  ;;  %s171_s8 = int_to_ptr.vmem [resolvable:$true] %s170_s8  ;;  %s191_s18 = int_to_ptr.vmem [resolvable:$true] %s190_s18 }
  0x6e   :  { %s4251_s22 = scalar_lea.hbm %s4895_s12, 16 }
  0x6f   :  { %p4252_p2 = scmp.ne.s32.totalorder %s4895_s12, %s4251_s22  ;;  %p4255_p3 = scmp.lt.u32.totalorder %s4251_s22, %s4895_s12 }
  0x71   :  { %p4257_p4 = pnand %p4255_p3, %p4252_p2 }
  0x73   :  { %4260 = shalt.err (!%p4257_p4)
}
  0x74   :  { %s4261_s23 = scalar_lea.vmem %s171_s8, 16  ;;  %s4265_s26 = scalar_lea.vmem %s171_s8, 32 }
  0x75   :  { %p4262_p5 = scmp.ne.s32.totalorder %s171_s8, %s4261_s23  ;;  %p4266_p6 = scmp.lt.s32.totalorder %s171_s8, %s171_s8 }
  0x76   :  { %p4267_p7 = scmp.lt.s32.totalorder %s4265_s26, %s4261_s23 }
  0x78   :  { %p4268_p8 = por %p4267_p7, %p4266_p6 }
  0x7a   :  { %p4269_p9 = pnand %p4268_p8, %p4262_p5 }
  0x7c   :  { %4272 = shalt.err (!%p4269_p9)
}
  0x7d   :  { %173 = dma.hbm_to_vmem [thread:$0]  %s4895_s12, 16, %s171_s8, [#allocation11]  }
  0x7e   :  { %s4273_s19 = scalar_lea.hbm %s4905_s27, 16 }
  0x7f   :  { %p4274_p10 = scmp.ne.s32.totalorder %s4905_s27, %s4273_s19  ;;  %p4277_p11 = scmp.lt.u32.totalorder %s4273_s19, %s4905_s27 }
  0x81   :  { %p4279_p12 = pnand %p4277_p11, %p4274_p10 }
  0x83   :  { %4282 = shalt.err (!%p4279_p12)
}
  0x84   :  { %s4283_s0 = scalar_lea.vmem %s191_s18, 16  ;;  %s4287_s28 = scalar_lea.vmem %s191_s18, 32 }
  0x85   :  { %p4284_p13 = scmp.ne.s32.totalorder %s191_s18, %s4283_s0  ;;  %p4288_p0 = scmp.lt.s32.totalorder %s191_s18, %s191_s18 }
  0x86   :  { %p4289_p1 = scmp.lt.s32.totalorder %s4287_s28, %s4283_s0 }
  0x88   :  { %p4290_p2 = por %p4289_p1, %p4288_p0 }
  0x8a   :  { %p4291_p3 = pnand %p4290_p2, %p4284_p13 }
  0x8c   :  { %4294 = shalt.err (!%p4291_p3)
}
  0x8d   :  { %193 = dma.hbm_to_vmem [thread:$0]  %s4905_s27, 16, %s191_s18, [#allocation14]  }
  0x8e   :  { %s4780_s1 = smov [#allocation16]   ;;  %s4295_s2 = scalar_lea.hbm %s4920_s25, 5120 }
  0x8f   :  { %s211_s12 = sshll.u32 %s4780_s1, 4  ;;  %p4296_p4 = scmp.ne.s32.totalorder %s4920_s25, %s4295_s2  ;;  %s212_s12 = int_to_ptr.vmem [resolvable:$true] %s211_s12 }
  0x90   :  { %p4299_p5 = scmp.lt.u32.totalorder %s4295_s2, %s4920_s25 }
  0x92   :  { %p4301_p6 = pnand %p4299_p5, %p4296_p4 }
  0x94   :  { %4304 = shalt.err (!%p4301_p6)
}
  0x95   :  { %s4305_s7 = scalar_lea.vmem %s212_s12, 5120  ;;  %p4310_p8 = scmp.lt.s32.totalorder %s212_s12, %s212_s12 }
  0x96   :  { %p4306_p7 = scmp.ne.s32.totalorder %s212_s12, %s4305_s7  ;;  %p4311_p9 = scmp.lt.s32.totalorder %s4305_s7, %s4305_s7 }
  0x98   :  { %p4312_p10 = por %p4311_p9, %p4310_p8 }
  0x9a   :  { %p4313_p11 = pnand %p4312_p10, %p4306_p7 }
  0x9c   :  { %4316 = shalt.err (!%p4313_p11)
}
  0x9d   :  { %s4781_s10 = smov 256   ;;  %s4782_s27 = smov 16  }
  0x9e   :  { %217 = dma.hbm_to_vmem [thread:$0]  %s4920_s25, 5120, %s212_s12, [#allocation17], %s4781_s10, %s4781_s10, %s4782_s27  }
  0x9f   :  { %s4783_s11 = smov [#allocation19]   ;;  %s4317_s8 = scalar_lea.hbm %s4930_s4, 7680 }
  0xa0   :  { %s233_s15 = sshll.u32 %s4783_s11, 4  ;;  %p4318_p12 = scmp.ne.s32.totalorder %s4930_s4, %s4317_s8  ;;  %s234_s15 = int_to_ptr.vmem [resolvable:$true] %s233_s15 }
  0xa1   :  { %p4321_p13 = scmp.lt.u32.totalorder %s4317_s8, %s4930_s4 }
  0xa3   :  { %p4323_p0 = pnand %p4321_p13, %p4318_p12 }
  0xa5   :  { %4326 = shalt.err (!%p4323_p0)
}
  0xa6   :  { %s4327_s16 = scalar_lea.vmem %s234_s15, 7680  ;;  %p4332_p2 = scmp.lt.s32.totalorder %s234_s15, %s234_s15 }
  0xa7   :  { %p4328_p1 = scmp.ne.s32.totalorder %s234_s15, %s4327_s16  ;;  %p4333_p3 = scmp.lt.s32.totalorder %s4327_s16, %s4327_s16 }
  0xa9   :  { %p4334_p4 = por %p4333_p3, %p4332_p2 }
  0xab   :  { %p4335_p5 = pnand %p4334_p4, %p4328_p1 }
  0xad   :  { %4338 = shalt.err (!%p4335_p5)
}
  0xae   :  { %s4784_s18 = smov 384   ;;  %s4785_s25 = smov 24  }
  0xaf   :  { %239 = dma.hbm_to_vmem [thread:$0]  %s4930_s4, 7680, %s234_s15, [#allocation20], %s4784_s18, %s4784_s18, %s4785_s25  }
  0xb0   :  { %s4786_s22 = smov [#allocation22]   ;;  %s4787_s26 = smov [#allocation25]  }
  0xb1   :  { %s262_s23 = sshll.u32 %s4786_s22, 4  ;;  %s284_s19 = sshll.u32 %s4787_s26, 4  ;;  %s263_s23 = int_to_ptr.vmem [resolvable:$true] %s262_s23  ;;  %s285_s19 = int_to_ptr.vmem [resolvable:$true] %s284_s19 }
  0xb2   :  { %s4339_s0 = scalar_lea.hbm %s4955_s13, 16 }
  0xb3   :  { %p4340_p6 = scmp.ne.s32.totalorder %s4955_s13, %s4339_s0  ;;  %p4343_p7 = scmp.lt.u32.totalorder %s4339_s0, %s4955_s13 }
  0xb5   :  { %p4345_p8 = pnand %p4343_p7, %p4340_p6 }
  0xb7   :  { %4348 = shalt.err (!%p4345_p8)
}
  0xb8   :  { %s4349_s28 = scalar_lea.vmem %s263_s23, 16  ;;  %s4353_s1 = scalar_lea.vmem %s263_s23, 32 }
  0xb9   :  { %p4350_p9 = scmp.ne.s32.totalorder %s263_s23, %s4349_s28  ;;  %p4354_p10 = scmp.lt.s32.totalorder %s263_s23, %s263_s23 }
  0xba   :  { %p4355_p11 = scmp.lt.s32.totalorder %s4353_s1, %s4349_s28 }
  0xbc   :  { %p4356_p12 = por %p4355_p11, %p4354_p10 }
  0xbe   :  { %p4357_p13 = pnand %p4356_p12, %p4350_p9 }
  0xc0   :  { %4360 = shalt.err (!%p4357_p13)
}
  0xc1   :  { %265 = dma.hbm_to_vmem [thread:$0]  %s4955_s13, 16, %s263_s23, [#allocation23]  }
  0xc2   :  { %s4361_s4 = scalar_lea.hbm %s4970_s9, 128 }
  0xc3   :  { %p4362_p0 = scmp.ne.s32.totalorder %s4970_s9, %s4361_s4  ;;  %p4365_p1 = scmp.lt.u32.totalorder %s4361_s4, %s4970_s9 }
  0xc5   :  { %p4367_p2 = pnand %p4365_p1, %p4362_p0 }
  0xc7   :  { %4370 = shalt.err (!%p4367_p2)
}
  0xc8   :  { %s4371_s12 = scalar_lea.vmem %s285_s19, 128  ;;  %p4376_p4 = scmp.lt.s32.totalorder %s285_s19, %s285_s19 }
  0xc9   :  { %p4372_p3 = scmp.ne.s32.totalorder %s285_s19, %s4371_s12  ;;  %p4377_p5 = scmp.lt.s32.totalorder %s4371_s12, %s4371_s12 }
  0xcb   :  { %p4378_p6 = por %p4377_p5, %p4376_p4 }
  0xcd   :  { %p4379_p7 = pnand %p4378_p6, %p4372_p3 }
  0xcf   :  { %4382 = shalt.err (!%p4379_p7)
}
  0xd0   :  { %287 = dma.hbm_to_vmem [thread:$0]  %s4970_s9, 128, %s285_s19, [#allocation26]  }
  0xd1   :  { %s4788_s2 = smov [#allocation28]   ;;  %s4789_s13 = smov [#allocation31]  }
  0xd2   :  { %s303_s7 = sshll.u32 %s4788_s2, 4  ;;  %s325_s11 = sshll.u32 %s4789_s13, 4  ;;  %s304_s7 = int_to_ptr.vmem [resolvable:$true] %s303_s7  ;;  %s5060_s11 = int_to_ptr.vmem [resolvable:$true] %s325_s11 }
  0xd3   :  { %s4383_s15 = scalar_lea.hbm %s4980_s24, 1920 }
  0xd4   :  { %p4384_p8 = scmp.ne.s32.totalorder %s4980_s24, %s4383_s15  ;;  %p4387_p9 = scmp.lt.u32.totalorder %s4383_s15, %s4980_s24 }
  0xd6   :  { %p4389_p10 = pnand %p4387_p9, %p4384_p8 }
  0xd8   :  { %4392 = shalt.err (!%p4389_p10)
}
  0xd9   :  { %s4393_s8 = scalar_lea.vmem %s304_s7, 1920  ;;  %p4398_p12 = scmp.lt.s32.totalorder %s304_s7, %s304_s7 }
  0xda   :  { %p4394_p11 = scmp.ne.s32.totalorder %s304_s7, %s4393_s8  ;;  %p4399_p13 = scmp.lt.s32.totalorder %s4393_s8, %s4393_s8 }
  0xdc   :  { %p4400_p0 = por %p4399_p13, %p4398_p12 }
  0xde   :  { %p4401_p1 = pnand %p4400_p0, %p4394_p11 }
  0xe0   :  { %4404 = shalt.err (!%p4401_p1)
}
  0xe1   :  { %309 = dma.hbm_to_vmem [thread:$0]  %s4980_s24, 1920, %s304_s7, [#allocation29], %s4784_s18, %s4784_s18, %s4785_s25  }
  0xe2   :  { %s4405_s9 = scalar_lea.hbm %s4990_s6, 5120 }
  0xe3   :  { %p4406_p2 = scmp.ne.s32.totalorder %s4990_s6, %s4405_s9  ;;  %p4409_p3 = scmp.lt.u32.totalorder %s4405_s9, %s4990_s6 }
  0xe5   :  { %p4411_p4 = pnand %p4409_p3, %p4406_p2 }
  0xe7   :  { %4414 = shalt.err (!%p4411_p4)
}
  0xe8   :  { %s4415_s16 = scalar_lea.vmem %s5060_s11, 5120  ;;  %p4420_p6 = scmp.lt.s32.totalorder %s5060_s11, %s5060_s11 }
  0xe9   :  { %p4416_p5 = scmp.ne.s32.totalorder %s5060_s11, %s4415_s16  ;;  %p4421_p7 = scmp.lt.s32.totalorder %s4415_s16, %s4415_s16 }
  0xeb   :  { %p4422_p8 = por %p4421_p7, %p4420_p6 }
  0xed   :  { %p4423_p9 = pnand %p4422_p8, %p4416_p5 }
  0xef   :  { %4426 = shalt.err (!%p4423_p9)
}
  0xf0   :  { %331 = dma.hbm_to_vmem [thread:$0]  %s4990_s6, 5120, %s5060_s11, [#allocation32], %s4781_s10, %s4781_s10, %s4782_s27  }
  0xf1   :  { %s4790_s24 = smov [#allocation34]   ;;  %s4791_s23 = smov [#allocation2]  }
  0xf2   :  { %s347_s22 = sshll.u32 %s4790_s24, 4  ;;  %s116_s26 = sshll.u32 %s4791_s23, 4  ;;  %s348_s22 = int_to_ptr.vmem [resolvable:$true] %s347_s22  ;;  %s117_s26 = int_to_ptr.vmem [resolvable:$true] %s116_s26 }
  0xf3   :  { %s4427_s19 = scalar_lea.hbm %s5000_s17, 7680 }
  0xf4   :  { %p4428_p10 = scmp.ne.s32.totalorder %s5000_s17, %s4427_s19  ;;  %p4431_p11 = scmp.lt.u32.totalorder %s4427_s19, %s5000_s17 }
  0xf6   :  { %p4433_p12 = pnand %p4431_p11, %p4428_p10 }
  0xf8   :  { %4436 = shalt.err (!%p4433_p12)
}
  0xf9   :  { %s4437_s0 = scalar_lea.vmem %s348_s22, 7680  ;;  %p4442_p0 = scmp.lt.s32.totalorder %s348_s22, %s348_s22 }
  0xfa   :  { %p4438_p13 = scmp.ne.s32.totalorder %s348_s22, %s4437_s0  ;;  %p4443_p1 = scmp.lt.s32.totalorder %s4437_s0, %s4437_s0 }
  0xfc   :  { %p4444_p2 = por %p4443_p1, %p4442_p0 }
  0xfe   :  { %p4445_p3 = pnand %p4444_p2, %p4438_p13 }
 0x100   :  { %4448 = shalt.err (!%p4445_p3)
}
 0x101   :  { %353 = dma.hbm_to_vmem [thread:$0]  %s5000_s17, 7680, %s348_s22, [#allocation35], %s4784_s18, %s4784_s18, %s4785_s25  }
 0x102   :  { %s4449_s6 = scalar_lea.hbm %s4860_s3, 128 }
 0x103   :  { %p4450_p4 = scmp.ne.s32.totalorder %s4860_s3, %s4449_s6  ;;  %p4453_p5 = scmp.lt.u32.totalorder %s4449_s6, %s4860_s3 }
 0x105   :  { %p4455_p6 = pnand %p4453_p5, %p4450_p4 }
 0x107   :  { %4458 = shalt.err (!%p4455_p6)
}
 0x108   :  { %s4459_s10 = scalar_lea.vmem %s117_s26, 128  ;;  %p4464_p8 = scmp.lt.s32.totalorder %s117_s26, %s117_s26 }
 0x109   :  { %p4460_p7 = scmp.ne.s32.totalorder %s117_s26, %s4459_s10  ;;  %p4465_p9 = scmp.lt.s32.totalorder %s4459_s10, %s4459_s10 }
 0x10b   :  { %p4466_p10 = por %p4465_p9, %p4464_p8 }
 0x10d   :  { %p4467_p11 = pnand %p4466_p10, %p4460_p7 }
 0x10f   :  { %4470 = shalt.err (!%p4467_p11)
}
 0x110   :  { %119 = dma.hbm_to_vmem [thread:$0]  %s4860_s3, 128, %s117_s26, [#allocation3]  }
 0x111   :  { %s4792_s27 = smov [#allocation6]   ;;  %s4793_s17 = smov [#allocation9]  }
 0x112   :  { %s136_s28 = sshll.u32 %s4792_s27, 4  ;;  %s158_s18 = sshll.u32 %s4793_s17, 4  ;;  %s137_s28 = int_to_ptr.vmem [resolvable:$true] %s136_s28  ;;  %s159_s18 = int_to_ptr.vmem [resolvable:$true] %s158_s18 }
 0x113   :  { %s4471_s25 = scalar_lea.hbm %s4870_s14, 128 }
 0x114   :  { %p4472_p12 = scmp.ne.s32.totalorder %s4870_s14, %s4471_s25  ;;  %p4475_p13 = scmp.lt.u32.totalorder %s4471_s25, %s4870_s14 }
 0x116   :  { %p4477_p0 = pnand %p4475_p13, %p4472_p12 }
 0x118   :  { %4480 = shalt.err (!%p4477_p0)
}
 0x119   :  { %s4481_s1 = scalar_lea.vmem %s137_s28, 128  ;;  %p4486_p2 = scmp.lt.s32.totalorder %s137_s28, %s137_s28 }
 0x11a   :  { %p4482_p1 = scmp.ne.s32.totalorder %s137_s28, %s4481_s1  ;;  %p4487_p3 = scmp.lt.s32.totalorder %s4481_s1, %s4481_s1 }
 0x11c   :  { %p4488_p4 = por %p4487_p3, %p4486_p2 }
 0x11e   :  { %p4489_p5 = pnand %p4488_p4, %p4482_p1 }
 0x120   :  { %4492 = shalt.err (!%p4489_p5)
}
 0x121   :  { %139 = dma.hbm_to_vmem [thread:$0]  %s4870_s14, 128, %s137_s28, [#allocation5]  }
 0x122   :  { %s4493_s3 = scalar_lea.hbm %s4885_s30, 16 }
 0x123   :  { %p4494_p6 = scmp.ne.s32.totalorder %s4885_s30, %s4493_s3  ;;  %p4497_p7 = scmp.lt.u32.totalorder %s4493_s3, %s4885_s30 }
 0x125   :  { %p4499_p8 = pnand %p4497_p7, %p4494_p6 }
 0x127   :  { %4502 = shalt.err (!%p4499_p8)
}
 0x128   :  { %s4503_s4 = scalar_lea.vmem %s159_s18, 16  ;;  %s4507_s12 = scalar_lea.vmem %s159_s18, 32 }
 0x129   :  { %p4504_p9 = scmp.ne.s32.totalorder %s159_s18, %s4503_s4  ;;  %p4508_p10 = scmp.lt.s32.totalorder %s159_s18, %s159_s18 }
 0x12a   :  { %p4509_p11 = scmp.lt.s32.totalorder %s4507_s12, %s4503_s4 }
 0x12c   :  { %p4510_p12 = por %p4509_p11, %p4508_p10 }
 0x12e   :  { %p4511_p13 = pnand %p4510_p12, %p4504_p9 }
 0x130   :  { %4514 = shalt.err (!%p4511_p13)
}
 0x131   :  { %s5580_s2 = sld [smem:[#allocation58_spill]]  ;;  %s4794_s7 = smov [#allocation12]  }
 0x132   :  { %161 = dma.hbm_to_vmem [thread:$0]  %s4885_s30, 16, %s159_s18, [#allocation8]  }
 0x133   :  { %s180_s14 = sshll.u32 %s4794_s7, 4  ;;  %s4795_s13 = smov [#allocation15]   ;;  %s181_s14 = int_to_ptr.vmem [resolvable:$true] %s180_s14 }
 0x134   :  { %s202_s11 = sshll.u32 %s4795_s13, 4  ;;  %s203_s11 = int_to_ptr.vmem [resolvable:$true] %s202_s11 }
 0x137   :  { %s4515_s15 = scalar_lea.hbm %s5580_s2, 128 }
 0x138   :  { %p4516_p0 = scmp.ne.s32.totalorder %s5580_s2, %s4515_s15  ;;  %p4519_p1 = scmp.lt.u32.totalorder %s4515_s15, %s5580_s2 }
 0x13a   :  { %p4521_p2 = pnand %p4519_p1, %p4516_p0 }
 0x13c   :  { %4524 = shalt.err (!%p4521_p2)
}
 0x13d   :  { %s4525_s8 = scalar_lea.vmem %s181_s14, 128  ;;  %p4530_p4 = scmp.lt.s32.totalorder %s181_s14, %s181_s14 }
 0x13e   :  { %p4526_p3 = scmp.ne.s32.totalorder %s181_s14, %s4525_s8  ;;  %p4531_p5 = scmp.lt.s32.totalorder %s4525_s8, %s4525_s8 }
 0x140   :  { %p4532_p6 = por %p4531_p5, %p4530_p4 }
 0x142   :  { %p4533_p7 = pnand %p4532_p6, %p4526_p3 }
 0x144   :  { %4536 = shalt.err (!%p4533_p7)
}
 0x145   :  { %s5581_s30 = sld [smem:[#allocation60_spill]] }
 0x146   :  { %183 = dma.hbm_to_vmem [thread:$0]  %s5580_s2, 128, %s181_s14, [#allocation11]  }
 0x14b   :  { %s4537_s9 = scalar_lea.hbm %s5581_s30, 48 }
 0x14c   :  { %p4538_p8 = scmp.ne.s32.totalorder %s5581_s30, %s4537_s9  ;;  %p4541_p9 = scmp.lt.u32.totalorder %s4537_s9, %s5581_s30 }
 0x14e   :  { %p4543_p10 = pnand %p4541_p9, %p4538_p8 }
 0x150   :  { %4546 = shalt.err (!%p4543_p10)
}
 0x151   :  { %s4547_s16 = scalar_lea.vmem %s203_s11, 48  ;;  %s4551_s24 = scalar_lea.vmem %s203_s11, 64 }
 0x152   :  { %p4548_p11 = scmp.ne.s32.totalorder %s203_s11, %s4547_s16  ;;  %p4552_p12 = scmp.lt.s32.totalorder %s203_s11, %s203_s11 }
 0x153   :  { %p4553_p13 = scmp.lt.s32.totalorder %s4551_s24, %s4547_s16 }
 0x155   :  { %p4554_p0 = por %p4553_p13, %p4552_p12 }
 0x157   :  { %p4555_p1 = pnand %p4554_p0, %p4548_p11 }
 0x159   :  { %4558 = shalt.err (!%p4555_p1)
}
 0x15a   :  { %s5582_s22 = sld [smem:[#allocation61_spill]]  ;;  %s4796_s23 = smov [#allocation18]  }
 0x15b   :  { %205 = dma.hbm_to_vmem [thread:$0]  %s5581_s30, 48, %s203_s11, [#allocation14]  }
 0x15c   :  { %s224_s26 = sshll.u32 %s4796_s23, 4  ;;  %s4797_s19 = smov [#allocation21]   ;;  %s225_s26 = int_to_ptr.vmem [resolvable:$true] %s224_s26 }
 0x15d   :  { %s246_s0 = sshll.u32 %s4797_s19, 4  ;;  %s247_s0 = int_to_ptr.vmem [resolvable:$true] %s246_s0 }
 0x160   :  { %s4559_s6 = scalar_lea.hbm %s5582_s22, 32 }
 0x161   :  { %p4560_p2 = scmp.ne.s32.totalorder %s5582_s22, %s4559_s6  ;;  %p4563_p3 = scmp.lt.u32.totalorder %s4559_s6, %s5582_s22 }
 0x163   :  { %p4565_p4 = pnand %p4563_p3, %p4560_p2 }
 0x165   :  { %4568 = shalt.err (!%p4565_p4)
}
 0x166   :  { %s4569_s10 = scalar_lea.vmem %s225_s26, 32  ;;  %p4574_p6 = scmp.lt.s32.totalorder %s225_s26, %s225_s26 }
 0x167   :  { %p4570_p5 = scmp.ne.s32.totalorder %s225_s26, %s4569_s10  ;;  %p4575_p7 = scmp.lt.s32.totalorder %s4569_s10, %s4569_s10 }
 0x169   :  { %p4576_p8 = por %p4575_p7, %p4574_p6 }
 0x16b   :  { %p4577_p9 = pnand %p4576_p8, %p4570_p5 }
 0x16d   :  { %4580 = shalt.err (!%p4577_p9)
}
 0x16e   :  { %s5583_s27 = sld [smem:[#allocation62_spill]] }
 0x16f   :  { %227 = dma.hbm_to_vmem [thread:$0]  %s5582_s22, 32, %s225_s26, [#allocation17]  }
 0x174   :  { %s4581_s28 = scalar_lea.hbm %s5583_s27, 48 }
 0x175   :  { %p4582_p10 = scmp.ne.s32.totalorder %s5583_s27, %s4581_s28  ;;  %p4585_p11 = scmp.lt.u32.totalorder %s4581_s28, %s5583_s27 }
 0x177   :  { %p4587_p12 = pnand %p4585_p11, %p4582_p10 }
 0x179   :  { %4590 = shalt.err (!%p4587_p12)
}
 0x17a   :  { %s4591_s17 = scalar_lea.vmem %s247_s0, 48  ;;  %s4595_s18 = scalar_lea.vmem %s247_s0, 64 }
 0x17b   :  { %p4592_p13 = scmp.ne.s32.totalorder %s247_s0, %s4591_s17  ;;  %p4596_p0 = scmp.lt.s32.totalorder %s247_s0, %s247_s0 }
 0x17c   :  { %p4597_p1 = scmp.lt.s32.totalorder %s4595_s18, %s4591_s17 }
 0x17e   :  { %p4598_p2 = por %p4597_p1, %p4596_p0 }
 0x180   :  { %p4599_p3 = pnand %p4598_p2, %p4592_p13 }
 0x182   :  { %4602 = shalt.err (!%p4599_p3)
}
 0x183   :  { %s5584_s25 = sld [smem:[#allocation67_spill]]  ;;  %s4798_s1 = smov [#allocation24]  }
 0x184   :  { %249 = dma.hbm_to_vmem [thread:$0]  %s5583_s27, 48, %s247_s0, [#allocation20]  }
 0x185   :  { %s274_s3 = sshll.u32 %s4798_s1, 4  ;;  %s4799_s4 = smov [#allocation27]   ;;  %s275_s3 = int_to_ptr.vmem [resolvable:$true] %s274_s3 }
 0x186   :  { %s294_s12 = sshll.u32 %s4799_s4, 4  ;;  %s295_s12 = int_to_ptr.vmem [resolvable:$true] %s294_s12 }
 0x189   :  { %s4603_s2 = scalar_lea.hbm %s5584_s25, 16 }
 0x18a   :  { %p4604_p4 = scmp.ne.s32.totalorder %s5584_s25, %s4603_s2  ;;  %p4607_p5 = scmp.lt.u32.totalorder %s4603_s2, %s5584_s25 }
 0x18c   :  { %p4609_p6 = pnand %p4607_p5, %p4604_p4 }
 0x18e   :  { %4612 = shalt.err (!%p4609_p6)
}
 0x18f   :  { %s4613_s7 = scalar_lea.vmem %s275_s3, 16  ;;  %s4617_s14 = scalar_lea.vmem %s275_s3, 32 }
 0x190   :  { %p4614_p7 = scmp.ne.s32.totalorder %s275_s3, %s4613_s7  ;;  %p4618_p8 = scmp.lt.s32.totalorder %s275_s3, %s275_s3 }
 0x191   :  { %p4619_p9 = scmp.lt.s32.totalorder %s4617_s14, %s4613_s7 }
 0x193   :  { %p4620_p10 = por %p4619_p9, %p4618_p8 }
 0x195   :  { %p4621_p11 = pnand %p4620_p10, %p4614_p7 }
 0x197   :  { %4624 = shalt.err (!%p4621_p11)
}
 0x198   :  { %s5585_s13 = sld [smem:[#allocation68_spill]] }
 0x199   :  { %277 = dma.hbm_to_vmem [thread:$0]  %s5584_s25, 16, %s275_s3, [#allocation23]  }
 0x19e   :  { %s4625_s11 = scalar_lea.hbm %s5585_s13, 16 }
 0x19f   :  { %p4626_p12 = scmp.ne.s32.totalorder %s5585_s13, %s4625_s11  ;;  %p4629_p13 = scmp.lt.u32.totalorder %s4625_s11, %s5585_s13 }
 0x1a1   :  { %p4631_p0 = pnand %p4629_p13, %p4626_p12 }
 0x1a3   :  { %4634 = shalt.err (!%p4631_p0)
}
 0x1a4   :  { %s4635_s15 = scalar_lea.vmem %s295_s12, 16  ;;  %s4639_s8 = scalar_lea.vmem %s295_s12, 32 }
 0x1a5   :  { %p4636_p1 = scmp.ne.s32.totalorder %s295_s12, %s4635_s15  ;;  %p4640_p2 = scmp.lt.s32.totalorder %s295_s12, %s295_s12 }
 0x1a6   :  { %p4641_p3 = scmp.lt.s32.totalorder %s4639_s8, %s4635_s15 }
 0x1a8   :  { %p4642_p4 = por %p4641_p3, %p4640_p2 }
 0x1aa   :  { %p4643_p5 = pnand %p4642_p4, %p4636_p1 }
 0x1ac   :  { %4646 = shalt.err (!%p4643_p5)
}
 0x1ad   :  { %s5586_s30 = sld [smem:[#allocation69_spill]]  ;;  %s4800_s9 = smov [#allocation30]  }
 0x1ae   :  { %297 = dma.hbm_to_vmem [thread:$0]  %s5585_s13, 16, %s295_s12, [#allocation26]  }
 0x1af   :  { %s316_s16 = sshll.u32 %s4800_s9, 4  ;;  %s4801_s24 = smov [#allocation33]   ;;  %s317_s16 = int_to_ptr.vmem [resolvable:$true] %s316_s16 }
 0x1b0   :  { %s338_s22 = sshll.u32 %s4801_s24, 4  ;;  %s339_s22 = int_to_ptr.vmem [resolvable:$true] %s338_s22 }
 0x1b3   :  { %s4647_s23 = scalar_lea.hbm %s5586_s30, 48 }
 0x1b4   :  { %p4648_p6 = scmp.ne.s32.totalorder %s5586_s30, %s4647_s23  ;;  %p4651_p7 = scmp.lt.u32.totalorder %s4647_s23, %s5586_s30 }
 0x1b6   :  { %p4653_p8 = pnand %p4651_p7, %p4648_p6 }
 0x1b8   :  { %4656 = shalt.err (!%p4653_p8)
}
 0x1b9   :  { %s4657_s26 = scalar_lea.vmem %s317_s16, 48  ;;  %s4661_s19 = scalar_lea.vmem %s317_s16, 64 }
 0x1ba   :  { %p4658_p9 = scmp.ne.s32.totalorder %s317_s16, %s4657_s26  ;;  %p4662_p10 = scmp.lt.s32.totalorder %s317_s16, %s317_s16 }
 0x1bb   :  { %p4663_p11 = scmp.lt.s32.totalorder %s4661_s19, %s4657_s26 }
 0x1bd   :  { %p4664_p12 = por %p4663_p11, %p4662_p10 }
 0x1bf   :  { %p4665_p13 = pnand %p4664_p12, %p4658_p9 }
 0x1c1   :  { %4668 = shalt.err (!%p4665_p13)
}
 0x1c2   :  { %s5587_s0 = sld [smem:[#allocation70_spill]] }
 0x1c3   :  { %319 = dma.hbm_to_vmem [thread:$0]  %s5586_s30, 48, %s317_s16, [#allocation29]  }
 0x1c8   :  { %s4669_s6 = scalar_lea.hbm %s5587_s0, 32 }
 0x1c9   :  { %p4670_p0 = scmp.ne.s32.totalorder %s5587_s0, %s4669_s6  ;;  %p4673_p1 = scmp.lt.u32.totalorder %s4669_s6, %s5587_s0 }
 0x1cb   :  { %p4675_p2 = pnand %p4673_p1, %p4670_p0 }
 0x1cd   :  { %4678 = shalt.err (!%p4675_p2)
}
 0x1ce   :  { %s4679_s10 = scalar_lea.vmem %s339_s22, 32  ;;  %p4684_p4 = scmp.lt.s32.totalorder %s339_s22, %s339_s22 }
 0x1cf   :  { %p4680_p3 = scmp.ne.s32.totalorder %s339_s22, %s4679_s10  ;;  %p4685_p5 = scmp.lt.s32.totalorder %s4679_s10, %s4679_s10 }
 0x1d1   :  { %p4686_p6 = por %p4685_p5, %p4684_p4 }
 0x1d3   :  { %p4687_p7 = pnand %p4686_p6, %p4680_p3 }
 0x1d5   :  { %4690 = shalt.err (!%p4687_p7)
}
 0x1d6   :  { %341 = dma.hbm_to_vmem [thread:$0]  %s5587_s0, 32, %s339_s22, [#allocation32]  }
 0x1d7   :  { %s4802_s27 = smov [#allocation36]   ;;  %s4691_s17 = scalar_lea.hbm %s5005_s21, 48 }
 0x1d8   :  { %s360_s28 = sshll.u32 %s4802_s27, 4  ;;  %p4692_p8 = scmp.ne.s32.totalorder %s5005_s21, %s4691_s17  ;;  %s361_s28 = int_to_ptr.vmem [resolvable:$true] %s360_s28 }
 0x1d9   :  { %p4695_p9 = scmp.lt.u32.totalorder %s4691_s17, %s5005_s21 }
 0x1db   :  { %p4697_p10 = pnand %p4695_p9, %p4692_p8 }
 0x1dd   :  { %4700 = shalt.err (!%p4697_p10)
}
 0x1de   :  { %s4701_s18 = scalar_lea.vmem %s361_s28, 48  ;;  %s4705_s25 = scalar_lea.vmem %s361_s28, 64 }
 0x1df   :  { %p4702_p11 = scmp.ne.s32.totalorder %s361_s28, %s4701_s18  ;;  %p4706_p12 = scmp.lt.s32.totalorder %s361_s28, %s361_s28 }
 0x1e0   :  { %p4707_p13 = scmp.lt.s32.totalorder %s4705_s25, %s4701_s18 }
 0x1e2   :  { %p4708_p0 = por %p4707_p13, %p4706_p12 }
 0x1e4   :  { %p4709_p1 = pnand %p4708_p0, %p4702_p11 }
 0x1e6   :  { %4712 = shalt.err (!%p4709_p1)
}
 0x1e7   :  { %363 = dma.hbm_to_vmem [thread:$0]  %s5005_s21, 48, %s361_s28, [#allocation35]  }
 0x1e8   :  { %4713 = dma.done.wait [#allocation3], 128  }
 0x1e9   :  { %4714 = vsyncadd [#allocation3], 4294967168 }
 0x1ea   :  { %4715 = dma.done.wait [#allocation5], 144  }
 0x1eb   :  { %4716 = vsyncadd [#allocation5], 4294967152 }
 0x1ec   :  { %4717 = dma.done.wait [#allocation8], 32  }
 0x1ed   :  { %4718 = vsyncadd [#allocation8], 4294967264 }
 0x1ee   :  { %4719 = dma.done.wait [#allocation11], 144  }
 0x1ef   :  { %4720 = vsyncadd [#allocation11], 4294967152 }
 0x1f0   :  { %4721 = dma.done.wait [#allocation14], 64  }
 0x1f1   :  { %4722 = vsyncadd [#allocation14], 4294967232 }
 0x1f2   :  { %4723 = dma.done.wait [#allocation17], 5152  }
 0x1f3   :  { %4724 = vsyncadd [#allocation17], 4294962144 }
 0x1f4   :  { %4725 = dma.done.wait [#allocation20], 7728  }
 0x1f5   :  { %4726 = vsyncadd [#allocation20], 4294959568 }
 0x1f6   :  { %4727 = dma.done.wait [#allocation23], 32  }
 0x1f7   :  { %4728 = vsyncadd [#allocation23], 4294967264 }
 0x1f8   :  { %4729 = dma.done.wait [#allocation26], 144  }
 0x1f9   :  { %4730 = vsyncadd [#allocation26], 4294967152 }
 0x1fa   :  { %4731 = dma.done.wait [#allocation29], 1968  }
 0x1fb   :  { %4732 = vsyncadd [#allocation29], 4294965328 }
 0x1fc   :  { %4733 = dma.done.wait [#allocation32], 5152  }
 0x1fd   :  { %4734 = vsyncadd [#allocation32], 4294962144 }
 0x1fe   :  { %4735 = dma.done.wait [#allocation35], 7728  }
 0x1ff   :  { %4736 = vsyncadd [#allocation35], 4294959568  ;;  %s5588_s21 = sld [smem:[#allocation49_spill]]  ;;  %s5589_s1 = sld [smem:[#allocation51_spill]]  ;;  %vm442_vm0 = vcmask 130048   ;;  %vm533_vm1 = vcmask 1041408  }
 0x200   :  { %s5590_s3 = sld [smem:[#allocation50_spill]]  ;;  %s5591_s4 = sld [smem:[#allocation53_spill]]  ;;  %vm526_vm2 = vcmask 15360   ;;  %v612_v8 = vld [vmem:[#allocation2] sm:$0x1f]  ;;  %vm757_vm3 = vcmask 1042432  }
 0x201   :  { %s5592_s12 = sld [smem:[#allocation56_spill]]  ;;  %v749_v9 = vrot.slane %v612_v8, 2  ;;  %vm750_vm4 = vcmask 23552   ;;  %s5593_s2 = sld [smem:[#allocation57_spill]]  ;;  %v3468_v21 = vld [vmem:[#allocation4] ss:$0 sm:$0xff] }
 0x202   :  { %vm932_vm5 = vcmask 326656   ;;  %v3469_v29 = vld [vmem:[#allocation9] ss:$0 sm:$0xff]  ;;  %s4803_s7 = smov 123   ;;  %vm1038_vm8 = vcmask 261120   ;;  %vm1131_vm9 = vcmask 1044480  }
 0x203   :  { %v625_v49 = vld [vmem:[#allocation12] sm:$0x1f]  ;;  %v3474_v50 = vld [vmem:[#allocation10] ss:$0 sm:$0xff]  ;;  %vm1124_vm10 = vcmask 39936   ;;  %v4804_v60 = vmov 0.0|0.0  }
 0x204   :  { %v3477_v55 = vld [vmem:[#allocation13] ss:$0 sm:$0xff]  ;;  %vm4805_vm11 = vmmov 0   ;;  %v4806_v61 = vmov 0.0   ;;  %vm1237_vm12 = vcmask 37888   ;;  %s5594_s14 = sld [smem:[#allocation59_spill]] }
 0x205   :  { %v437_v0 = vld [vmem:[%s5588_s21] sm:$0xff]  ;;  %v438_v1 = vld [vmem:[%s5588_s21 + $0x8] sm:$0xff]  ;;  %s5595_s13 = sld [smem:[#allocation64_spill]]  ;;  %vm1256_vm13 = vcmask 1045504   ;;  %vm4807_vm14 = vmmov 1   ;;  %s5596_s11 = sld [smem:[#allocation63_spill]] }
 0x206   :  { %v440_v2 = vld [vmem:[%s5589_s1] sm:$0xff]  ;;  %v5139_v3 = vpack.c.bf16 %v438_v1, %v437_v0  ;;  %v525_v6 = vld [vmem:[%s5591_s4 + $0x8] sm:$0x3f]  ;;  %vm3782_vm15 = vmpackc.low %vm1256_vm13, %vm4807_vm14  ;;  %s4808_s15 = smov 96   ;;  %s5597_s8 = sld [smem:[#allocation52_spill]] }
 0x207   :  { %3614 = vmatprep.mubr.msk.f32.mxu0 %vm442_vm0, %v440_v2  ;;  %v5143_v4 = vld [vmem:[%s5590_s3] sm:$0x3]  ;;  %v441_v7 = vld [vmem:[%s5589_s1 + $0x8] sm:$0x3f]  ;;  %v616_v12 = vld [vmem:[%s5592_s12 + $0x10] sm:$0xff]  ;;  %s5598_s30 = sld [smem:[#allocation54_spill]] }
 0x208   :  { %v524_v5 = vld [vmem:[%s5591_s4] sm:$0xff]  ;;  %3617 = vmatprep.subr.msk.mxu1 %vm533_vm1, %v5143_v4  ;;  %3761 = vmatprep.subr.bf16.mxu0 %v5139_v3  ;;  %v615_v11 = vld [vmem:[%s5592_s12 + $0x8] sm:$0xff]  ;;  %v617_v14 = vld [vmem:[%s5592_s12 + $0x18] sm:$0xff]  ;;  %s5599_s9 = sld [smem:[#allocation65_spill]]  ;;  %s4809_s16 = smov 125  }
 0x209   :  { %3619 = vmatprep.mubr.msk.f32.mxu1 %vm526_vm2, %v524_v5  ;;  %3618 = vmatpush3.msk.msra.mxu1 %vm533_vm1, %v5143_v4  ;;  %v614_v10 = vld [vmem:[%s5592_s12] sm:$0xff]  ;;  %v3768_v15 = vpack.c.bf16 %v617_v14, %v616_v12  ;;  %v621_v27 = vld [vmem:[%s5593_s2 + $0x8] sm:$0xff]  ;;  %v622_v38 = vld [vmem:[%s5593_s2 + $0x10] sm:$0xff]  ;;  %s5600_s24 = sld [smem:[#allocation66_spill]]  ;;  %s5601_s22 = sld [smem:[#allocation55_spill]] }
 0x20a   :  { %3763 = vmatpush3.bf16.msra.mxu0 %v5139_v3  ;;  %3620 = vmatmul.mubr.msk.f32.vlgmr.msra.gmra.mrb[0].mxu1 %vm526_vm2, %v525_v6  ;;  %v3764_v13 = vpack.c.bf16 %v615_v11, %v614_v10  ;;  %v618_v20 = vld [vmem:[%s5592_s12 + $0x20] sm:$0xff]  ;;  %v623_v39 = vld [vmem:[%s5593_s2 + $0x18] sm:$0xff] }
 0x20b   :  { %3622 = vmatprep.subr.msk.mxu1 %vm757_vm3, %v749_v9  ;;  %v620_v26 = vld [vmem:[%s5593_s2] sm:$0xff]  ;;  %v3776_v40 = vpack.c.bf16 %v623_v39, %v622_v38  ;;  %v634_v39 = vld [vmem:[%s5594_s14 + $0x38] sm:$0xff] }
 0x20c   :  { %3623 = vmatpush3.msk.msra.mxu1 %vm757_vm3, %v749_v9  ;;  %3765 = vmatprep.subr.bf16.mxu0 %v3764_v13  ;;  %v3772_v28 = vpack.c.bf16 %v621_v27, %v620_v26 }
 0x20d   :  { %3615 = vmatmul.mubr.msk.f32.vlgmr.msra.gmra.mrb[0].mxu0 %vm442_vm0, %v441_v7  ;;  %3627 = vmatprep.subr.msk.mxu1 %vm533_vm1, %v612_v8 }
 0x20e   :  { %3767 = vmatpush3.bf16.msra.mxu0 %v3764_v13 }
 0x20f   :  { %3769 = vmatprep.subr.bf16.mxu0 %v3768_v15 }
 0x212   :  { %3771 = vmatpush3.bf16.msra.mxu0 %v3768_v15 }
 0x213   :  { %3640 = vmatprep.subr.mxu0 %v618_v20 }
 0x216   :  { %3641 = vmatpush3.msra.mxu0 %v618_v20 }
 0x217   :  { %3656 = vmatprep.subr.msk.mxu0 %vm1131_vm9, %v625_v49 }
 0x2dd   :  { %v3621_v16 = vpop.f32.mrb[0].mxu1 }
 0x2de   :  { %v603_v17 = vpop.f32.mrb[1].mxu1 }
 0x2e0   :  { %v3616_v18 = vpop.f32.mrb[0].mxu0 }
 0x2e1   :  { %v515_v19 = vpop.f32.mrb[1].mxu0 }
 0x2e2   :  { %3624 = vmatprep.mubr.msk.f32.mxu1 %vm750_vm4, %v515_v19 }
 0x2e3   :  { %3625 = vmatmul.mubr.msk.f32.vlgmr.msra.gmra.mrb[2].mxu1 %vm750_vm4, %v3616_v18 }
 0x2e4   :  { %3628 = vmatpush3.msk.msra.mxu1 %vm533_vm1, %v612_v8  ;;  %3629 = vmatprep.mubr.msk.f32.mxu1 %vm526_vm2, %v603_v17 }
 0x2e5   :  { %3773 = vmatprep.subr.bf16.mxu1 %v3772_v28 }
 0x2eb   :  { %3630 = vmatmul.mubr.msk.f32.vlgmr.msra.gmra.mrb[2].mxu1 %vm526_vm2, %v3621_v16 }
 0x2ec   :  { %3775 = vmatpush3.bf16.msra.mxu1 %v3772_v28 }
 0x2ed   :  { %3777 = vmatprep.subr.bf16.mxu1 %v3776_v40 }
 0x2f0   :  { %3779 = vmatpush3.bf16.msra.mxu1 %v3776_v40  ;;  %v637_v40 = vld [vmem:[%s5594_s14 + $0x50] sm:$0xff] }
 0x3be   :  { %v3631_v22 = vpop.f32.mrb[2].mxu1 }
 0x3bf   :  { %v909_v23 = vpop.f32.mrb[3].mxu1  ;;  %v5172_v25 = vadd.f32 %v3631_v22, %v3468_v21 }
 0x3c0   :  { %v5170_v24 = vadd.f32 %v3468_v21, %v909_v23 }
 0x3c2   :  { %3642 = vmatprep.mubr.msk.f32.mxu0 %vm932_vm5, %v5170_v24 }
 0x3c3   :  { %3643 = vmatmul.mubr.msk.f32.vlgmr.msra.gmra.mrb[2].mxu0 %vm932_vm5, %v5172_v25 }
 0x3c4   :  { %3657 = vmatpush3.msk.msra.mxu0 %vm1131_vm9, %v625_v49  ;;  %v632_v49 = vld [vmem:[%s5594_s14 + $0x28] sm:$0xff] }
 0x3c5   :  { %3780 = vmatprep.subr.bf16.mxu0 %v4804_v60 }
 0x496   :  { %v3644_v30 = vpop.f32.mrb[2].mxu0 }
 0x497   :  { %v5180_v31 = vadd.f32 %v3644_v30, %v3469_v29  ;;  %v1005_v32 = vpop.f32.mrb[3].mxu0 }
 0x498   :  { %v5182_v33 = vadd.f32 %v3469_v29, %v1005_v32  ;;  %v631_v32 = vld [vmem:[%s5594_s14 + $0x20] sm:$0xff] }
 0x499   :  { %v1017_v34 = vmin.f32 %v5180_v31, 0.0  ;;  %vm1015_vm7 = vcmp.gt.f32.partialorder %v5180_v31, 0.0 }
 0x49a   :  { %v1016_v35 = vmin.f32 %v5182_v33, 0.0  ;;  %vm1014_vm6 = vcmp.gt.f32.partialorder %v5182_v33, 0.0 }
 0x49b   :  { %v1020_v36 = vmul.f32 1.442695, %v1017_v34 }
 0x49c   :  { %v1018_v37 = vmul.f32 1.442695, %v1016_v35 }
 0x49d   :  { %4141 = vpow2.f32 %v1020_v36  ;;  %v627_v36 = vld [vmem:[%s5594_s14] sm:$0xff] }
 0x49e   :  { %4143 = vpow2.f32 %v1018_v37  ;;  %v630_v37 = vld [vmem:[%s5594_s14 + $0x18] sm:$0xff] }
 0x4a7   :  { %v4142_v41 = vpop.eup %4141 }
 0x4a8   :  { %v4144_v42 = vpop.eup %4143  ;;  %v3473_v45 = vadd.f32 -1.0, %v4142_v41  ;;  %v747_v41 = vld [vmem:[%s5595_s13] sm:$0x3] }
 0x4a9   :  { %v3472_v43 = vadd.f32 -1.0, %v4144_v42  ;;  %v3786_v42 = vpack.c.bf16 %v630_v37, %v627_v36 }
 0x4aa   :  { %v1025_v46 = vsel %vm1015_vm7, %v5180_v31, %v3473_v45  ;;  %v636_v45 = vld [vmem:[%s5594_s14 + $0x48] sm:$0xff] }
 0x4ab   :  { %v1024_v44 = vsel %vm1014_vm6, %v5182_v33, %v3472_v43  ;;  %vm1252_vm6 = vcmask 113664   ;;  %v3788_v43 = vpack.c.bf16 %v637_v40, %v634_v39  ;;  %v669_v39 = vld [vmem:[#allocation16 + $0xd0] sm:$0xff]  ;;  %v672_v40 = vld [vmem:[#allocation16 + $0xe8] sm:$0xff] }
 0x4ac   :  { %1034 = vrot.lane.b32.xlu0 %v1024_v44, %s4803_s7  ;;  %v633_v44 = vld [vmem:[%s5594_s14 + $0x30] sm:$0xff] }
 0x4b0   :  { %1036 = vrot.lane.b32.xlu0 %v1025_v46, %s4803_s7  ;;  %v3790_v46 = vpack.c.bf16 %v636_v45, %v633_v44  ;;  %v1419_v44 = vlaneseq }
 0x4b2   :  { %v1420_v45 = vshrl.u32 %v1419_v44, 7 }
 0x51e   :  { %v1035_v47 = vpop.permute.xlu0 %1034 }
 0x51f   :  { %3653 = vmatprep.mubr.msk.f32.mxu1 %vm1038_vm8, %v1035_v47  ;;  %v640_v47 = vld [vmem:[%s5594_s14 + $0x68] sm:$0xff] }
 0x522   :  { %v1037_v48 = vpop.permute.xlu0 %1036 }
 0x523   :  { %3654 = vmatmul.mubr.msk.f32.vlgmr.msra.gmra.mrb[4].mxu1 %vm1038_vm8, %v1037_v48  ;;  %v629_v48 = vld [vmem:[%s5594_s14 + $0x10] sm:$0xff] }
 0x5f6   :  { %v3655_v51 = vpop.f32.mrb[4].mxu1 }
 0x5f7   :  { %v1109_v52 = vpop.f32.mrb[5].mxu1  ;;  %v1115_v54 = vadd.f32 %v3655_v51, %v3474_v50  ;;  %v638_v51 = vld [vmem:[%s5594_s14 + $0x58] sm:$0xff] }
 0x5f8   :  { %v1110_v53 = vadd.f32 %v3474_v50, %v1109_v52  ;;  %v635_v50 = vld [vmem:[%s5594_s14 + $0x40] sm:$0xff] }
 0x5f9   :  { %v639_v52 = vld [vmem:[%s5594_s14 + $0x60] sm:$0xff] }
 0x5fa   :  { %3658 = vmatprep.mubr.msk.f32.mxu0 %vm1124_vm10, %v1110_v53  ;;  %v3792_v53 = vpack.c.bf16 %v632_v49, %v629_v48  ;;  %v5246_v49 = vsub.s32 0, %v1420_v45 }
 0x5fb   :  { %3659 = vmatmul.mubr.msk.f32.vlgmr.msra.gmra.mrb[4].mxu0 %vm1124_vm10, %v1115_v54  ;;  %v3796_v54 = vpack.c.bf16 %v638_v51, %v635_v50  ;;  %v642_v50 = vld [vmem:[#allocation15] sm:$0x7]  ;;  %v5248_v51 = vsub.s32 1, %v1420_v45 }
 0x5fc   :  { %3665 = vmatprep.mubr.msk.f32.mxu0 %vm4805_vm11, %v4806_v61 }
 0x6ce   :  { %v3660_v56 = vpop.f32.mrb[4].mxu0 }
 0x6cf   :  { %v1201_v57 = vpop.f32.mrb[5].mxu0  ;;  %v1207_v59 = vadd.f32 %v3660_v56, %v3477_v55  ;;  %v745_v56 = vld [vmem:[%s5596_s11] sm:$0xff] }
 0x6d0   :  { %v1202_v58 = vadd.f32 %v3477_v55, %v1201_v57  ;;  %v641_v55 = vld [vmem:[%s5594_s14 + $0x70] sm:$0xff]  ;;  %3670 = vmatprep.mubr.msk.f32.mxu1 %vm526_vm2, %v745_v56 }
 0x6d1   :  { %v3482_v63 = vmul.f32 -1.442695, %v1207_v59  ;;  %v644_v57 = vld [vmem:[#allocation16 + $0x8] sm:$0xff] }
 0x6d2   :  { %1224 = vrot.lane.b32.xlu1 %v1202_v58, %s4803_s7  ;;  %v3481_v62 = vmul.f32 -1.442695, %v1202_v58  ;;  %v646_v58 = vld [vmem:[#allocation16 + $0x18] sm:$0xff] }
 0x6d4   :  { %4145 = vpow2.f32 %v3481_v62  ;;  %v3800_v62 = vpack.c.bf16 %v646_v58, %v644_v57  ;;  %v5256_v58 = vsub.s32 2, %v1420_v45  ;;  %v685_v45 = vld [vmem:[#allocation19 + $0x8] sm:$0xff] }
 0x6d5   :  { %4147 = vpow2.f32 %v3482_v63  ;;  %v645_v63 = vld [vmem:[#allocation16 + $0x10] sm:$0xff] }
 0x6d6   :  { %1226 = vrot.lane.b32.xlu1 %v1207_v59, %s4803_s7  ;;  %v643_v59 = vld [vmem:[#allocation16] sm:$0xff] }
 0x6de   :  { %v4146_v0 = vpop.eup %4145 }
 0x6df   :  { %v1216_v1 = vadd.f32 1.0, %v4146_v0  ;;  %v4148_v2 = vpop.eup %4147  ;;  %v648_v0 = vld [vmem:[#allocation16 + $0x28] sm:$0xff] }
 0x6e0   :  { %v1217_v5 = vadd.f32 1.0, %v4148_v2  ;;  %v3802_v2 = vpack.c.bf16 %v645_v63, %v643_v59 }
 0x6e1   :  { %4149 = vrcp.f32 %v1216_v1  ;;  %v650_v1 = vld [vmem:[#allocation16 + $0x38] sm:$0xff] }
 0x6e2   :  { %4151 = vrcp.f32 %v1217_v5  ;;  %v3804_v5 = vpack.c.bf16 %v650_v1, %v648_v0 }
 0x6eb   :  { %v4150_v6 = vpop.eup %4149 }
 0x6ec   :  { %v4152_v10 = vpop.eup %4151 }
 0x744   :  { %v1225_v7 = vpop.permute.xlu1 %1224 }
 0x745   :  { %v1230_v8 = vmul.f32 %v4150_v6, %v1225_v7  ;;  %v647_v6 = vld [vmem:[#allocation16 + $0x20] sm:$0xff]  ;;  %v649_v7 = vld [vmem:[#allocation16 + $0x30] sm:$0xff] }
 0x747   :  { %v1232_v9 = vadd.f32 %v1230_v8, %v5182_v33  ;;  %v654_v8 = vld [vmem:[#allocation16 + $0x58] sm:$0xff] }
 0x748   :  { %v1227_v11 = vpop.permute.xlu1 %1226 }
 0x749   :  { %v1231_v12 = vmul.f32 %v4152_v10, %v1227_v11  ;;  %v1234_v13 = vmul.f32 0.999995, %v1232_v9  ;;  %v3806_v9 = vpack.c.bf16 %v649_v7, %v647_v6  ;;  %v651_v10 = vld [vmem:[#allocation16 + $0x40] sm:$0xff]  ;;  %v653_v11 = vld [vmem:[#allocation16 + $0x50] sm:$0xff]  ;;  %v1430_v7 = vrot.slane %v642_v50, %v5256_v58 }
 0x74a   :  { %v673_v6 = vld [vmem:[#allocation16 + $0xf0] sm:$0xff] }
 0x74b   :  { %v1233_v14 = vadd.f32 %v1231_v12, %v5180_v31  ;;  %v1236_v16 = vsel %vm1124_vm10, %v1234_v13, -inf  ;;  %v628_v31 = vld [vmem:[%s5594_s14 + $0x8] sm:$0xff] }
 0x74c   :  { %v3784_v35 = vpack.c.bf16 %v631_v32, %v628_v31  ;;  %v656_v12 = vld [vmem:[#allocation16 + $0x68] sm:$0xff]  ;;  %v665_v31 = vld [vmem:[#allocation16 + $0xb0] sm:$0xff] }
 0x74d   :  { %v1235_v15 = vmul.f32 0.999995, %v1233_v14  ;;  %v3810_v14 = vpack.c.bf16 %v653_v11, %v651_v10  ;;  %v668_v32 = vld [vmem:[#allocation16 + $0xc8] sm:$0xff] }
 0x74f   :  { %v1238_v17 = vsel %vm1237_vm12, %v1235_v15, -inf }
 0x750   :  { %v1239_v18 = vmax.f32 %v1236_v16, %v1238_v17  ;;  %v655_v16 = vld [vmem:[#allocation16 + $0x60] sm:$0xff]  ;;  %v657_v17 = vld [vmem:[#allocation16 + $0x70] sm:$0xff] }
 0x752   :  { %v1240_v19 = vrot.slane %v1239_v18, 4 }
 0x754   :  { %v1241_v20 = vmax.f32 %v1239_v18, %v1240_v19  ;;  %v660_v18 = vld [vmem:[#allocation16 + $0x88] sm:$0xff]  ;;  %v662_v19 = vld [vmem:[#allocation16 + $0x98] sm:$0xff] }
 0x756   :  { %v1242_v21 = vrot.slane %v1241_v20, 2 }
 0x758   :  { %v1243_v22 = vmax.f32 %v1241_v20, %v1242_v21  ;;  %v3814_v20 = vpack.c.bf16 %v657_v17, %v655_v16  ;;  %v3816_v21 = vpack.c.bf16 %v662_v19, %v660_v18  ;;  %v680_v19 = vld [vmem:[#allocation16 + $0x128] sm:$0xff] }
 0x75a   :  { %v1244_v23 = vrot.slane %v1243_v22, 1 }
 0x75c   :  { %v1245_v26 = vmax.f32 %v1243_v22, %v1244_v23  ;;  %v659_v22 = vld [vmem:[#allocation16 + $0x80] sm:$0xff]  ;;  %v661_v23 = vld [vmem:[#allocation16 + $0x90] sm:$0xff] }
 0x75e   :  { %v1246_v27 = vsub.f32 %v1234_v13, %v1245_v26  ;;  %v1247_v28 = vsub.f32 %v1235_v15, %v1245_v26  ;;  %v658_v13 = vld [vmem:[#allocation16 + $0x78] sm:$0xff]  ;;  %v664_v26 = vld [vmem:[#allocation16 + $0xa8] sm:$0xff] }
 0x75f   :  { %v3812_v15 = vpack.c.bf16 %v658_v13, %v656_v12  ;;  %v675_v13 = vld [vmem:[#allocation16 + $0x100] sm:$0xff] }
 0x760   :  { %v1248_v29 = vmul.f32 1.442695, %v1246_v27  ;;  %v1250_v30 = vmul.f32 1.442695, %v1247_v28  ;;  %v666_v27 = vld [vmem:[#allocation16 + $0xb8] sm:$0xff]  ;;  %v3818_v28 = vpack.c.bf16 %v661_v23, %v659_v22 }
 0x762   :  { %4153 = vpow2.f32 %v1248_v29  ;;  %v3820_v29 = vpack.c.bf16 %v666_v27, %v664_v26  ;;  %v681_v26 = vld [vmem:[#allocation16 + $0x130] sm:$0xff] }
 0x763   :  { %4155 = vpow2.f32 %v1250_v30  ;;  %v663_v30 = vld [vmem:[#allocation16 + $0xa0] sm:$0xff] }
 0x764   :  { %v3822_v36 = vpack.c.bf16 %v665_v31, %v663_v30 }
 0x76c   :  { %v5210_v33 = vpop.eup %4153 }
 0x76d   :  { %v5212_v34 = vpop.eup %4155 }
 0x76e   :  { %v3781_v38 = vpack.c.bf16 %v5212_v34, %v5210_v33 }
 0x770   :  { %3783 = vmatpush3.bf16.msk.msra.mxu0 %vm3782_vm15, %v3781_v38  ;;  %v667_v38 = vld [vmem:[#allocation16 + $0xc0] sm:$0xff]  ;;  %vm1633_vm15 = vcmask 785408  }
 0x771   :  { %3785 = vmatprep.subr.bf16.mxu0 %v3784_v35  ;;  %v670_v35 = vld [vmem:[#allocation16 + $0xd8] sm:$0xff] }
 0x772   :  { %v3824_v37 = vpack.c.bf16 %v670_v35, %v668_v32 }
 0x773   :  { %3666 = vmatmul.mubr.msk.f32.vlgmr.msra.gmra.mrb[6].mxu0 %vm1252_vm6, %v747_v41  ;;  %v674_v41 = vld [vmem:[#allocation16 + $0xf8] sm:$0xff] }
 0x774   :  { %3787 = vmatpush1.bf16.msra.mxu0 %v3786_v42  ;;  %1498 = vmatprep.mubr.f32.mxu0 %v4806_v61  ;;  %v3826_v42 = vpack.c.bf16 %v669_v39, %v667_v38 }
 0x775   :  { %3789 = vmatprep.subr.bf16.mxu0 %v3788_v43  ;;  %v3828_v43 = vpack.c.bf16 %v674_v41, %v672_v40 }
 0x778   :  { %3791 = vmatpush1.bf16.msra.mxu0 %v3790_v46 }
 0x779   :  { %1442 = vmatprep.subr.mxu0 %v640_v47  ;;  %v746_v47 = vld [vmem:[%s5596_s11 + $0x8] sm:$0x3f] }
 0x77c   :  { %1443 = vmatpush1.msra.mxu0 %v639_v52  ;;  %v1422_v52 = vrot.slane %v642_v50, %v5246_v49 }
 0x77d   :  { %3488 = vmatmul.mubr.msk.f32.vlgmr.msra.gmra.mrb[8].mxu0 %vm932_vm5, %v5170_v24  ;;  %3793 = vmatprep.subr.bf16.mxu0 %v3792_v53 }
 0x77e   :  { %3795 = vmatpush3.bf16.msra.mxu0 %v3792_v53  ;;  %1504 = vmatprep.mubr.f32.mxu0 %v4806_v61  ;;  %v1426_v53 = vrot.slane %v642_v50, %v5248_v51  ;;  %v687_v50 = vld [vmem:[#allocation19 + $0x18] sm:$0xff] }
 0x77f   :  { %3797 = vmatprep.subr.bf16.mxu0 %v3796_v54 }
 0x781   :  { %3489 = vmatmul.mubr.msk.f32.gmra.mrb[10].mxu0 %vm932_vm5, %v5172_v25 }
 0x782   :  { %3799 = vmatpush3.bf16.msra.mxu0 %v3796_v54  ;;  %3683 = vmatprep.mubr.msk.f32.mxu0 %vm932_vm5, %v5170_v24  ;;  %v652_v24 = vld [vmem:[#allocation16 + $0x48] sm:$0xff] }
 0x783   :  { %3681 = vmatprep.subr.mxu0 %v641_v55 }
 0x786   :  { %3682 = vmatpush3.msra.mxu0 %v641_v55 }
 0x787   :  { %3684 = vmatmul.mubr.msk.f32.vlgmr.msra.gmra.mrb[12].mxu0 %vm932_vm5, %v5172_v25  ;;  %3801 = vmatprep.subr.bf16.mxu0 %v3800_v62  ;;  %v3808_v25 = vpack.c.bf16 %v654_v8, %v652_v24 }
 0x788   :  { %3803 = vmatpush1.bf16.msra.mxu0 %v3802_v2 }
 0x789   :  { %3805 = vmatprep.subr.bf16.mxu0 %v3804_v5  ;;  %v671_v5 = vld [vmem:[#allocation16 + $0xe0] sm:$0xff] }
 0x78a   :  { %v3830_v24 = vpack.c.bf16 %v673_v6, %v671_v5  ;;  %v700_v5 = vld [vmem:[#allocation19 + $0x80] sm:$0xff] }
 0x78c   :  { %3807 = vmatpush1.bf16.msra.mxu0 %v3806_v9  ;;  %v676_v9 = vld [vmem:[#allocation16 + $0x108] sm:$0xff] }
 0x78d   :  { %3809 = vmatprep.subr.bf16.mxu0 %v3808_v25  ;;  %v678_v25 = vld [vmem:[#allocation16 + $0x118] sm:$0xff] }
 0x78e   :  { %v3832_v10 = vpack.c.bf16 %v678_v25, %v676_v9  ;;  %v706_v9 = vld [vmem:[#allocation19 + $0xb0] sm:$0xff] }
 0x790   :  { %3811 = vmatpush1.bf16.msra.mxu0 %v3810_v14  ;;  %v677_v14 = vld [vmem:[#allocation16 + $0x110] sm:$0xff] }
 0x791   :  { %3813 = vmatprep.subr.bf16.mxu0 %v3812_v15  ;;  %v3834_v17 = vpack.c.bf16 %v677_v14, %v675_v13  ;;  %v709_v13 = vld [vmem:[#allocation19 + $0xc8] sm:$0xff]  ;;  %v712_v14 = vld [vmem:[#allocation19 + $0xe0] sm:$0xff] }
 0x794   :  { %3815 = vmatpush1.bf16.msra.mxu0 %v3814_v20  ;;  %v682_v20 = vld [vmem:[#allocation16 + $0x138] sm:$0xff] }
 0x795   :  { %3817 = vmatprep.subr.bf16.mxu0 %v3816_v21  ;;  %v679_v21 = vld [vmem:[#allocation16 + $0x120] sm:$0xff]  ;;  %v3836_v23 = vpack.c.bf16 %v682_v20, %v680_v19  ;;  %v718_v20 = vld [vmem:[#allocation19 + $0x110] sm:$0xff] }
 0x796   :  { %v715_v19 = vld [vmem:[#allocation19 + $0xf8] sm:$0xff] }
 0x798   :  { %3819 = vmatpush1.bf16.msra.mxu0 %v3818_v28  ;;  %v3838_v28 = vpack.c.bf16 %v681_v26, %v679_v21  ;;  %v717_v26 = vld [vmem:[#allocation19 + $0x108] sm:$0xff] }
 0x799   :  { %3821 = vmatprep.subr.bf16.mxu0 %v3820_v29 }
 0x79c   :  { %3823 = vmatpush1.bf16.msra.mxu0 %v3822_v36 }
 0x79d   :  { %3825 = vmatprep.subr.bf16.mxu0 %v3824_v37 }
 0x7a0   :  { %3827 = vmatpush1.bf16.msra.mxu0 %v3826_v42 }
 0x7a1   :  { %3829 = vmatprep.subr.bf16.mxu0 %v3828_v43 }
 0x7a4   :  { %3831 = vmatpush1.bf16.msra.mxu0 %v3830_v24  ;;  %v699_v24 = vld [vmem:[#allocation19 + $0x78] sm:$0xff] }
 0x7a5   :  { %3833 = vmatprep.subr.bf16.mxu0 %v3832_v10 }
 0x7a8   :  { %3835 = vmatpush1.bf16.msra.mxu0 %v3834_v17  ;;  %v708_v17 = vld [vmem:[#allocation19 + $0xc0] sm:$0xff] }
 0x7a9   :  { %3837 = vmatprep.subr.bf16.mxu0 %v3836_v23  ;;  %v714_v23 = vld [vmem:[#allocation19 + $0xf0] sm:$0xff] }
 0x7ac   :  { %3839 = vmatpush1.bf16.msra.mxu0 %v3838_v28  ;;  %v724_v28 = vld [vmem:[#allocation19 + $0x140] sm:$0xff] }
 0x7ad   :  { %3880 = vmatprep.subr.bf16.mxu0 %v4804_v60 }
 0x846   :  { %v1326_v46 = vpop.f32.mrb[6].mxu0 }
 0x847   :  { %v3667_v48 = vpop.f32.mrb[7].mxu0  ;;  %3668 = vmatprep.subr.msk.mxu1 %vm533_vm1, %v1326_v46 }
 0x848   :  { %3669 = vmatpush3.msk.msra.mxu1 %vm533_vm1, %v1326_v46  ;;  %v688_v46 = vld [vmem:[#allocation19 + $0x20] sm:$0xff] }
 0x849   :  { %3671 = vmatmul.mubr.msk.f32.vlgmr.msra.gmra.mrb[6].mxu1 %vm526_vm2, %v746_v47  ;;  %v684_v47 = vld [vmem:[#allocation19] sm:$0xff]  ;;  %v3840_v48 = vpack.c.bf16 %v688_v46, %v685_v45  ;;  %v735_v46 = vld [vmem:[#allocation19 + $0x198] sm:$0xff] }
 0x84a   :  { %v732_v45 = vld [vmem:[#allocation19 + $0x180] sm:$0xff] }
 0x84b   :  { %3841 = vmatprep.subr.bf16.mxu1 %v3840_v48  ;;  %v686_v48 = vld [vmem:[#allocation19 + $0x10] sm:$0xff] }
 0x850   :  { %v1500_v54 = vpop.f32.mrb[8].mxu0 }
 0x851   :  { %v5252_v55 = vadd.f32 %v1500_v54, %v1422_v52  ;;  %v1502_v56 = vpop.f32.mrb[9].mxu0  ;;  %v694_v54 = vld [vmem:[#allocation19 + $0x50] sm:$0xff] }
 0x852   :  { %v5254_v57 = vadd.f32 %v1502_v56, %v1426_v53  ;;  %v690_v56 = vld [vmem:[#allocation19 + $0x30] sm:$0xff] }
 0x854   :  { %v1590_v59 = vmin.f32 %v5254_v57, 0.0  ;;  %v1506_v62 = vpop.f32.mrb[10].mxu0  ;;  %vm1586_vm7 = vcmp.gt.f32.partialorder %v5254_v57, 0.0 }
 0x855   :  { %v5259_v63 = vadd.f32 %v1506_v62, %v1422_v52  ;;  %v1508_v0 = vpop.f32.mrb[11].mxu0  ;;  %v3842_v52 = vpack.c.bf16 %v687_v50, %v684_v47  ;;  %v693_v62 = vld [vmem:[#allocation19 + $0x48] sm:$0xff]  ;;  %v3874_v47 = vpack.c.bf16 %v735_v46, %v732_v45 }
 0x856   :  { %v1594_v1 = vmul.f32 1.442695, %v1590_v59  ;;  %v5261_v2 = vadd.f32 %v1508_v0, %v1426_v53  ;;  %v691_v53 = vld [vmem:[#allocation19 + $0x38] sm:$0xff]  ;;  %v3846_v0 = vpack.c.bf16 %v693_v62, %v690_v56  ;;  %v689_v50 = vld [vmem:[#allocation19 + $0x28] sm:$0xff]  ;;  %v692_v56 = vld [vmem:[#allocation19 + $0x40] sm:$0xff] }
 0x857   :  { %v3844_v59 = vpack.c.bf16 %v694_v54, %v691_v53  ;;  %3843 = vmatpush1.bf16.msra.mxu1 %v3842_v52  ;;  %v3881_v53 = vpack.c.bf16 %v689_v50, %v686_v48 }
 0x858   :  { %v1592_v8 = vmin.f32 %v5261_v2, 0.0  ;;  %4157 = vpow2.f32 %v1594_v1  ;;  %vm1588_vm12 = vcmp.gt.f32.partialorder %v5261_v2, 0.0  ;;  %v697_v1 = vld [vmem:[#allocation19 + $0x68] sm:$0xff] }
 0x859   :  { %3845 = vmatprep.subr.bf16.mxu1 %v3844_v59  ;;  %v3848_v6 = vpack.c.bf16 %v700_v5, %v697_v1  ;;  %v695_v59 = vld [vmem:[#allocation19 + $0x58] sm:$0xff] }
 0x85a   :  { %v1598_v11 = vmul.f32 1.442695, %v1592_v8  ;;  %v3685_v12 = vpop.f32.mrb[12].mxu0  ;;  %v703_v8 = vld [vmem:[#allocation19 + $0x98] sm:$0xff] }
 0x85b   :  { %v1583_v15 = vadd.f32 %v3685_v12, %v1430_v7  ;;  %v1577_v16 = vpop.f32.mrb[13].mxu0  ;;  %3847 = vmatpush1.bf16.msra.mxu1 %v3846_v0  ;;  %v3852_v10 = vpack.c.bf16 %v706_v9, %v703_v8  ;;  %v705_v12 = vld [vmem:[#allocation19 + $0xa8] sm:$0xff]  ;;  %v3884_v0 = vpack.c.bf16 %v695_v59, %v692_v56  ;;  %v704_v9 = vld [vmem:[#allocation19 + $0xa0] sm:$0xff] }
 0x85c   :  { %v1578_v18 = vadd.f32 %v1577_v16, %v1430_v7  ;;  %4159 = vpow2.f32 %v1598_v11  ;;  %v696_v7 = vld [vmem:[#allocation19 + $0x60] sm:$0xff]  ;;  %3849 = vmatprep.subr.bf16.mxu1 %v3848_v6  ;;  %v702_v11 = vld [vmem:[#allocation19 + $0x90] sm:$0xff]  ;;  %v3856_v16 = vpack.c.bf16 %v712_v14, %v709_v13 }
 0x85d   :  { %v1593_v22 = vmin.f32 %v1583_v15, 0.0  ;;  %vm1589_vm14 = vcmp.gt.f32.partialorder %v1583_v15, 0.0  ;;  %v3850_v25 = vpack.c.bf16 %v699_v24, %v696_v7  ;;  %v698_v6 = vld [vmem:[#allocation19 + $0x70] sm:$0xff]  ;;  %v701_v7 = vld [vmem:[#allocation19 + $0x88] sm:$0xff]  ;;  %v716_v14 = vld [vmem:[#allocation19 + $0x100] sm:$0xff] }
 0x85e   :  { %v1591_v27 = vmin.f32 %v1578_v18, 0.0  ;;  %vm1587_vm13 = vcmp.gt.f32.partialorder %v1578_v18, 0.0  ;;  %v3887_v8 = vpack.c.bf16 %v701_v7, %v698_v6  ;;  %v2179_v56 = vld [vmem:[#allocation6] sm:$0x1f] }
 0x85f   :  { %v1600_v29 = vmul.f32 1.442695, %v1593_v22  ;;  %3851 = vmatpush1.bf16.msra.mxu1 %v3850_v25  ;;  %v3860_v22 = vpack.c.bf16 %v718_v20, %v715_v19  ;;  %v707_v25 = vld [vmem:[#allocation19 + $0xb8] sm:$0xff]  ;;  %v728_v20 = vld [vmem:[#allocation19 + $0x160] sm:$0xff]  ;;  %v2318_v59 = vrot.slane %v2179_v56, 2 }
 0x860   :  { %v1596_v30 = vmul.f32 1.442695, %v1591_v27  ;;  %3853 = vmatprep.subr.bf16.mxu1 %v3852_v10  ;;  %v721_v27 = vld [vmem:[#allocation19 + $0x128] sm:$0xff]  ;;  %v3890_v10 = vpack.c.bf16 %v707_v25, %v704_v9 }
 0x861   :  { %4161 = vpow2.f32 %v1600_v29  ;;  %v3862_v29 = vpack.c.bf16 %v717_v26, %v714_v23  ;;  %v734_v23 = vld [vmem:[#allocation19 + $0x190] sm:$0xff]  ;;  %v737_v26 = vld [vmem:[#allocation19 + $0x1a8] sm:$0xff] }
 0x862   :  { %v4158_v31 = vpop.eup %4157  ;;  %4163 = vpow2.f32 %v1596_v30  ;;  %v3864_v30 = vpack.c.bf16 %v724_v28, %v721_v27  ;;  %v3905_v27 = vpack.c.bf16 %v737_v26, %v734_v23 }
 0x863   :  { %v3492_v32 = vadd.f32 -1.0, %v4158_v31  ;;  %v720_v31 = vld [vmem:[#allocation19 + $0x120] sm:$0xff] }
 0x865   :  { %v1606_v35 = vsel %vm1586_vm7, %v5254_v57, %v3492_v32  ;;  %v723_v32 = vld [vmem:[#allocation19 + $0x138] sm:$0xff] }
 0x866   :  { %v4160_v36 = vpop.eup %4159  ;;  %1625 = vrot.lane.b32.xlu0 %v1606_v35, %s4808_s15  ;;  %v727_v35 = vld [vmem:[#allocation19 + $0x158] sm:$0xff] }
 0x867   :  { %v3494_v37 = vadd.f32 -1.0, %v4160_v36  ;;  %v730_v36 = vld [vmem:[#allocation19 + $0x170] sm:$0xff] }
 0x869   :  { %v1608_v38 = vsel %vm1588_vm12, %v5261_v2, %v3494_v37  ;;  %v3866_v37 = vpack.c.bf16 %v723_v32, %v720_v31  ;;  %v742_v31 = vld [vmem:[#allocation19 + $0x1d0] sm:$0xff] }
 0x86a   :  { %1629 = vrot.lane.b32.xlu0 %v1608_v38, %s4808_s15  ;;  %v3868_v38 = vpack.c.bf16 %v730_v36, %v727_v35  ;;  %v738_v35 = vld [vmem:[#allocation19 + $0x1b0] sm:$0xff]  ;;  %v741_v36 = vld [vmem:[#allocation19 + $0x1c8] sm:$0xff] }
 0x86b   :  { %v4162_v39 = vpop.eup %4161 }
 0x86c   :  { %v4164_v40 = vpop.eup %4163  ;;  %v3495_v43 = vadd.f32 -1.0, %v4162_v39  ;;  %v726_v39 = vld [vmem:[#allocation19 + $0x150] sm:$0xff] }
 0x86d   :  { %v3493_v41 = vadd.f32 -1.0, %v4164_v40  ;;  %v729_v40 = vld [vmem:[#allocation19 + $0x168] sm:$0xff] }
 0x86e   :  { %v1609_v44 = vsel %vm1589_vm14, %v1583_v15, %v3495_v43  ;;  %v3854_v15 = vpack.c.bf16 %v705_v12, %v702_v11  ;;  %v3870_v43 = vpack.c.bf16 %v729_v40, %v726_v39  ;;  %v710_v11 = vld [vmem:[#allocation19 + $0xd0] sm:$0xff]  ;;  %v713_v12 = vld [vmem:[#allocation19 + $0xe8] sm:$0xff]  ;;  %v743_v39 = vld [vmem:[#allocation19 + $0x1d8] sm:$0xff] }
 0x86f   :  { %v1607_v42 = vsel %vm1587_vm13, %v1578_v18, %v3493_v41  ;;  %v711_v18 = vld [vmem:[#allocation19 + $0xd8] sm:$0xff]  ;;  %v733_v41 = vld [vmem:[#allocation19 + $0x188] sm:$0xff]  ;;  %v3893_v13 = vpack.c.bf16 %v713_v12, %v710_v11 }
 0x870   :  { %1627 = vrot.lane.b32.xlu1 %v1607_v42, %s4808_s15  ;;  %3855 = vmatpush1.bf16.msra.mxu1 %v3854_v15  ;;  %v3858_v21 = vpack.c.bf16 %v711_v18, %v708_v17  ;;  %v736_v42 = vld [vmem:[#allocation19 + $0x1a0] sm:$0xff]  ;;  %v719_v15 = vld [vmem:[#allocation19 + $0x118] sm:$0xff]  ;;  %v722_v17 = vld [vmem:[#allocation19 + $0x130] sm:$0xff] }
 0x871   :  { %3857 = vmatprep.subr.bf16.mxu1 %v3856_v16  ;;  %v3896_v16 = vpack.c.bf16 %v719_v15, %v716_v14  ;;  %v725_v18 = vld [vmem:[#allocation19 + $0x148] sm:$0xff]  ;;  %v2181_v12 = vld [vmem:[%s5599_s9] sm:$0xff] }
 0x872   :  { %v3899_v19 = vpack.c.bf16 %v725_v18, %v722_v17  ;;  %v2183_v15 = vld [vmem:[%s5599_s9 + $0x10] sm:$0xff]  ;;  %v2185_v18 = vld [vmem:[%s5599_s9 + $0x20] sm:$0xff] }
 0x874   :  { %1631 = vrot.lane.b32.xlu1 %v1609_v44, %s4808_s15  ;;  %3859 = vmatpush1.bf16.msra.mxu1 %v3858_v21  ;;  %v3872_v44 = vpack.c.bf16 %v736_v42, %v733_v41  ;;  %v731_v21 = vld [vmem:[#allocation19 + $0x178] sm:$0xff] }
 0x875   :  { %3861 = vmatprep.subr.bf16.mxu1 %v3860_v22  ;;  %v3902_v22 = vpack.c.bf16 %v731_v21, %v728_v20  ;;  %v683_v41 = vld [vmem:[#allocation18] sm:$0x3]  ;;  %v3513_v21 = vld [vmem:[#allocation7] ss:$0 sm:$0xff] }
 0x876   :  { %v1618_v42 = vrot.slane %v683_v41, %v5248_v51 }
 0x878   :  { %3863 = vmatpush1.bf16.msra.mxu1 %v3862_v29 }
 0x879   :  { %3865 = vmatprep.subr.bf16.mxu1 %v3864_v30  ;;  %v739_v30 = vld [vmem:[#allocation19 + $0x1b8] sm:$0xff] }
 0x87a   :  { %v3876_v32 = vpack.c.bf16 %v742_v31, %v739_v30  ;;  %v2187_v30 = vld [vmem:[%s5600_s24] sm:$0xff]  ;;  %v2188_v31 = vld [vmem:[%s5600_s24 + $0x8] sm:$0xff] }
 0x87c   :  { %3867 = vmatpush1.bf16.msra.mxu1 %v3866_v37  ;;  %v740_v37 = vld [vmem:[#allocation19 + $0x1c0] sm:$0xff] }
 0x87d   :  { %3869 = vmatprep.subr.bf16.mxu1 %v3868_v38  ;;  %v3878_v38 = vpack.c.bf16 %v741_v36, %v738_v35  ;;  %v3908_v40 = vpack.c.bf16 %v743_v39, %v740_v37  ;;  %v3920_v35 = vpack.c.bf16 %v2188_v31, %v2187_v30  ;;  %v2190_v36 = vld [vmem:[%s5600_s24 + $0x18] sm:$0xff] }
 0x87e   :  { %v2194_v30 = vld [vmem:[#allocation28] sm:$0xff]  ;;  %v2197_v31 = vld [vmem:[#allocation28 + $0x18] sm:$0xff] }
 0x880   :  { %3871 = vmatpush1.bf16.msra.mxu1 %v3870_v43  ;;  %v1614_v43 = vrot.slane %v683_v41, %v5246_v49 }
 0x881   :  { %3873 = vmatprep.subr.bf16.mxu1 %v3872_v44 }
 0x884   :  { %3875 = vmatpush1.bf16.msra.mxu1 %v3874_v47 }
 0x885   :  { %3877 = vmatprep.subr.bf16.mxu1 %v3876_v32  ;;  %v2189_v32 = vld [vmem:[%s5600_s24 + $0x10] sm:$0xff] }
 0x886   :  { %v3923_v37 = vpack.c.bf16 %v2190_v36, %v2189_v32  ;;  %v2201_v32 = vld [vmem:[#allocation28 + $0x38] sm:$0xff] }
 0x888   :  { %3879 = vmatpush1.bf16.msra.mxu1 %v3878_v38  ;;  %v3514_v38 = vld [vmem:[#allocation22] ss:$0 sm:$0xff] }
 0x889   :  { %3910 = vmatprep.subr.bf16.mxu1 %v4804_v60 }
 0x8d8   :  { %v1626_v52 = vpop.permute.xlu0 %1625 }
 0x8dc   :  { %v1630_v1 = vpop.permute.xlu0 %1629 }
 0x8e2   :  { %v1628_v54 = vpop.permute.xlu1 %1627 }
 0x8e3   :  { %v1634_v62 = vsel %vm1633_vm15, %v1626_v52, %v1628_v54  ;;  %3496 = vmatprep.mubr.msk.f32.mxu0 %vm1038_vm8, %v1628_v54  ;;  %v2031_v54 = vld [vmem:[%s5597_s8] sm:$0x3] }
 0x8e4   :  { %1707 = vmatmul.mubr.f32.vlgmr.msra.gmra.mrb[14].mxu0 %v1634_v62 }
 0x8e5   :  { %3882 = vmatpush1.bf16.msra.mxu0 %v3881_v53 }
 0x8e6   :  { %v1632_v5 = vpop.permute.xlu1 %1631  ;;  %3883 = vmatprep.subr.bf16.mxu0 %v4804_v60 }
 0x8e7   :  { %3497 = vmatprep.mubr.msk.f32.mxu0 %vm1038_vm8, %v1632_v5  ;;  %v1635_v24 = vsel %vm1633_vm15, %v1630_v1, %v1632_v5 }
 0x8e8   :  { %1713 = vmatmul.mubr.f32.gmra.mrb[16].mxu0 %v1635_v24 }
 0x8e9   :  { %3885 = vmatpush1.bf16.msra.mxu0 %v3884_v0 }
 0x8ea   :  { %3886 = vmatprep.subr.bf16.mxu0 %v4804_v60 }
 0x8ed   :  { %3888 = vmatpush1.bf16.msra.mxu0 %v3887_v8 }
 0x8ee   :  { %3889 = vmatprep.subr.bf16.mxu0 %v4804_v60 }
 0x8f1   :  { %3891 = vmatpush1.bf16.msra.mxu0 %v3890_v10 }
 0x8f2   :  { %3892 = vmatprep.subr.bf16.mxu0 %v4804_v60 }
 0x8f5   :  { %3894 = vmatpush1.bf16.msra.mxu0 %v3893_v13  ;;  %v2182_v13 = vld [vmem:[%s5599_s9 + $0x8] sm:$0xff] }
 0x8f6   :  { %3895 = vmatprep.subr.bf16.mxu0 %v4804_v60  ;;  %v3914_v14 = vpack.c.bf16 %v2182_v13, %v2181_v12 }
 0x8f9   :  { %3897 = vmatpush1.bf16.msra.mxu0 %v3896_v16  ;;  %v2184_v16 = vld [vmem:[%s5599_s9 + $0x18] sm:$0xff] }
 0x8fa   :  { %3898 = vmatprep.subr.bf16.mxu0 %v4804_v60  ;;  %v3917_v17 = vpack.c.bf16 %v2184_v16, %v2183_v15 }
 0x8fd   :  { %3900 = vmatpush1.bf16.msra.mxu0 %v3899_v19 }
 0x8fe   :  { %3901 = vmatprep.subr.bf16.mxu0 %v4804_v60 }
 0x901   :  { %3903 = vmatpush1.bf16.msra.mxu0 %v3902_v22 }
 0x902   :  { %3904 = vmatprep.subr.bf16.mxu0 %v4804_v60 }
 0x905   :  { %3906 = vmatpush1.bf16.msra.mxu0 %v3905_v27 }
 0x906   :  { %3907 = vmatprep.subr.bf16.mxu0 %v4804_v60 }
 0x909   :  { %3909 = vmatpush1.bf16.msra.mxu0 %v3908_v40 }
 0x90a   :  { %3913 = vmatprep.subr.bf16.mxu0 %v4804_v60 }
 0x91c   :  { %v5287_v28 = vpop.f32.mrb[6].mxu1 }
 0x91d   :  { %v5289_v29 = vpop.f32.mrb[7].mxu1 }
 0x9b7   :  { %v1708_v44 = vpop.f32.mrb[14].mxu0 }
 0x9b8   :  { %v1710_v45 = vpop.f32.mrb[15].mxu0  ;;  %v1709_v47 = vadd.f32 %v1708_v44, %v1614_v43 }
 0x9b9   :  { %v1711_v46 = vadd.f32 %v1710_v45, %v1618_v42 }
 0x9bb   :  { %v1714_v48 = vpop.f32.mrb[16].mxu0  ;;  %3498 = vmatprep.mubr.msk.f32.mxu1 %vm1038_vm8, %v1711_v46  ;;  %3500 = vmatprep.mubr.msk.f32.mxu0 %vm1038_vm8, %v1711_v46 }
 0x9bc   :  { %v1716_v50 = vpop.f32.mrb[17].mxu0  ;;  %1806 = vmatmul.mubr.f32.vlgmr.msra.gmra.mrb[8].mxu1 %v1709_v47  ;;  %1883 = vmatmul.mubr.f32.vlgmr.msra.gmra.mrb[18].mxu0 %v1709_v47  ;;  %v1715_v53 = vadd.f32 %v1714_v48, %v1614_v43  ;;  %v2192_v48 = vld [vmem:[#allocation25] sm:$0x1f] }
 0x9bd   :  { %v1717_v52 = vadd.f32 %v1716_v50, %v1618_v42  ;;  %3912 = vmatpush3.bf16.msra.mxu1 %v5139_v3  ;;  %v2105_v3 = vld [vmem:[%s5598_s30] sm:$0x3]  ;;  %3915 = vmatpush3.bf16.msra.mxu0 %v3914_v14  ;;  %v3517_v50 = vld [vmem:[#allocation24] ss:$0 sm:$0xff] }
 0x9be   :  { %3693 = vmatprep.subr.mxu1 %v4806_v61  ;;  %3916 = vmatprep.subr.bf16.mxu0 %v4804_v60 }
 0x9bf   :  { %3499 = vmatprep.mubr.msk.f32.mxu1 %vm1038_vm8, %v1717_v52  ;;  %3501 = vmatprep.mubr.msk.f32.mxu0 %vm1038_vm8, %v1717_v52 }
 0x9c0   :  { %1812 = vmatmul.mubr.f32.gmra.mrb[10].mxu1 %v1715_v53  ;;  %1888 = vmatmul.mubr.f32.gmra.mrb[20].mxu0 %v1715_v53 }
 0x9c1   :  { %3690 = vmatprep.mubr.msk.f32.mxu1 %vm4805_vm11, %v4806_v61  ;;  %3718 = vmatprep.mubr.msk.f32.mxu0 %vm4805_vm11, %v4806_v61 }
 0x9c2   :  { %3918 = vmatpush3.bf16.msra.mxu0 %v3917_v17 }
 0x9c3   :  { %3716 = vmatprep.subr.mxu0 %v4806_v61 }
 0x9c4   :  { %3691 = vmatmul.mubr.msk.f32.vlgmr.msra.gmra.mrb[12].mxu1 %vm442_vm0, %v2031_v54 }
 0x9c5   :  { %3694 = vmatpush3.msk.msra.mxu1 %vm533_vm1, %v5143_v4  ;;  %3695 = vmatprep.mubr.msk.f32.mxu1 %vm4805_vm11, %v4806_v61 }
 0x9c6   :  { %3698 = vmatprep.subr.mxu1 %v4806_v61  ;;  %3717 = vmatpush3.msra.mxu0 %v2185_v18 }
 0x9c7   :  { %3742 = vmatprep.subr.mxu0 %v4806_v61 }
 0x9c8   :  { %3696 = vmatmul.mubr.msk.f32.vlgmr.msra.gmra.mrb[14].mxu1 %vm526_vm2, %v2105_v3  ;;  %v3519_v3 = vld [vmem:[#allocation27] ss:$0 sm:$0xff] }
 0x9c9   :  { %3700 = vmatprep.mubr.msk.f32.mxu1 %vm4805_vm11, %v4806_v61  ;;  %3699 = vmatpush3.msk.msra.mxu1 %vm757_vm3, %v2318_v59  ;;  %vm2736_vm3 = vcmask 33792  }
 0x9ca   :  { %3703 = vmatprep.subr.mxu1 %v4806_v61 }
 0xa8f   :  { %v5318_v62 = vpop.f32.mrb[8].mxu1  ;;  %v5320_v4 = vpop.f32.mrb[18].mxu0 }
 0xa90   :  { %v5322_v0 = vpop.f32.mrb[9].mxu1  ;;  %v1886_v1 = vpop.f32.mrb[19].mxu0 }
 0xa93   :  { %v5324_v5 = vpop.f32.mrb[10].mxu1  ;;  %v5326_v6 = vpop.f32.mrb[20].mxu0 }
 0xa94   :  { %v5328_v7 = vpop.f32.mrb[11].mxu1  ;;  %v1891_v24 = vpop.f32.mrb[21].mxu0 }
 0xa97   :  { %v2101_v8 = vpop.f32.mrb[12].mxu1 }
 0xa98   :  { %2315 = vrot.lane.b32.xlu0 %v2101_v8, %s4809_s16  ;;  %v3692_v9 = vpop.f32.mrb[13].mxu1 }
 0xa9b   :  { %v2175_v25 = vpop.f32.mrb[14].mxu1 }
 0xa9c   :  { %v3697_v10 = vpop.f32.mrb[15].mxu1 }
 0xb0a   :  { %v2316_v11 = vpop.permute.xlu0 %2315 }
 0xb0b   :  { %3701 = vmatmul.mubr.msk.f32.vlgmr.msra.gmra.mrb[16].mxu1 %vm750_vm4, %v2316_v11  ;;  %vm3396_vm4 = vcmask 259072  }
 0xb0c   :  { %3704 = vmatpush3.msk.msra.mxu1 %vm533_vm1, %v2179_v56  ;;  %3705 = vmatprep.mubr.msk.f32.mxu1 %vm4805_vm11, %v4806_v61 }
 0xb0d   :  { %3919 = vmatprep.subr.bf16.mxu1 %v4804_v60 }
 0xb0f   :  { %3706 = vmatmul.mubr.msk.f32.vlgmr.msra.gmra.mrb[18].mxu1 %vm526_vm2, %v2175_v25 }
 0xb10   :  { %3729 = vmatprep.mubr.msk.f32.mxu1 %vm4805_vm11, %v4806_v61  ;;  %3921 = vmatpush3.bf16.msra.mxu1 %v3920_v35  ;;  %v2204_v35 = vld [vmem:[#allocation28 + $0x50] sm:$0xff] }
 0xb11   :  { %3922 = vmatprep.subr.bf16.mxu1 %v4804_v60 }
 0xb14   :  { %3924 = vmatpush3.bf16.msra.mxu1 %v3923_v37  ;;  %v2313_v37 = vld [vmem:[%s5015_s5] sm:$0x3]  ;;  %s4815_s5 = smov 64  }
 0xb15   :  { %3732 = vmatprep.subr.mxu1 %v4806_v61 }
 0xbde   :  { %v2389_v19 = vpop.f32.mrb[16].mxu1 }
 0xbdf   :  { %v3702_v20 = vpop.f32.mrb[17].mxu1 }
 0xbe2   :  { %v2464_v22 = vpop.f32.mrb[18].mxu1 }
 0xbe3   :  { %v2465_v23 = vadd.f32 %v2464_v22, %v2389_v19  ;;  %v3707_v26 = vpop.f32.mrb[19].mxu1 }
 0xbe4   :  { %v2198_v26 = vld [vmem:[#allocation28 + $0x20] sm:$0xff] }
 0xbe5   :  { %v5346_v27 = vadd.f32 %v3513_v21, %v2465_v23  ;;  %v2195_v23 = vld [vmem:[#allocation28 + $0x8] sm:$0xff] }
 0xbe6   :  { %v3925_v36 = vpack.c.bf16 %v2198_v26, %v2195_v23  ;;  %v2215_v23 = vld [vmem:[#allocation31 + $0x28] sm:$0xff]  ;;  %v2217_v26 = vld [vmem:[#allocation31 + $0x38] sm:$0xff] }
 0xbe7   :  { %3719 = vmatmul.mubr.msk.f32.vlgmr.msra.gmra.mrb[22].mxu0 %vm932_vm5, %v5346_v27 }
 0xbe8   :  { %3744 = vmatprep.mubr.msk.f32.mxu0 %vm4805_vm11, %v4806_v61 }
 0xcba   :  { %v2550_v39 = vpop.f32.mrb[22].mxu0 }
 0xcbb   :  { %v2551_v40 = vadd.f32 %v3514_v38, %v2550_v39  ;;  %v3720_v41 = vpop.f32.mrb[23].mxu0  ;;  %v3927_v38 = vpack.c.bf16 %v2197_v31, %v2194_v30  ;;  %v3943_v31 = vpack.c.bf16 %v2217_v26, %v2215_v23  ;;  %v2240_v23 = vld [vmem:[#allocation31 + $0xf0] sm:$0xff]  ;;  %v2243_v26 = vld [vmem:[#allocation31 + $0x108] sm:$0xff] }
 0xcbc   :  { %v2200_v41 = vld [vmem:[#allocation28 + $0x30] sm:$0xff] }
 0xcbd   :  { %v2555_v42 = vmin.f32 %v2551_v40, 0.0  ;;  %vm2554_vm0 = vcmp.gt.f32.partialorder %v2551_v40, 0.0 }
 0xcbf   :  { %v2556_v43 = vmul.f32 1.442695, %v2555_v42  ;;  %v2203_v42 = vld [vmem:[#allocation28 + $0x48] sm:$0xff] }
 0xcc1   :  { %4165 = vpow2.f32 %v2556_v43  ;;  %v3931_v43 = vpack.c.bf16 %v2203_v42, %v2200_v41  ;;  %v2220_v41 = vld [vmem:[#allocation31 + $0x50] sm:$0xff]  ;;  %v2223_v42 = vld [vmem:[#allocation31 + $0x68] sm:$0xff] }
 0xccb   :  { %v4166_v44 = vpop.eup %4165 }
 0xccc   :  { %v3516_v45 = vadd.f32 -1.0, %v4166_v44  ;;  %v2207_v44 = vld [vmem:[#allocation28 + $0x68] sm:$0xff] }
 0xcce   :  { %v2559_v46 = vsel %vm2554_vm0, %v2551_v40, %v3516_v45  ;;  %v2206_v45 = vld [vmem:[#allocation28 + $0x60] sm:$0xff] }
 0xccf   :  { %2567 = vrot.lane.b32.xlu1 %v2559_v46, %s4803_s7  ;;  %v4810_v46 = vmov 1  }
 0xcd0   :  { %4131 = vset.pattern.permute.xlu1 %v4810_v46  ;;  %4132 = vset.pattern.permute.xlu0 %v4810_v46  ;;  %v2222_v46 = vld [vmem:[#allocation31 + $0x60] sm:$0xff] }
 0xd41   :  { %v2568_v47 = vpop.permute.xlu1 %2567 }
 0xd42   :  { %3730 = vmatmul.mubr.msk.f32.vlgmr.msra.gmra.mrb[20].mxu1 %vm1038_vm8, %v2568_v47  ;;  %v2196_v47 = vld [vmem:[#allocation28 + $0x10] sm:$0xff] }
 0xd43   :  { %3734 = vmatprep.mubr.msk.f32.mxu1 %vm4805_vm11, %v4806_v61  ;;  %3733 = vmatpush3.msk.msra.mxu1 %vm1131_vm9, %v2192_v48  ;;  %v2199_v48 = vld [vmem:[#allocation28 + $0x28] sm:$0xff] }
 0xd44   :  { %3737 = vmatprep.subr.mxu1 %v4806_v61 }
 0xe15   :  { %v2637_v52 = vpop.f32.mrb[20].mxu1 }
 0xe16   :  { %v2638_v53 = vadd.f32 %v3517_v50, %v2637_v52  ;;  %v3731_v54 = vpop.f32.mrb[21].mxu1  ;;  %v2312_v50 = vld [vmem:[%s5010_s29] sm:$0x3]  ;;  %v3934_v52 = vpack.c.bf16 %v2199_v48, %v2196_v47  ;;  %v2224_v47 = vld [vmem:[#allocation31 + $0x70] sm:$0xff]  ;;  %s4816_s29 = smov 32  }
 0xe17   :  { %v2202_v54 = vld [vmem:[#allocation28 + $0x40] sm:$0xff] }
 0xe18   :  { %3735 = vmatmul.mubr.msk.f32.vlgmr.msra.gmra.mrb[22].mxu1 %vm1124_vm10, %v2638_v53  ;;  %v2227_v48 = vld [vmem:[#allocation31 + $0x88] sm:$0xff] }
 0xe19   :  { %3739 = vmatprep.mubr.msk.f32.mxu1 %vm4805_vm11, %v4806_v61 }
 0xeeb   :  { %v2719_v56 = vpop.f32.mrb[22].mxu1 }
 0xeec   :  { %v2720_v59 = vadd.f32 %v3519_v3, %v2719_v56  ;;  %v3736_v1 = vpop.f32.mrb[23].mxu1  ;;  %v2205_v3 = vld [vmem:[#allocation28 + $0x58] sm:$0xff] }
 0xeed   :  { %v5384_v1 = vld [vmem:[#allocation30] sm:$0x7] }
 0xeee   :  { %2730 = vrot.lane.b32.xlu0 %v2720_v59, %s4803_s7  ;;  %v3522_v24 = vmul.f32 -1.442695, %v2720_v59  ;;  %v3937_v59 = vpack.c.bf16 %v2205_v3, %v2202_v54  ;;  %v2226_v54 = vld [vmem:[#allocation31 + $0x80] sm:$0xff]  ;;  %v2228_v3 = vld [vmem:[#allocation31 + $0x90] sm:$0xff] }
 0xef0   :  { %4167 = vpow2.f32 %v3522_v24  ;;  %v2909_v24 = vrot.slane %v5384_v1, %v5248_v51 }
 0xefa   :  { %v4168_v8 = vpop.eup %4167 }
 0xefb   :  { %v2726_v9 = vadd.f32 1.0, %v4168_v8  ;;  %v2208_v8 = vld [vmem:[#allocation28 + $0x70] sm:$0xff] }
 0xefd   :  { %4169 = vrcp.f32 %v2726_v9 }
 0xf07   :  { %v4170_v25 = vpop.eup %4169 }
 0xf60   :  { %v2731_v10 = vpop.permute.xlu0 %2730 }
 0xf61   :  { %v2733_v11 = vmul.f32 %v4170_v25, %v2731_v10 }
 0xf63   :  { %v2734_v12 = vadd.f32 %v2733_v11, %v2551_v40  ;;  %v3929_v40 = vpack.c.bf16 %v2204_v35, %v2201_v32  ;;  %v2214_v32 = vld [vmem:[#allocation31 + $0x20] sm:$0xff]  ;;  %v2216_v35 = vld [vmem:[#allocation31 + $0x30] sm:$0xff] }
 0xf65   :  { %v2735_v13 = vmul.f32 0.999995, %v2734_v12 }
 0xf67   :  { %v2737_v14 = vsel %vm2736_vm3, %v2735_v13, -inf }
 0xf68   :  { %v2738_v15 = vrot.slane %v2737_v14, 4 }
 0xf6a   :  { %v2739_v16 = vmax.f32 %v2737_v14, %v2738_v15 }
 0xf6c   :  { %v2740_v17 = vrot.slane %v2739_v16, 2 }
 0xf6e   :  { %v2741_v18 = vmax.f32 %v2739_v16, %v2740_v17 }
 0xf70   :  { %v2742_v19 = vrot.slane %v2741_v18, 1 }
 0xf72   :  { %v2743_v20 = vmax.f32 %v2741_v18, %v2742_v19  ;;  %v4811_v19 = vmov 2  }
 0xf74   :  { %v2744_v21 = vsub.f32 %v2735_v13, %v2743_v20  ;;  %v5396_v13 = vld [vmem:[#allocation21] sm:$0x7]  ;;  %v2213_v20 = vld [vmem:[#allocation31 + $0x18] sm:$0xff] }
 0xf75   :  { %v1727_v15 = vrot.slane %v5396_v13, %v5248_v51 }
 0xf76   :  { %v2745_v22 = vmul.f32 1.442695, %v2744_v21  ;;  %v2210_v21 = vld [vmem:[#allocation31] sm:$0xff] }
 0xf77   :  { %v5410_v17 = vadd.f32 %v5328_v7, %v1727_v15  ;;  %v2212_v7 = vld [vmem:[#allocation31 + $0x10] sm:$0xff] }
 0xf78   :  { %4171 = vpow2.f32 %v2745_v22  ;;  %v3941_v30 = vpack.c.bf16 %v2212_v7, %v2210_v21  ;;  %v2238_v7 = vld [vmem:[#allocation31 + $0xe0] sm:$0xff] }
 0xf82   :  { %v5369_v39 = vpop.eup %4171 }
 0xf83   :  { %3738 = vmatpush3.msk.msra.mxu1 %vm533_vm1, %v5369_v39 }
 0xf84   :  { %3740 = vmatmul.mubr.msk.f32.vlgmr.msra.gmra.mrb[24].mxu1 %vm526_vm2, %v2313_v37  ;;  %3926 = vmatprep.subr.bf16.mxu1 %v3925_v36  ;;  %v2221_v36 = vld [vmem:[#allocation31 + $0x58] sm:$0xff]  ;;  %v3945_v37 = vpack.c.bf16 %v2216_v35, %v2214_v32  ;;  %v2242_v35 = vld [vmem:[#allocation31 + $0x100] sm:$0xff] }
 0xf85   :  { %3928 = vmatpush1.bf16.msra.mxu1 %v3927_v38  ;;  %2981 = vmatprep.mubr.f32.mxu1 %v4806_v61 }
 0xf86   :  { %3930 = vmatprep.subr.bf16.mxu1 %v3929_v40  ;;  %v2218_v40 = vld [vmem:[#allocation31 + $0x40] sm:$0xff] }
 0xf89   :  { %3932 = vmatpush1.bf16.msra.mxu1 %v3931_v43  ;;  %v2225_v43 = vld [vmem:[#allocation31 + $0x78] sm:$0xff] }
 0xf8a   :  { %2925 = vmatprep.subr.mxu1 %v2207_v44  ;;  %v3949_v44 = vpack.c.bf16 %v2220_v41, %v2218_v40  ;;  %v2913_v40 = vrot.slane %v5384_v1, %v5256_v58 }
 0xf8d   :  { %2926 = vmatpush1.msra.mxu1 %v2206_v45  ;;  %v3951_v45 = vpack.c.bf16 %v2225_v43, %v2223_v42 }
 0xf8e   :  { %3527 = vmatmul.mubr.msk.f32.vlgmr.msra.gmra.mrb[26].mxu1 %vm932_vm5, %v5346_v27 }
0x1057   :  { %v2819_v53 = vpop.f32.mrb[24].mxu1 }
0x1058   :  { %v3741_v56 = vpop.f32.mrb[25].mxu1  ;;  %3743 = vmatpush3.msk.msra.mxu0 %vm533_vm1, %v2819_v53 }
0x1059   :  { %3745 = vmatmul.mubr.msk.f32.vlgmr.msra.gmra.mrb[24].mxu0 %vm526_vm2, %v2312_v50  ;;  %3933 = vmatprep.subr.bf16.mxu0 %v4804_v60  ;;  %v2229_v50 = vld [vmem:[#allocation31 + $0x98] sm:$0xff]  ;;  %v2231_v56 = vld [vmem:[#allocation31 + $0xa8] sm:$0xff] }
0x105a   :  { %3935 = vmatpush3.bf16.msra.mxu0 %v3934_v52  ;;  %3757 = vmatprep.mubr.msk.f32.mxu0 %vm4805_vm11, %v4806_v61  ;;  %v3953_v52 = vpack.c.bf16 %v2224_v47, %v2222_v46  ;;  %v3955_v53 = vpack.c.bf16 %v2229_v50, %v2227_v48  ;;  %v2247_v46 = vld [vmem:[#allocation31 + $0x128] sm:$0xff]  ;;  %v2249_v47 = vld [vmem:[#allocation31 + $0x138] sm:$0xff] }
0x105b   :  { %3936 = vmatprep.subr.bf16.mxu0 %v4804_v60  ;;  %v3975_v50 = vpack.c.bf16 %v2249_v47, %v2247_v46  ;;  %v2256_v46 = vld [vmem:[#allocation34 + $0x28] sm:$0xff] }
0x105e   :  { %3938 = vmatpush3.bf16.msra.mxu0 %v3937_v59  ;;  %v2233_v59 = vld [vmem:[#allocation31 + $0xb8] sm:$0xff] }
0x105f   :  { %3755 = vmatprep.subr.mxu0 %v4806_v61 }
0x1061   :  { %v5389_v9 = vpop.f32.mrb[26].mxu1 }
0x1062   :  { %v2985_v25 = vpop.f32.mrb[27].mxu1  ;;  %3756 = vmatpush3.msra.mxu0 %v2208_v8  ;;  %v3959_v8 = vpack.c.bf16 %v2233_v59, %v2231_v56  ;;  %v4812_v56 = vmov 3  }
0x1063   :  { %v5391_v10 = vadd.f32 %v2985_v25, %v2909_v24  ;;  %3758 = vmatmul.mubr.msk.f32.vlgmr.msra.gmra.mrb[26].mxu0 %vm932_vm5, %v5346_v27  ;;  %v5405_v27 = vadd.f32 %v5322_v0, %v1727_v15  ;;  %v2211_v0 = vld [vmem:[#allocation31 + $0x8] sm:$0xff]  ;;  %v3957_v24 = vpack.c.bf16 %v2228_v3, %v2226_v54  ;;  %v2230_v25 = vld [vmem:[#allocation31 + $0xa0] sm:$0xff]  ;;  %vm3400_vm5 = vcmask 254976  }
0x1064   :  { %v3939_v22 = vpack.c.bf16 %v2213_v20, %v2211_v0  ;;  %v2239_v0 = vld [vmem:[#allocation31 + $0xe8] sm:$0xff]  ;;  %v2241_v20 = vld [vmem:[#allocation31 + $0xf8] sm:$0xff] }
0x1065   :  { %v3060_v11 = vmin.f32 %v5391_v10, 0.0  ;;  %vm3058_vm1 = vcmp.gt.f32.partialorder %v5391_v10, 0.0 }
0x1066   :  { %3940 = vmatprep.subr.bf16.mxu1 %v3939_v22  ;;  %v3967_v22 = vpack.c.bf16 %v2241_v20, %v2239_v0 }
0x1067   :  { %v3062_v12 = vmul.f32 1.442695, %v3060_v11  ;;  %3942 = vmatpush1.bf16.msra.mxu1 %v3941_v30  ;;  %v2232_v11 = vld [vmem:[#allocation31 + $0xb0] sm:$0xff]  ;;  %v2245_v30 = vld [vmem:[#allocation31 + $0x118] sm:$0xff] }
0x1068   :  { %3944 = vmatprep.subr.bf16.mxu1 %v3943_v31  ;;  %v3969_v31 = vpack.c.bf16 %v2240_v23, %v2238_v7  ;;  %v3971_v32 = vpack.c.bf16 %v2245_v30, %v2243_v26 }
0x1069   :  { %4173 = vpow2.f32 %v3062_v12  ;;  %v2235_v12 = vld [vmem:[#allocation31 + $0xc8] sm:$0xff] }
0x106a   :  { %4175 = vrcp.f32 %v5289_v29 }
0x106b   :  { %3946 = vmatpush1.bf16.msra.mxu1 %v3945_v37 }
0x1073   :  { %v4174_v61 = vpop.eup %4173 }
0x1074   :  { %v3529_v14 = vadd.f32 -1.0, %v4174_v61  ;;  %v4176_v29 = vpop.eup %4175  ;;  %v2237_v61 = vld [vmem:[#allocation31 + $0xd8] sm:$0xff] }
0x1075   :  { %v5415_v18 = vmul.f32 %v4176_v29, %v5210_v33  ;;  %v2219_v33 = vld [vmem:[#allocation31 + $0x48] sm:$0xff]  ;;  %v3963_v15 = vpack.c.bf16 %v2237_v61, %v2235_v12  ;;  %v2236_v29 = vld [vmem:[#allocation31 + $0xd0] sm:$0xff] }
0x1076   :  { %v3068_v16 = vsel %vm3058_vm1, %v5391_v10, %v3529_v14  ;;  %v3947_v38 = vpack.c.bf16 %v2221_v36, %v2219_v33  ;;  %v3961_v14 = vpack.c.bf16 %v2232_v11, %v2230_v25  ;;  %v2244_v33 = vld [vmem:[#allocation31 + $0x110] sm:$0xff] }
0x1077   :  { %3083 = vrot.lane.b32.xlu1 %v3068_v16, %s4808_s15  ;;  %v2234_v16 = vld [vmem:[#allocation31 + $0xc0] sm:$0xff]  ;;  %v3973_v36 = vpack.c.bf16 %v2244_v33, %v2242_v35 }
0x1078   :  { %3948 = vmatprep.subr.bf16.mxu1 %v3947_v38  ;;  %v3965_v21 = vpack.c.bf16 %v2236_v29, %v2234_v16 }
0x1079   :  { %3950 = vmatpush1.bf16.msra.mxu1 %v3949_v44 }
0x107a   :  { %3952 = vmatprep.subr.bf16.mxu1 %v3951_v45 }
0x107b   :  { %1921 = vrot.lane.b32.xlu1 %v5405_v27, %s4808_s15 }
0x107d   :  { %3954 = vmatpush1.bf16.msra.mxu1 %v3953_v52  ;;  %v2246_v52 = vld [vmem:[#allocation31 + $0x120] sm:$0xff] }
0x107e   :  { %3956 = vmatprep.subr.bf16.mxu1 %v3955_v53  ;;  %v2248_v53 = vld [vmem:[#allocation31 + $0x130] sm:$0xff] }
0x107f   :  { %1925 = vrot.lane.b32.xlu1 %v5410_v17, %s4808_s15  ;;  %v3977_v54 = vpack.c.bf16 %v2248_v53, %v2246_v52  ;;  %v2257_v52 = vld [vmem:[#allocation34 + $0x30] sm:$0xff] }
0x1081   :  { %3958 = vmatpush1.bf16.msra.mxu1 %v3957_v24  ;;  %v1731_v24 = vrot.slane %v5396_v13, %v5256_v58 }
0x1082   :  { %3960 = vmatprep.subr.bf16.mxu1 %v3959_v8 }
0x1083   :  { %1960 = vperm.xlu1 %4131, %v5415_v18   ;;  %v1885_v25 = vadd.f32 %v5320_v4, %v1731_v24  ;;  %v1890_v11 = vadd.f32 %v5326_v6, %v1731_v24  ;;  %v4814_v4 = vmov 4   ;;  %v1723_v6 = vrot.slane %v5396_v13, %v5246_v49  ;;  %v2267_v24 = vld [vmem:[#allocation34 + $0x80] sm:$0xff] }
0x1085   :  { %3962 = vmatpush1.bf16.msra.mxu1 %v3961_v14 }
0x1086   :  { %3964 = vmatprep.subr.bf16.mxu1 %v3963_v15  ;;  %v1814_v15 = vadd.f32 %v5324_v5, %v1723_v6 }
0x1087   :  { %4133 = vset.pattern.permute.xlu1 %v4811_v19 }
0x1088   :  { %1980 = vperm.xlu1 %4133, %v5415_v18  }
0x1089   :  { %3966 = vmatpush1.bf16.msra.mxu1 %v3965_v21 }
0x108a   :  { %3968 = vmatprep.subr.bf16.mxu1 %v3967_v22 }
0x108d   :  { %3970 = vmatpush1.bf16.msra.mxu1 %v3969_v31 }
0x108e   :  { %3972 = vmatprep.subr.bf16.mxu1 %v3971_v32 }
0x1091   :  { %3974 = vmatpush1.bf16.msra.mxu1 %v3973_v36 }
0x1092   :  { %3976 = vmatprep.subr.bf16.mxu1 %v3975_v50  ;;  %v2258_v50 = vld [vmem:[#allocation34 + $0x38] sm:$0xff] }
0x1095   :  { %3978 = vmatpush1.bf16.msra.mxu1 %v3977_v54  ;;  %v2260_v54 = vld [vmem:[#allocation34 + $0x48] sm:$0xff] }
0x1096   :  { %4019 = vmatprep.subr.bf16.mxu1 %v4804_v60 }
0x10e9   :  { %v3084_v21 = vpop.permute.xlu1 %3083 }
0x10ed   :  { %v1922_v13 = vpop.permute.xlu1 %1921 }
0x10f1   :  { %v1926_v30 = vpop.permute.xlu1 %1925 }
0x112c   :  { %v2895_v37 = vpop.f32.mrb[24].mxu0 }
0x112d   :  { %4177 = vrcp.f32 %v2895_v37  ;;  %v3746_v38 = vpop.f32.mrb[25].mxu0 }
0x112e   :  { %v2252_v38 = vld [vmem:[#allocation34 + $0x8] sm:$0xff] }
0x1136   :  { %v3054_v41 = vpop.f32.mrb[26].mxu0 }
0x1137   :  { %v4178_v42 = vpop.eup %4177  ;;  %v3055_v43 = vadd.f32 %v3054_v41, %v2913_v40  ;;  %v3759_v44 = vpop.f32.mrb[27].mxu0  ;;  %v2255_v40 = vld [vmem:[#allocation34 + $0x20] sm:$0xff] }
0x1138   :  { %v5423_v45 = vmul.f32 %v4178_v42, %v5369_v39  ;;  %v2251_v41 = vld [vmem:[#allocation34] sm:$0xff]  ;;  %v3979_v42 = vpack.c.bf16 %v2255_v40, %v2252_v38  ;;  %v2253_v44 = vld [vmem:[#allocation34 + $0x10] sm:$0xff]  ;;  %v2278_v40 = vld [vmem:[#allocation34 + $0xd8] sm:$0xff] }
0x1139   :  { %v3061_v48 = vmin.f32 %v3055_v43, 0.0  ;;  %vm3059_vm2 = vcmp.gt.f32.partialorder %v3055_v43, 0.0 }
0x113a   :  { %3366 = vperm.xlu1 %4133, %v5423_v45   ;;  %3980 = vmatprep.subr.bf16.mxu0 %v3979_v42  ;;  %v2280_v42 = vld [vmem:[#allocation34 + $0xe8] sm:$0xff] }
0x113b   :  { %v3064_v3 = vmul.f32 1.442695, %v3061_v48  ;;  %v4020_v48 = vpack.c.bf16 %v2256_v46, %v2253_v44  ;;  %v2285_v44 = vld [vmem:[#allocation34 + $0x110] sm:$0xff] }
0x113d   :  { %4179 = vpow2.f32 %v3064_v3  ;;  %v2259_v3 = vld [vmem:[#allocation34 + $0x40] sm:$0xff] }
0x113e   :  { %4135 = vset.pattern.permute.xlu1 %v4812_v56  ;;  %4181 = vrcp.f32 %v5287_v28  ;;  %v4813_v28 = vmov 0  }
0x113f   :  { %2000 = vperm.xlu1 %4135, %v5415_v18  }
0x1147   :  { %v4180_v39 = vpop.eup %4179 }
0x1148   :  { %v3530_v59 = vadd.f32 -1.0, %v4180_v39  ;;  %v4182_v12 = vpop.eup %4181 }
0x1149   :  { %v1417_v61 = vmul.f32 %v4182_v12, %v5212_v34  ;;  %v1808_v34 = vadd.f32 %v5318_v62, %v1723_v6  ;;  %v2266_v12 = vld [vmem:[#allocation34 + $0x78] sm:$0xff]  ;;  %v2268_v6 = vld [vmem:[#allocation34 + $0x88] sm:$0xff] }
0x114a   :  { %v3069_v8 = vsel %vm3059_vm2, %v3055_v43, %v3530_v59  ;;  %v2254_v43 = vld [vmem:[#allocation34 + $0x18] sm:$0xff]  ;;  %v2264_v59 = vld [vmem:[#allocation34 + $0x68] sm:$0xff] }
0x114b   :  { %3085 = vrot.lane.b32.xlu0 %v3069_v8, %s4808_s15  ;;  %v3502_v14 = vmul.f32 -1.442695, %v1808_v34  ;;  %v3981_v47 = vpack.c.bf16 %v2254_v43, %v2251_v41  ;;  %v2263_v8 = vld [vmem:[#allocation34 + $0x60] sm:$0xff]  ;;  %v2277_v41 = vld [vmem:[#allocation34 + $0xd0] sm:$0xff]  ;;  %v2282_v43 = vld [vmem:[#allocation34 + $0xf8] sm:$0xff] }
0x114d   :  { %4183 = vpow2.f32 %v3502_v14  ;;  %3982 = vmatpush1.bf16.msra.mxu0 %v3981_v47  ;;  %v2270_v14 = vld [vmem:[#allocation34 + $0x98] sm:$0xff] }
0x114f   :  { %1923 = vrot.lane.b32.xlu0 %v1885_v25, %s4808_s15  ;;  %v5457_v25 = vpop.permute.xlu1 %1960 }
0x1153   :  { %1927 = vrot.lane.b32.xlu0 %v1890_v11, %s4808_s15  ;;  %v3987_v11 = vpack.c.bf16 %v2267_v24, %v2264_v59  ;;  %v2287_v59 = vld [vmem:[#allocation34 + $0x120] sm:$0xff] }
0x1157   :  { %1964 = vperm.xlu0 %4132, %v1417_v61   ;;  %v4184_v16 = vpop.eup %4183 }
0x1158   :  { %v1905_v29 = vadd.f32 1.0, %v4184_v16 }
0x115b   :  { %3356 = vperm.xlu0 %4132, %v5423_v45  }
0x115f   :  { %4134 = vset.pattern.permute.xlu0 %v4811_v19  ;;  %v3504_v19 = vmul.f32 -1.442695, %v1814_v15  ;;  %v2273_v15 = vld [vmem:[#allocation34 + $0xb0] sm:$0xff] }
0x1160   :  { %1984 = vperm.xlu0 %4134, %v1417_v61  }
0x1161   :  { %4185 = vpow2.f32 %v3504_v19 }
0x1162   :  { %4187 = vrcp.f32 %v1905_v29 }
0x1164   :  { %4136 = vset.pattern.permute.xlu0 %v4812_v56  ;;  %v2262_v56 = vld [vmem:[#allocation34 + $0x58] sm:$0xff] }
0x1165   :  { %2004 = vperm.xlu0 %4136, %v1417_v61   ;;  %v4023_v39 = vpack.c.bf16 %v2262_v56, %v2259_v3  ;;  %v2288_v3 = vld [vmem:[#allocation34 + $0x128] sm:$0xff]  ;;  %v2291_v56 = vld [vmem:[#allocation34 + $0x140] sm:$0xff] }
0x1169   :  { %4138 = vset.pattern.permute.xlu0 %v4813_v28 }
0x116a   :  { %1954 = vperm.xlu0 %4138, %v1417_v61  }
0x116b   :  { %v4186_v0 = vpop.eup %4185 }
0x116c   :  { %v1907_v20 = vadd.f32 1.0, %v4186_v0  ;;  %v4188_v5 = vpop.eup %4187  ;;  %v3989_v0 = vpack.c.bf16 %v2266_v12, %v2263_v8  ;;  %v4003_v8 = vpack.c.bf16 %v2291_v56, %v2288_v3  ;;  %v2289_v12 = vld [vmem:[#allocation34 + $0x130] sm:$0xff] }
0x116e   :  { %4140 = vset.pattern.permute.xlu0 %v4814_v4  ;;  %4189 = vrcp.f32 %v1907_v20 }
0x116f   :  { %2024 = vperm.xlu0 %4140, %v1417_v61   ;;  %v2265_v61 = vld [vmem:[#allocation34 + $0x70] sm:$0xff] }
0x1170   :  { %v4026_v20 = vpack.c.bf16 %v2268_v6, %v2265_v61  ;;  %v2292_v61 = vld [vmem:[#allocation34 + $0x148] sm:$0xff]  ;;  %v2294_v6 = vld [vmem:[#allocation34 + $0x158] sm:$0xff] }
0x1178   :  { %v4190_v35 = vpop.eup %4189 }
0x11bd   :  { %v3086_v22 = vpop.permute.xlu0 %3085 }
0x11be   :  { %v3087_v7 = vsel %vm1633_vm15, %v3084_v21, %v3086_v22  ;;  %3531 = vmatprep.mubr.msk.f32.mxu1 %vm1038_vm8, %v3086_v22  ;;  %v2269_v21 = vld [vmem:[#allocation34 + $0x90] sm:$0xff]  ;;  %v3991_v22 = vpack.c.bf16 %v2273_v15, %v2270_v14 }
0x11bf   :  { %3156 = vmatmul.mubr.f32.vlgmr.msra.gmra.mrb[28].mxu1 %v3087_v7  ;;  %v2272_v7 = vld [vmem:[#allocation34 + $0xa8] sm:$0xff]  ;;  %v2297_v14 = vld [vmem:[#allocation34 + $0x170] sm:$0xff] }
0x11c0   :  { %4021 = vmatpush1.bf16.msra.mxu1 %v4020_v48  ;;  %v4032_v48 = vpack.c.bf16 %v2280_v42, %v2277_v41  ;;  %v2306_v42 = vld [vmem:[#allocation34 + $0x1b8] sm:$0xff] }
0x11c1   :  { %v5447_v62 = vpop.permute.xlu0 %1923  ;;  %4022 = vmatprep.subr.bf16.mxu1 %v4804_v60 }
0x11c2   :  { %v1929_v23 = vsel %vm1633_vm15, %v1922_v13, %v5447_v62  ;;  %v2271_v13 = vld [vmem:[#allocation34 + $0xa0] sm:$0xff] }
0x11c3   :  { %v1935_v26 = vmul.f32 %v4188_v5, %v1929_v23  ;;  %v2274_v5 = vld [vmem:[#allocation34 + $0xb8] sm:$0xff]  ;;  %v2276_v23 = vld [vmem:[#allocation34 + $0xc8] sm:$0xff] }
0x11c4   :  { %4024 = vmatpush1.bf16.msra.mxu1 %v4023_v39 }
0x11c5   :  { %v1939_v31 = vadd.f32 %v1935_v26, %v5252_v55  ;;  %v5452_v32 = vpop.permute.xlu0 %1927  ;;  %v2261_v55 = vld [vmem:[#allocation34 + $0x50] sm:$0xff]  ;;  %4025 = vmatprep.subr.bf16.mxu1 %v4804_v60  ;;  %v2279_v26 = vld [vmem:[#allocation34 + $0xe0] sm:$0xff] }
0x11c6   :  { %v1930_v33 = vsel %vm1633_vm15, %v1926_v30, %v5452_v32  ;;  %v3983_v53 = vpack.c.bf16 %v2261_v55, %v2258_v50  ;;  %v1981_v30 = vpop.permute.xlu1 %1980  ;;  %v3995_v38 = vpack.c.bf16 %v2279_v26, %v2276_v23  ;;  %v2281_v50 = vld [vmem:[#allocation34 + $0xf0] sm:$0xff]  ;;  %v3999_v55 = vpack.c.bf16 %v2285_v44, %v2282_v43 }
0x11c7   :  { %v1937_v36 = vmul.f32 %v4190_v35, %v1930_v33  ;;  %v5462_v16 = vmul.f32 0.999995, %v1939_v31  ;;  %v3993_v33 = vpack.c.bf16 %v2272_v7, %v2269_v21  ;;  %v2295_v21 = vld [vmem:[#allocation34 + $0x160] sm:$0xff]  ;;  %v2309_v43 = vld [vmem:[#allocation34 + $0x1d0] sm:$0xff] }
0x11c8   :  { %3984 = vmatprep.subr.bf16.mxu0 %v3983_v53  ;;  %4027 = vmatpush1.bf16.msra.mxu1 %v4026_v20  ;;  %v2283_v53 = vld [vmem:[#allocation34 + $0x100] sm:$0xff]  ;;  %v2296_v20 = vld [vmem:[#allocation34 + $0x168] sm:$0xff]  ;;  %v4015_v44 = vpack.c.bf16 %v2309_v43, %v2306_v42  ;;  %v3503_v43 = vmul.f32 -1.442695, %v5405_v27 }
0x11c9   :  { %v1941_v37 = vadd.f32 %v1937_v36, %v5259_v63  ;;  %v3985_v63 = vpack.c.bf16 %v2260_v54, %v2257_v52  ;;  %v1987_v35 = vmul.f32 %v1981_v30, %v5462_v16  ;;  %v4029_v36 = vpack.c.bf16 %v2274_v5, %v2271_v13  ;;  %4028 = vmatprep.subr.bf16.mxu1 %v4804_v60  ;;  %v2284_v52 = vld [vmem:[#allocation34 + $0x108] sm:$0xff]  ;;  %v2286_v54 = vld [vmem:[#allocation34 + $0x118] sm:$0xff]  ;;  %v2303_v5 = vld [vmem:[#allocation34 + $0x1a0] sm:$0xff] }
0x11ca   :  { %v4035_v39 = vpack.c.bf16 %v2286_v54, %v2283_v53  ;;  %v2300_v13 = vld [vmem:[#allocation34 + $0x188] sm:$0xff] }
0x11cb   :  { %v5460_v34 = vmul.f32 0.999995, %v1941_v37  ;;  %3986 = vmatpush1.bf16.msra.mxu0 %v3985_v63  ;;  %v2275_v37 = vld [vmem:[#allocation34 + $0xc0] sm:$0xff]  ;;  %v4001_v63 = vpack.c.bf16 %v2284_v52, %v2281_v50  ;;  %v2310_v52 = vld [vmem:[#allocation34 + $0x1d8] sm:$0xff] }
0x11cc   :  { %3988 = vmatprep.subr.bf16.mxu0 %v3987_v11  ;;  %4030 = vmatpush1.bf16.msra.mxu1 %v4029_v36  ;;  %v3997_v47 = vpack.c.bf16 %v2278_v40, %v2275_v37  ;;  %v2290_v11 = vld [vmem:[#allocation34 + $0x138] sm:$0xff]  ;;  %v2301_v37 = vld [vmem:[#allocation34 + $0x190] sm:$0xff]  ;;  %v2307_v50 = vld [vmem:[#allocation34 + $0x1c0] sm:$0xff] }
0x11cd   :  { %4031 = vmatprep.subr.bf16.mxu1 %v4804_v60  ;;  %v4005_v15 = vpack.c.bf16 %v2290_v11, %v2287_v59  ;;  %v2302_v36 = vld [vmem:[#allocation34 + $0x198] sm:$0xff]  ;;  %v4047_v53 = vpack.c.bf16 %v2310_v52, %v2307_v50 }
0x11cf   :  { %3990 = vmatpush1.bf16.msra.mxu0 %v3989_v0  ;;  %v4007_v0 = vpack.c.bf16 %v2297_v14, %v2294_v6 }
0x11d0   :  { %3992 = vmatprep.subr.bf16.mxu0 %v3991_v22  ;;  %4033 = vmatpush1.bf16.msra.mxu1 %v4032_v48  ;;  %v2298_v22 = vld [vmem:[#allocation34 + $0x178] sm:$0xff]  ;;  %v2308_v48 = vld [vmem:[#allocation34 + $0x1c8] sm:$0xff] }
0x11d1   :  { %4034 = vmatprep.subr.bf16.mxu1 %v4804_v60  ;;  %v4041_v30 = vpack.c.bf16 %v2298_v22, %v2295_v21 }
0x11d3   :  { %3994 = vmatpush1.bf16.msra.mxu0 %v3993_v33  ;;  %v4011_v33 = vpack.c.bf16 %v2303_v5, %v2300_v13 }
0x11d4   :  { %3996 = vmatprep.subr.bf16.mxu0 %v3995_v38  ;;  %4036 = vmatpush1.bf16.msra.mxu1 %v4035_v39  ;;  %v2304_v38 = vld [vmem:[#allocation34 + $0x1a8] sm:$0xff] }
0x11d5   :  { %4037 = vmatprep.subr.bf16.mxu1 %v4804_v60  ;;  %v4044_v41 = vpack.c.bf16 %v2304_v38, %v2301_v37 }
0x11d6   :  { %v1965_v19 = vpop.permute.xlu0 %1964 }
0x11d7   :  { %v1968_v29 = vmul.f32 %v1965_v19, %v5460_v34  ;;  %3998 = vmatpush1.bf16.msra.mxu0 %v3997_v47  ;;  %v4038_v19 = vpack.c.bf16 %v2292_v61, %v2289_v12  ;;  %v2305_v47 = vld [vmem:[#allocation34 + $0x1b0] sm:$0xff]  ;;  %v2311_v61 = vld [vmem:[#allocation36] sm:$0x7] }
0x11d8   :  { %4000 = vmatprep.subr.bf16.mxu0 %v3999_v55  ;;  %v4017_v55 = vpack.c.bf16 %v2308_v48, %v2305_v47  ;;  %v3174_v6 = vrot.slane %v2311_v61, %v5256_v58  ;;  %v3367_v58 = vpop.permute.xlu1 %3366 }
0x11d9   :  { %1973 = vrot.lane.b32.xlu0 %v1968_v29, %s4808_s15  ;;  %v2293_v29 = vld [vmem:[#allocation34 + $0x150] sm:$0xff]  ;;  %4039 = vmatpush1.bf16.msra.mxu1 %v4038_v19 }
0x11da   :  { %v5467_v31 = vpop.permute.xlu0 %3356  ;;  %v4009_v26 = vpack.c.bf16 %v2296_v20, %v2293_v29  ;;  %4040 = vmatprep.subr.bf16.mxu1 %v4804_v60  ;;  %v3170_v29 = vrot.slane %v2311_v61, %v5248_v51 }
0x11db   :  { %4002 = vmatpush1.bf16.msra.mxu0 %v4001_v63  ;;  %v2250_v63 = vld [vmem:[#allocation33] sm:$0x3] }
0x11dc   :  { %4004 = vmatprep.subr.bf16.mxu0 %v4003_v8  ;;  %v3074_v39 = vrot.slane %v2250_v63, %v5246_v49 }
0x11dd   :  { %1991 = vrot.lane.b32.xlu0 %v1987_v35, %s4815_s5  ;;  %v2299_v35 = vld [vmem:[#allocation34 + $0x180] sm:$0xff]  ;;  %4042 = vmatpush1.bf16.msra.mxu1 %v4041_v30 }
0x11de   :  { %v4013_v40 = vpack.c.bf16 %v2302_v36, %v2299_v35  ;;  %4043 = vmatprep.subr.bf16.mxu1 %v4804_v60 }
0x11df   :  { %v5472_v46 = vpop.permute.xlu0 %1984  ;;  %4006 = vmatpush1.bf16.msra.mxu0 %v4005_v15 }
0x11e0   :  { %4008 = vmatprep.subr.bf16.mxu0 %v4007_v0  ;;  %v1988_v22 = vmul.f32 %v5472_v46, %v5460_v34 }
0x11e1   :  { %4045 = vmatpush1.bf16.msra.mxu1 %v4044_v41 }
0x11e2   :  { %4046 = vmatprep.subr.bf16.mxu1 %v4804_v60  ;;  %v3078_v60 = vrot.slane %v2250_v63, %v5248_v51  ;;  %v1967_v51 = vmul.f32 %v5457_v25, %v5462_v16 }
0x11e3   :  { %4010 = vmatpush1.bf16.msra.mxu0 %v4009_v26 }
0x11e4   :  { %v5475_v24 = vpop.permute.xlu0 %2004  ;;  %4012 = vmatprep.subr.bf16.mxu0 %v4011_v33  ;;  %v2905_v33 = vrot.slane %v5384_v1, %v5246_v49 }
0x11e5   :  { %4048 = vmatpush1.bf16.msra.mxu1 %v4047_v53 }
0x11e7   :  { %4014 = vmatpush1.bf16.msra.mxu0 %v4013_v40  ;;  %v2984_v40 = vadd.f32 %v5389_v9, %v2905_v33 }
0x11e8   :  { %4016 = vmatprep.subr.bf16.mxu0 %v4015_v44 }
0x11e9   :  { %v1955_v7 = vpop.permute.xlu0 %1954 }
0x11ea   :  { %v1958_v23 = vmul.f32 %v1955_v7, %v5460_v34 }
0x11eb   :  { %4018 = vmatpush1.bf16.msra.mxu0 %v4017_v55 }
0x11ee   :  { %v5483_v54 = vpop.permute.xlu0 %2024 }
0x124b   :  { %v1974_v3 = vpop.permute.xlu0 %1973 }
0x124c   :  { %v5485_v56 = vadd.f32 %v1974_v3, %v1958_v23 }
0x1292   :  { %v3157_v59 = vpop.f32.mrb[28].mxu1 }
0x1293   :  { %v3159_v8 = vpop.f32.mrb[29].mxu1  ;;  %v3158_v12 = vadd.f32 %v3157_v59, %v3074_v39 }
0x1294   :  { %v3160_v11 = vadd.f32 %v3159_v8, %v3078_v60 }
0x1296   :  { %3532 = vmatprep.mubr.msk.f32.mxu0 %vm1038_vm8, %v3160_v11  ;;  %3533 = vmatprep.mubr.msk.f32.mxu1 %vm1038_vm8, %v3160_v11 }
0x1297   :  { %3246 = vmatmul.mubr.f32.vlgmr.msra.gmra.mrb[28].mxu0 %v3158_v12  ;;  %3317 = vmatmul.mubr.f32.vlgmr.msra.gmra.mrb[30].mxu1 %v3158_v12 }
0x136a   :  { %v3247_v14 = vpop.f32.mrb[28].mxu0  ;;  %v3318_v15 = vpop.f32.mrb[30].mxu1 }
0x136b   :  { %v3319_v19 = vadd.f32 %v3318_v15, %v3174_v6  ;;  %v3249_v0 = vpop.f32.mrb[29].mxu0  ;;  %v3320_v20 = vpop.f32.mrb[31].mxu1 }
0x136c   :  { %v3250_v21 = vadd.f32 %v3249_v0, %v3170_v29  ;;  %v3391_v20 = vld [vmem:[%s5601_s22] sm:$0xff] }
0x136d   :  { %3338 = vrot.lane.b32.xlu1 %v3319_v19, %s4808_s15 }
0x1371   :  { %3336 = vrot.lane.b32.xlu1 %v3250_v21, %s4808_s15 }
0x1375   :  { %3376 = vperm.xlu1 %4135, %v5423_v45  }
0x1379   :  { %4137 = vset.pattern.permute.xlu1 %v4813_v28  ;;  %v2001_v28 = vpop.permute.xlu1 %2000 }
0x137a   :  { %1949 = vperm.xlu1 %4137, %v5415_v18   ;;  %v2007_v7 = vmul.f32 %v2001_v28, %v5462_v16 }
0x137e   :  { %3351 = vperm.xlu1 %4137, %v5423_v45  }
0x1382   :  { %4139 = vset.pattern.permute.xlu1 %v4814_v4 }
0x1383   :  { %2020 = vperm.xlu1 %4139, %v5415_v18   ;;  %v3166_v18 = vrot.slane %v2311_v61, %v5246_v49  ;;  %v2008_v49 = vmul.f32 %v5475_v24, %v5460_v34 }
0x1385   :  { %v3248_v4 = vadd.f32 %v3247_v14, %v3166_v18  ;;  %v1992_v14 = vpop.permute.xlu0 %1991 }
0x1387   :  { %3386 = vperm.xlu1 %4139, %v5423_v45   ;;  %v3535_v45 = vmul.f32 -1.442695, %v3250_v21  ;;  %v3534_v25 = vmul.f32 -1.442695, %v3248_v4 }
0x1389   :  { %4191 = vpow2.f32 %v3535_v45 }
0x138a   :  { %4193 = vpow2.f32 %v3534_v25 }
0x138b   :  { %1971 = vrot.lane.b32.xlu1 %v1967_v51, %s4808_s15 }
0x138f   :  { %1993 = vrot.lane.b32.xlu1 %v1988_v22, %s4815_s5 }
0x1393   :  { %2011 = vrot.lane.b32.xlu1 %v2007_v7, %s4816_s29  ;;  %v4192_v13 = vpop.eup %4191 }
0x1394   :  { %v3329_v5 = vadd.f32 1.0, %v4192_v13  ;;  %v4194_v23 = vpop.eup %4193  ;;  %v3392_v13 = vld [vmem:[%s5601_s22 + $0x8] sm:$0x3f] }
0x1395   :  { %v3328_v46 = vadd.f32 1.0, %v4194_v23 }
0x1396   :  { %4195 = vrcp.f32 %v3329_v5 }
0x1397   :  { %4197 = vrcp.f32 %v3328_v46 }
0x1398   :  { %4199 = vpow2.f32 %v3503_v43 }
0x13a0   :  { %v4196_v26 = vpop.eup %4195 }
0x13a1   :  { %v4198_v37 = vpop.eup %4197 }
0x13a2   :  { %v4200_v50 = vpop.eup %4199 }
0x13a3   :  { %v1906_v55 = vadd.f32 1.0, %v4200_v50 }
0x13a5   :  { %4201 = vrcp.f32 %v1906_v55 }
0x13af   :  { %v4202_v34 = vpop.eup %4201 }
0x13b0   :  { %v1936_v24 = vmul.f32 %v4202_v34, %v5447_v62  ;;  %v3505_v62 = vmul.f32 -1.442695, %v5410_v17 }
0x13b2   :  { %v1940_v11 = vadd.f32 %v1936_v24, %v5254_v57  ;;  %4203 = vpow2.f32 %v3505_v62 }
0x13bc   :  { %v4204_v57 = vpop.eup %4203 }
0x13df   :  { %v3339_v30 = vpop.permute.xlu1 %3338 }
0x13e0   :  { %v3344_v35 = vmul.f32 %v4196_v26, %v3339_v30 }
0x13e2   :  { %v3346_v53 = vadd.f32 %v3344_v35, %v5391_v10  ;;  %v1944_v10 = vmul.f32 0.999995, %v1940_v11 }
0x13e3   :  { %v3337_v36 = vpop.permute.xlu1 %3336 }
0x13e4   :  { %v3340_v38 = vsel %vm1633_vm15, %v3337_v36, %v3339_v30  ;;  %v3348_v63 = vmul.f32 0.999995, %v3346_v53  ;;  %v3398_v30 = vld [vmem:[%s5601_s22 + $0xe] sm:$0x3] }
0x13e5   :  { %v3343_v41 = vmul.f32 %v4198_v37, %v3340_v38 }
0x13e7   :  { %v3345_v42 = vadd.f32 %v3343_v41, %v2984_v40 }
0x13e9   :  { %v3347_v44 = vmul.f32 0.999995, %v3345_v42 }
0x13eb   :  { %v3369_v47 = vmul.f32 %v3367_v58, %v3347_v44  ;;  %v3359_v48 = vmul.f32 %v5467_v31, %v3347_v44 }
0x13ed   :  { %3371 = vrot.lane.b32.xlu0 %v3369_v47, %s4815_s5  ;;  %3361 = vrot.lane.b32.xlu1 %v3359_v48, %s4808_s15 }
0x13f1   :  { %2013 = vrot.lane.b32.xlu0 %v2008_v49, %s4816_s29 }
0x13f4   :  { %v3377_v1 = vpop.permute.xlu1 %3376 }
0x13f5   :  { %v3379_v9 = vmul.f32 %v3377_v1, %v3347_v44 }
0x13f7   :  { %3381 = vrot.lane.b32.xlu1 %v3379_v9, %s4816_s29 }
0x13f9   :  { %v1950_v27 = vpop.permute.xlu1 %1949 }
0x13fa   :  { %v1957_v8 = vmul.f32 %v1950_v27, %v5462_v16  ;;  %v1908_v16 = vadd.f32 1.0, %v4204_v57 }
0x13fc   :  { %4205 = vrcp.f32 %v1908_v16 }
0x13fd   :  { %v3352_v52 = vpop.permute.xlu1 %3351 }
0x13fe   :  { %v3354_v31 = vmul.f32 %v3352_v52, %v3347_v44 }
0x1402   :  { %v2021_v3 = vpop.permute.xlu1 %2020 }
0x1403   :  { %v2027_v29 = vmul.f32 %v2021_v3, %v1944_v10 }
0x1406   :  { %v3387_v60 = vpop.permute.xlu1 %3386  ;;  %v4206_v58 = vpop.eup %4205 }
0x1407   :  { %v3389_v39 = vmul.f32 %v3387_v60, %v3348_v63 }
0x140a   :  { %v1972_v59 = vpop.permute.xlu1 %1971 }
0x140b   :  { %v1977_v12 = vadd.f32 %v1972_v59, %v1957_v8 }
0x140d   :  { %v1997_v15 = vadd.f32 %v1992_v14, %v1977_v12 }
0x140e   :  { %v1994_v61 = vpop.permute.xlu1 %1993 }
0x140f   :  { %v1998_v6 = vadd.f32 %v1994_v61, %v5485_v56  ;;  %v1938_v56 = vmul.f32 %v4206_v58, %v5452_v32 }
0x1411   :  { %v1942_v22 = vadd.f32 %v1938_v56, %v5261_v2 }
0x1412   :  { %v2012_v19 = vpop.permute.xlu1 %2011 }
0x1413   :  { %v2017_v0 = vadd.f32 %v2012_v19, %v1997_v15  ;;  %v1946_v18 = vmul.f32 0.999995, %v1942_v22 }
0x1415   :  { %v2029_v21 = vadd.f32 %v2027_v29, %v2017_v0  ;;  %v2028_v4 = vmul.f32 %v5483_v54, %v1946_v18 }
0x1417   :  { %v3393_v51 = vadd.f32 %v3391_v20, %v2029_v21 }
0x1419   :  { %3395 = vst.msk [vmem:[%s5020_s20] sm:$0xff] %vm1038_vm8, %v3393_v51 }
0x145f   :  { %v3372_v28 = vpop.permute.xlu0 %3371  ;;  %v3362_v7 = vpop.permute.xlu1 %3361 }
0x1460   :  { %v3364_v25 = vadd.f32 %v3362_v7, %v3354_v31 }
0x1462   :  { %v3374_v46 = vadd.f32 %v3372_v28, %v3364_v25 }
0x1463   :  { %v2014_v45 = vpop.permute.xlu0 %2013 }
0x1464   :  { %v2018_v17 = vadd.f32 %v2014_v45, %v1998_v6 }
0x1466   :  { %v2030_v5 = vadd.f32 %v2028_v4, %v2018_v17 }
0x1468   :  { %v3394_v23 = vadd.f32 %v3392_v13, %v2030_v5 }
0x1469   :  { %v3382_v26 = vpop.permute.xlu1 %3381 }
0x146a   :  { %3397 = vst.msk [vmem:[%s5020_s20 + $0x8] sm:$0x3f] %vm3396_vm4, %v3394_v23  ;;  %v3384_v32 = vadd.f32 %v3382_v26, %v3374_v46 }
0x146c   :  { %v3390_v2 = vadd.f32 %v3389_v39, %v3384_v32 }
0x146e   :  { %v3399_v35 = vadd.f32 %v3398_v30, %v3390_v2 }
0x1470   :  { %3401 = vst.msk [vmem:[%s5020_s20 + $0xe] sm:$0x3] %vm3400_vm5, %v3399_v35 }
0x1471   :  { %3406 = vsyncpa [#allocation3], 1 }
0x1472   :  { %3407 = vsyncpa [#allocation5], 1 }
0x1473   :  { %3408 = vsyncpa [#allocation8], 1 }
0x1474   :  { %3409 = vsyncpa [#allocation11], 1 }
0x1475   :  { %3410 = vsyncpa [#allocation14], 1 }
0x1476   :  { %3411 = vsyncpa [#allocation17], 1 }
0x1477   :  { %3412 = vsyncpa [#allocation20], 1 }
0x1478   :  { %3413 = vsyncpa [#allocation23], 1 }
0x1479   :  { %3414 = vsyncpa [#allocation26], 1 }
0x147a   :  { %3415 = vsyncpa [#allocation29], 1 }
0x147b   :  { %3416 = vsyncpa [#allocation32], 1 }
0x147c   :  { %3417 = vsyncpa [#allocation35], 1 }

</bundles_post_ra>
